<compile_context>
chip_gen: v6e
topology: v6e:2x2x1
jax: 0.10.0
libtpu: 0.0.40
codegen_flags: <defaults>
</compile_context>

<pallas_src>
import functools

import numpy as np
import jax
import jax.numpy as jnp
from jax import lax
from jax.experimental import pallas as pl
from jax.experimental.pallas import tpu as pltpu


def _round_up(x, m):
    return ((x + m - 1) // m) * m


_TAPS = ((0, 0), (0, 1), (1, 0), (1, 1))   # (dy, dx) block offsets, k/s = 2


# --------------------------- trace-time constants --------------------------- #

def _make_masks(n, h, w, c, mmw):
    """Masks over the framed column layout (numpy, trace-time constants)."""
    gh, gw = h + 2, w + 2
    cont = n * gh * gw
    cols = np.arange(mmw)
    q = cols % (gh * gw)
    fy, fx = q // gw, q % gw
    incont = cols < cont
    # interior-content mask for the low-res maps (x0 and l0 - x0): keeps the
    # HxW content, zeroes the 1-pixel halo / padding columns.
    m_lo = (incont & (fy >= 1) & (fy <= h) & (fx >= 1) & (fx <= w))
    m_lo = m_lo.astype(np.float32)[None, :]                            # (1, mmw)
    # crop mask for the phase-layout deconv output (h0): zeroes the entries the
    # ConvTranspose2d output crop discards; those same entries double as h0's
    # zero padding for the following stride-4 conv.
    rows = np.arange(16 * c)
    ry = (rows // (4 * c))[:, None]
    rx = ((rows // c) % 4)[:, None]
    col_ok = incont & (fy >= 1) & (fy <= h + 1) & (fx >= 1) & (fx <= w + 1)
    bad_y = ((ry <= 1) & (fy[None, :] == 1)) | ((ry >= 2) & (fy[None, :] == h + 1))
    bad_x = ((rx <= 1) & (fx[None, :] == 1)) | ((rx >= 2) & (fx[None, :] == w + 1))
    m_z = (col_ok[None, :] & ~bad_y & ~bad_x).astype(np.float32)       # (16c, mmw)
    return m_lo, m_z


def _deconv_weight_taps(w_t, c):
    """(Cin, Cout, 8, 8) ConvTranspose2d weight -> (4, 16*Cout, Cin) per-tap
    sub-pixel weights; rows (ry, rx, co), taps (dy, dx)."""
    cin = w_t.shape[0]
    u = w_t.reshape(cin, c, 2, 4, 2, 4)              # (ci, co, dy, ry, dx, rx)
    u = jnp.transpose(u, (2, 4, 3, 5, 1, 0))         # (dy, dx, ry, rx, co, ci)
    return u.reshape(4, 16 * c, cin)


def _conv_weight_taps(w, c):
    """(Cout, Cin, 8, 8) Conv2d weight -> (4, Cout, 16*Cin) per-tap weights
    that consume the phase-layout input; cols (ry, rx, ci)."""
    cin = w.shape[1]
    v = w.reshape(c, cin, 2, 4, 2, 4)                # (co, ci, dy, ry, dx, rx)
    v = jnp.transpose(v, (2, 4, 0, 3, 5, 1))         # (dy, dx, co, ry, rx, ci)
    return v.reshape(4, c, 16 * cin)


# ------------------------------ Pallas kernel ------------------------------- #

def _dbpn_block_kernel(xf_ref, wc_ref, bc_ref, w1_ref, b1_ref, w2_ref, b2_ref,
                       w3_ref, b3_ref, mlo_ref, mz_ref, alpha_ref,
                       o_ref, x0_ref, z1_ref, t_ref, *, base, mmw, gw):
    f32 = jnp.float32
    bf16 = jnp.bfloat16

    # Scratch margins model the conv/deconv zero padding -> must start at zero.
    x0_ref[...] = jnp.zeros_like(x0_ref)
    z1_ref[...] = jnp.zeros_like(z1_ref)
    t_ref[...] = jnp.zeros_like(t_ref)

    def act(y, b_ref, i):
        y = y + b_ref[...]
        a = alpha_ref[i]
        return jnp.where(y > 0.0, y, a * y)

    # Stage 1: 1x1 conv (channel mix) directly on the framed input.
    y0 = jnp.dot(wc_ref[...], xf_ref[...], preferred_element_type=f32)
    x0_ref[:, base:base + mmw] = act(y0, bc_ref, 0) * mlo_ref[...]

    # Stage 2: deconv1 (sub-pixel decomposition): 4 shifted taps, per-tap matmul.
    acc = None
    for t, (dy, dx) in enumerate(_TAPS):
        rhs = x0_ref[:, pl.ds(base - (dy * gw + dx), mmw)].astype(bf16)
        part = jnp.dot(w1_ref[t], rhs, preferred_element_type=f32)
        acc = part if acc is None else acc + part
    z1_ref[:, base:base + mmw] = act(acc, b1_ref, 1) * mz_ref[...]

    # Stage 3: stride-4 conv consuming h0 in its phase layout; epilogue fuses
    # the (l0 - x0) residual.
    acc = None
    for t, (dy, dx) in enumerate(_TAPS):
        rhs = z1_ref[:, pl.ds(base + (dy * gw + dx), mmw)].astype(bf16)
        part = jnp.dot(w2_ref[t], rhs, preferred_element_type=f32)
        acc = part if acc is None else acc + part
    l0 = act(acc, b2_ref, 2)
    t_ref[:, base:base + mmw] = (l0 - x0_ref[:, base:base + mmw]) * mlo_ref[...]

    # Stage 4: deconv3 on (l0 - x0); epilogue fuses the h1 + h0 residual.
    acc = None
    for t, (dy, dx) in enumerate(_TAPS):
        rhs = t_ref[:, pl.ds(base - (dy * gw + dx), mmw)].astype(bf16)
        part = jnp.dot(w3_ref[t], rhs, preferred_element_type=f32)
        acc = part if acc is None else acc + part
    o_ref[...] = act(acc, b3_ref, 3) + z1_ref[:, base:base + mmw]


# --------------------------------- wrapper ---------------------------------- #

def d_up_block_dbpn(x, params, kernel_size=8, stride=4, padding=2):
    assert (kernel_size, stride, padding) == (8, 4, 2), \
        "fused kernel is specialized to the DBPN default geometry (k=8, s=4, p=2)"
    n, cin_total, h, w = x.shape
    c = params["conv_w"].shape[0]
    pr = 16 * c                        # phase rows (s*s*Cout) of the deconvs
    gh, gw = h + 2, w + 2              # framed low-res grid (1-pixel halo)
    cont = n * gh * gw
    mmw = _round_up(cont, 128)         # lane width of every matmul
    base = _round_up(gw + 1, 128)      # content start inside the scratch rows
    sw = base + _round_up(mmw + gw + 1, 128)

    m_lo, m_z = _make_masks(n, h, w, c, mmw)

    # ---- tiny XLA-side prep (weights / biases / framed input), one fusion ----
    xf = jnp.transpose(x, (1, 0, 2, 3))                         # NCHW -> CNHW
    xf = jnp.pad(xf, ((0, 0), (0, 0), (1, 1), (1, 1)))
    xf = xf.reshape(cin_total, cont)
    xf = jnp.pad(xf, ((0, 0), (0, mmw - cont))).astype(jnp.bfloat16)

    wc = params["conv_w"].reshape(c, cin_total).astype(jnp.bfloat16)
    w1 = _deconv_weight_taps(params["up1_w"], c).astype(jnp.bfloat16)
    w2 = _conv_weight_taps(params["up2_w"], c).astype(jnp.bfloat16)
    w3 = _deconv_weight_taps(params["up3_w"], c).astype(jnp.bfloat16)
    bc = params["conv_b"].astype(jnp.float32).reshape(c, 1)
    b1 = jnp.tile(params["up1_b"].astype(jnp.float32), 16).reshape(pr, 1)
    b2 = params["up2_b"].astype(jnp.float32).reshape(c, 1)
    b3 = jnp.tile(params["up3_b"].astype(jnp.float32), 16).reshape(pr, 1)
    alphas = jnp.stack([params["conv_a"], params["up1_a"],
                        params["up2_a"], params["up3_a"]]).astype(jnp.float32)

    kernel = functools.partial(_dbpn_block_kernel, base=base, mmw=mmw, gw=gw)

    def vmem():
        return pl.BlockSpec(memory_space=pltpu.MemorySpace.VMEM)

    out = pl.pallas_call(
        kernel,
        out_shape=jax.ShapeDtypeStruct((pr, mmw), jnp.float32),
        in_specs=[vmem() for _ in range(11)]
        + [pl.BlockSpec(memory_space=pltpu.MemorySpace.SMEM)],
        out_specs=vmem(),
        scratch_shapes=[
            pltpu.VMEM((c, sw), jnp.float32),    # x0   (framed)
            pltpu.VMEM((pr, sw), jnp.float32),   # h0   (phase layout, framed)
            pltpu.VMEM((c, sw), jnp.float32),    # l0-x0 (framed)
        ],
    )(xf, wc, bc, w1, b1, w2, b2, w3, b3,
      jnp.asarray(m_lo), jnp.asarray(m_z), alphas)

    # TODO(synk): write the depth-to-space straight from the kernel (strided
    # output stores per phase row) to drop this last small XLA transpose.
    o = out[:, :cont].reshape(4, 4, c, n, gh, gw)       # (ry, rx, co, n, fy, fx)
    o = o[:, :, :, :, 1:h + 2, 1:w + 2]                 # valid q-grid
    o = jnp.transpose(o, (3, 2, 4, 0, 5, 1))            # (n, co, qy, ry, qx, rx)
    o = o.reshape(n, c, 4 * (h + 1), 4 * (w + 1))
    return o[:, :, 2:2 + 4 * h, 2:2 + 4 * w]            # (N, C, 4H, 4W)


# ----------------------------- pure-JAX reference --------------------------- #

def _prelu(y, a):
    return jnp.where(y > 0, y, a * y)


def _ref_conv(x, w, b, a, s, p):
    y = lax.conv_general_dilated(
        x, w, (s, s), [(p, p), (p, p)],
        dimension_numbers=("NCHW", "OIHW", "NCHW"))
    return _prelu(y + b[None, :, None, None], a)


def _ref_deconv(x, w_t, b, a, s, p):
    k = w_t.shape[-1]
    w_conv = jnp.transpose(w_t, (1, 0, 2, 3))[:, :, ::-1, ::-1]
    pp = k - 1 - p
    y = lax.conv_general_dilated(
        x, w_conv, (1, 1), [(pp, pp), (pp, pp)], lhs_dilation=(s, s),
        dimension_numbers=("NCHW", "OIHW", "NCHW"))
    return _prelu(y + b[None, :, None, None], a)


def _ref_block(x, p, s=4, pad=2):
    x0 = _ref_conv(x, p["conv_w"], p["conv_b"], p["conv_a"], 1, 0)
    h0 = _ref_deconv(x0, p["up1_w"], p["up1_b"], p["up1_a"], s, pad)
    l0 = _ref_conv(h0, p["up2_w"], p["up2_b"], p["up2_a"], s, pad)
    h1 = _ref_deconv(l0 - x0, p["up3_w"], p["up3_b"], p["up3_a"], s, pad)
    return h1 + h0


# ----------------------------------- main ------------------------------------ #

if __name__ == "__main__":
    num_filter, num_stages, k = 8, 1, 8
    N, H, W = 2, 8, 8

    key = jax.random.PRNGKey(0)
    keys = jax.random.split(key, 9)
    x = jax.random.normal(keys[0], (N, num_filter * num_stages, H, W),
                          dtype=jnp.float32)

    def w_init(kk, shape, scale=0.05):
        return scale * jax.random.normal(kk, shape, dtype=jnp.float32)

    params = {
        # 1x1 conv: (Cout, Cin, 1, 1)
        "conv_w": w_init(keys[1], (num_filter, num_filter * num_stages, 1, 1)),
        "conv_b": w_init(keys[2], (num_filter,)),
        "conv_a": jnp.array(0.25, jnp.float32),
        # deconv1: ConvTranspose2d weight layout (Cin, Cout, k, k)
        "up1_w": w_init(keys[3], (num_filter, num_filter, k, k)),
        "up1_b": w_init(keys[4], (num_filter,)),
        "up1_a": jnp.array(0.25, jnp.float32),
        # conv2: (Cout, Cin, k, k)
        "up2_w": w_init(keys[5], (num_filter, num_filter, k, k)),
        "up2_b": w_init(keys[6], (num_filter,)),
        "up2_a": jnp.array(0.25, jnp.float32),
        # deconv3: (Cin, Cout, k, k)
        "up3_w": w_init(keys[7], (num_filter, num_filter, k, k)),
        "up3_b": w_init(keys[8], (num_filter,)),
        "up3_a": jnp.array(0.25, jnp.float32),
    }

    fwd = jax.jit(d_up_block_dbpn)
    out = jax.block_until_ready(fwd(x, params))

    ref = jax.block_until_ready(_ref_block(x, params))
    assert out.shape == (N, num_filter, 4 * H, 4 * W), out.shape
    if not np.allclose(np.asarray(out), np.asarray(ref), rtol=2e-2, atol=2e-3):
        err = np.max(np.abs(np.asarray(out) - np.asarray(ref)))
        raise AssertionError(f"Pallas result does not match reference, max |err|={err}")

    print("KERNEL_OK")
</pallas_src>

<mosaic_0001>
module attributes {stable_mosaic.version = 11 : i64} {
  func.func @_dbpn_block_kernel(%arg0: memref<8x256xbf16, #tpu.memory_space<vmem>>, %arg1: memref<8x8xbf16, #tpu.memory_space<vmem>>, %arg2: memref<8x1xf32, #tpu.memory_space<vmem>>, %arg3: memref<4x128x8xbf16, #tpu.memory_space<vmem>>, %arg4: memref<128x1xf32, #tpu.memory_space<vmem>>, %arg5: memref<4x8x128xbf16, #tpu.memory_space<vmem>>, %arg6: memref<8x1xf32, #tpu.memory_space<vmem>>, %arg7: memref<4x128x8xbf16, #tpu.memory_space<vmem>>, %arg8: memref<128x1xf32, #tpu.memory_space<vmem>>, %arg9: memref<1x256xf32, #tpu.memory_space<vmem>>, %arg10: memref<128x256xf32, #tpu.memory_space<vmem>>, %arg11: memref<4xf32, #tpu.memory_space<smem>>, %arg12: memref<128x256xf32, #tpu.memory_space<vmem>>, %arg13: memref<8x512xf32, #tpu.memory_space<vmem>>, %arg14: memref<128x512xf32, #tpu.memory_space<vmem>>, %arg15: memref<8x512xf32, #tpu.memory_space<vmem>>) attributes {dimension_semantics = [], scalar_prefetch = 0 : i64, scratch_operands = 3 : i64, tpu.core_type = #tpu.core_type<tc>} {
    %cst = arith.constant 0.000000e+00 : f32
    %0 = vector.broadcast %cst : f32 to vector<8x512xf32>
    %c0 = arith.constant 0 : index
    %c0_0 = arith.constant 0 : index
    %1 = vector.load %arg13[%c0, %c0_0] : memref<8x512xf32, #tpu.memory_space<vmem>>, vector<8x512xf32>
    tpu.vector_store %arg13[%c0, %c0_0], %0 {strides = array<i32>} : memref<8x512xf32, #tpu.memory_space<vmem>>, vector<8x512xf32>,
    %cst_1 = arith.constant 0.000000e+00 : f32
    %2 = vector.broadcast %cst_1 : f32 to vector<128x512xf32>
    %c0_2 = arith.constant 0 : index
    %c0_3 = arith.constant 0 : index
    %3 = vector.load %arg14[%c0_2, %c0_3] : memref<128x512xf32, #tpu.memory_space<vmem>>, vector<128x512xf32>
    tpu.vector_store %arg14[%c0_2, %c0_3], %2 {strides = array<i32>} : memref<128x512xf32, #tpu.memory_space<vmem>>, vector<128x512xf32>,
    %cst_4 = arith.constant 0.000000e+00 : f32
    %4 = vector.broadcast %cst_4 : f32 to vector<8x512xf32>
    %c0_5 = arith.constant 0 : index
    %c0_6 = arith.constant 0 : index
    %5 = vector.load %arg15[%c0_5, %c0_6] : memref<8x512xf32, #tpu.memory_space<vmem>>, vector<8x512xf32>
    tpu.vector_store %arg15[%c0_5, %c0_6], %4 {strides = array<i32>} : memref<8x512xf32, #tpu.memory_space<vmem>>, vector<8x512xf32>,
    %c0_7 = arith.constant 0 : index
    %c0_8 = arith.constant 0 : index
    %6 = vector.load %arg1[%c0_7, %c0_8] : memref<8x8xbf16, #tpu.memory_space<vmem>>, vector<8x8xbf16>
    %c0_9 = arith.constant 0 : index
    %c0_10 = arith.constant 0 : index
    %7 = vector.load %arg0[%c0_9, %c0_10] : memref<8x256xbf16, #tpu.memory_space<vmem>>, vector<8x256xbf16>
    %cst_11 = arith.constant dense<0.000000e+00> : vector<8x256xf32>
    %8 = tpu.matmul %6, %7, %cst_11 {dimension_numbers = #tpu.dot_dimension_numbers<[1], [0], [0], [1], [0, 0, 1, 1], [], []>} : vector<8x8xbf16>, vector<8x256xbf16>, vector<8x256xf32> -> vector<8x256xf32>
    %c0_12 = arith.constant 0 : index
    %c0_13 = arith.constant 0 : index
    %9 = vector.load %arg2[%c0_12, %c0_13] : memref<8x1xf32, #tpu.memory_space<vmem>>, vector<8x1xf32>
    %10 = vector.broadcast %9 : vector<8x1xf32> to vector<8x256xf32>
    %11 = arith.addf %8, %10 : vector<8x256xf32>
    %c0_14 = arith.constant 0 : index
    %12 = memref.load %arg11[%c0_14] : memref<4xf32, #tpu.memory_space<smem>>
    %cst_15 = arith.constant 0.000000e+00 : f32
    %13 = vector.broadcast %cst_15 : f32 to vector<8x256xf32>
    %14 = arith.cmpf ogt, %11, %13 : vector<8x256xf32>
    %15 = vector.broadcast %12 : f32 to vector<8x256xf32>
    %16 = arith.mulf %15, %11 : vector<8x256xf32>
    %17 = arith.select %14, %11, %16 : vector<8x256xi1>, vector<8x256xf32>
    %c0_16 = arith.constant 0 : index
    %c0_17 = arith.constant 0 : index
    %18 = vector.load %arg9[%c0_16, %c0_17] : memref<1x256xf32, #tpu.memory_space<vmem>>, vector<1x256xf32>
    %19 = vector.broadcast %18 : vector<1x256xf32> to vector<8x256xf32>
    %20 = arith.mulf %17, %19 : vector<8x256xf32>
    %c0_18 = arith.constant 0 : index
    %c128 = arith.constant 128 : index
    %21 = vector.load %arg13[%c0_18, %c128] : memref<8x512xf32, #tpu.memory_space<vmem>>, vector<8x256xf32>
    tpu.vector_store %arg13[%c0_18, %c128], %20 {strides = array<i32>} : memref<8x512xf32, #tpu.memory_space<vmem>>, vector<8x256xf32>,
    %c0_19 = arith.constant 0 : index
    %c128_20 = arith.constant 128 : index
    %22 = vector.load %arg13[%c0_19, %c128_20] : memref<8x512xf32, #tpu.memory_space<vmem>>, vector<8x256xf32>
    %23 = arith.truncf %22 : vector<8x256xf32> to vector<8x256xbf16>
    %c0_21 = arith.constant 0 : index
    %c0_22 = arith.constant 0 : index
    %c0_23 = arith.constant 0 : index
    %24 = vector.load %arg3[%c0_21, %c0_22, %c0_23] : memref<4x128x8xbf16, #tpu.memory_space<vmem>>, vector<1x128x8xbf16>
    %25 = vector.shape_cast %24 : vector<1x128x8xbf16> to vector<128x8xbf16>
    %cst_24 = arith.constant dense<0.000000e+00> : vector<128x256xf32>
    %26 = tpu.matmul %25, %23, %cst_24 {dimension_numbers = #tpu.dot_dimension_numbers<[1], [0], [0], [1], [0, 0, 1, 1], [], []>} : vector<128x8xbf16>, vector<8x256xbf16>, vector<128x256xf32> -> vector<128x256xf32>
    %c0_25 = arith.constant 0 : index
    %c127 = arith.constant 127 : index
    %27 = vector.load %arg13[%c0_25, %c127] : memref<8x512xf32, #tpu.memory_space<vmem>>, vector<8x256xf32>
    %28 = arith.truncf %27 : vector<8x256xf32> to vector<8x256xbf16>
    %c1 = arith.constant 1 : index
    %c0_26 = arith.constant 0 : index
    %c0_27 = arith.constant 0 : index
    %29 = vector.load %arg3[%c1, %c0_26, %c0_27] : memref<4x128x8xbf16, #tpu.memory_space<vmem>>, vector<1x128x8xbf16>
    %30 = vector.shape_cast %29 : vector<1x128x8xbf16> to vector<128x8xbf16>
    %cst_28 = arith.constant dense<0.000000e+00> : vector<128x256xf32>
    %31 = tpu.matmul %30, %28, %cst_28 {dimension_numbers = #tpu.dot_dimension_numbers<[1], [0], [0], [1], [0, 0, 1, 1], [], []>} : vector<128x8xbf16>, vector<8x256xbf16>, vector<128x256xf32> -> vector<128x256xf32>
    %32 = arith.addf %26, %31 : vector<128x256xf32>
    %c0_29 = arith.constant 0 : index
    %c118 = arith.constant 118 : index
    %33 = vector.load %arg13[%c0_29, %c118] : memref<8x512xf32, #tpu.memory_space<vmem>>, vector<8x256xf32>
    %34 = arith.truncf %33 : vector<8x256xf32> to vector<8x256xbf16>
    %c2 = arith.constant 2 : index
    %c0_30 = arith.constant 0 : index
    %c0_31 = arith.constant 0 : index
    %35 = vector.load %arg3[%c2, %c0_30, %c0_31] : memref<4x128x8xbf16, #tpu.memory_space<vmem>>, vector<1x128x8xbf16>
    %36 = vector.shape_cast %35 : vector<1x128x8xbf16> to vector<128x8xbf16>
    %cst_32 = arith.constant dense<0.000000e+00> : vector<128x256xf32>
    %37 = tpu.matmul %36, %34, %cst_32 {dimension_numbers = #tpu.dot_dimension_numbers<[1], [0], [0], [1], [0, 0, 1, 1], [], []>} : vector<128x8xbf16>, vector<8x256xbf16>, vector<128x256xf32> -> vector<128x256xf32>
    %38 = arith.addf %32, %37 : vector<128x256xf32>
    %c0_33 = arith.constant 0 : index
    %c117 = arith.constant 117 : index
    %39 = vector.load %arg13[%c0_33, %c117] : memref<8x512xf32, #tpu.memory_space<vmem>>, vector<8x256xf32>
    %40 = arith.truncf %39 : vector<8x256xf32> to vector<8x256xbf16>
    %c3 = arith.constant 3 : index
    %c0_34 = arith.constant 0 : index
    %c0_35 = arith.constant 0 : index
    %41 = vector.load %arg3[%c3, %c0_34, %c0_35] : memref<4x128x8xbf16, #tpu.memory_space<vmem>>, vector<1x128x8xbf16>
    %42 = vector.shape_cast %41 : vector<1x128x8xbf16> to vector<128x8xbf16>
    %cst_36 = arith.constant dense<0.000000e+00> : vector<128x256xf32>
    %43 = tpu.matmul %42, %40, %cst_36 {dimension_numbers = #tpu.dot_dimension_numbers<[1], [0], [0], [1], [0, 0, 1, 1], [], []>} : vector<128x8xbf16>, vector<8x256xbf16>, vector<128x256xf32> -> vector<128x256xf32>
    %44 = arith.addf %38, %43 : vector<128x256xf32>
    %c0_37 = arith.constant 0 : index
    %c0_38 = arith.constant 0 : index
    %45 = vector.load %arg4[%c0_37, %c0_38] : memref<128x1xf32, #tpu.memory_space<vmem>>, vector<128x1xf32>
    %46 = vector.broadcast %45 : vector<128x1xf32> to vector<128x256xf32>
    %47 = arith.addf %44, %46 : vector<128x256xf32>
    %c1_39 = arith.constant 1 : index
    %48 = memref.load %arg11[%c1_39] : memref<4xf32, #tpu.memory_space<smem>>
    %cst_40 = arith.constant 0.000000e+00 : f32
    %49 = vector.broadcast %cst_40 : f32 to vector<128x256xf32>
    %50 = arith.cmpf ogt, %47, %49 : vector<128x256xf32>
    %51 = vector.broadcast %48 : f32 to vector<128x256xf32>
    %52 = arith.mulf %51, %47 : vector<128x256xf32>
    %53 = arith.select %50, %47, %52 : vector<128x256xi1>, vector<128x256xf32>
    %c0_41 = arith.constant 0 : index
    %c0_42 = arith.constant 0 : index
    %54 = vector.load %arg10[%c0_41, %c0_42] : memref<128x256xf32, #tpu.memory_space<vmem>>, vector<128x256xf32>
    %55 = arith.mulf %53, %54 : vector<128x256xf32>
    %c0_43 = arith.constant 0 : index
    %c128_44 = arith.constant 128 : index
    %56 = vector.load %arg14[%c0_43, %c128_44] : memref<128x512xf32, #tpu.memory_space<vmem>>, vector<128x256xf32>
    tpu.vector_store %arg14[%c0_43, %c128_44], %55 {strides = array<i32>} : memref<128x512xf32, #tpu.memory_space<vmem>>, vector<128x256xf32>,
    %c0_45 = arith.constant 0 : index
    %c128_46 = arith.constant 128 : index
    %57 = vector.load %arg14[%c0_45, %c128_46] : memref<128x512xf32, #tpu.memory_space<vmem>>, vector<128x256xf32>
    %58 = arith.truncf %57 : vector<128x256xf32> to vector<128x256xbf16>
    %c0_47 = arith.constant 0 : index
    %c0_48 = arith.constant 0 : index
    %c0_49 = arith.constant 0 : index
    %59 = vector.load %arg5[%c0_47, %c0_48, %c0_49] : memref<4x8x128xbf16, #tpu.memory_space<vmem>>, vector<1x8x128xbf16>
    %60 = vector.shape_cast %59 : vector<1x8x128xbf16> to vector<8x128xbf16>
    %cst_50 = arith.constant dense<0.000000e+00> : vector<8x256xf32>
    %61 = tpu.matmul %60, %58, %cst_50 {dimension_numbers = #tpu.dot_dimension_numbers<[1], [0], [0], [1], [0, 0, 1, 1], [], []>} : vector<8x128xbf16>, vector<128x256xbf16>, vector<8x256xf32> -> vector<8x256xf32>
    %c0_51 = arith.constant 0 : index
    %c129 = arith.constant 129 : index
    %62 = vector.load %arg14[%c0_51, %c129] : memref<128x512xf32, #tpu.memory_space<vmem>>, vector<128x256xf32>
    %63 = arith.truncf %62 : vector<128x256xf32> to vector<128x256xbf16>
    %c1_52 = arith.constant 1 : index
    %c0_53 = arith.constant 0 : index
    %c0_54 = arith.constant 0 : index
    %64 = vector.load %arg5[%c1_52, %c0_53, %c0_54] : memref<4x8x128xbf16, #tpu.memory_space<vmem>>, vector<1x8x128xbf16>
    %65 = vector.shape_cast %64 : vector<1x8x128xbf16> to vector<8x128xbf16>
    %cst_55 = arith.constant dense<0.000000e+00> : vector<8x256xf32>
    %66 = tpu.matmul %65, %63, %cst_55 {dimension_numbers = #tpu.dot_dimension_numbers<[1], [0], [0], [1], [0, 0, 1, 1], [], []>} : vector<8x128xbf16>, vector<128x256xbf16>, vector<8x256xf32> -> vector<8x256xf32>
    %67 = arith.addf %61, %66 : vector<8x256xf32>
    %c0_56 = arith.constant 0 : index
    %c138 = arith.constant 138 : index
    %68 = vector.load %arg14[%c0_56, %c138] : memref<128x512xf32, #tpu.memory_space<vmem>>, vector<128x256xf32>
    %69 = arith.truncf %68 : vector<128x256xf32> to vector<128x256xbf16>
    %c2_57 = arith.constant 2 : index
    %c0_58 = arith.constant 0 : index
    %c0_59 = arith.constant 0 : index
    %70 = vector.load %arg5[%c2_57, %c0_58, %c0_59] : memref<4x8x128xbf16, #tpu.memory_space<vmem>>, vector<1x8x128xbf16>
    %71 = vector.shape_cast %70 : vector<1x8x128xbf16> to vector<8x128xbf16>
    %cst_60 = arith.constant dense<0.000000e+00> : vector<8x256xf32>
    %72 = tpu.matmul %71, %69, %cst_60 {dimension_numbers = #tpu.dot_dimension_numbers<[1], [0], [0], [1], [0, 0, 1, 1], [], []>} : vector<8x128xbf16>, vector<128x256xbf16>, vector<8x256xf32> -> vector<8x256xf32>
    %73 = arith.addf %67, %72 : vector<8x256xf32>
    %c0_61 = arith.constant 0 : index
    %c139 = arith.constant 139 : index
    %74 = vector.load %arg14[%c0_61, %c139] : memref<128x512xf32, #tpu.memory_space<vmem>>, vector<128x256xf32>
    %75 = arith.truncf %74 : vector<128x256xf32> to vector<128x256xbf16>
    %c3_62 = arith.constant 3 : index
    %c0_63 = arith.constant 0 : index
    %c0_64 = arith.constant 0 : index
    %76 = vector.load %arg5[%c3_62, %c0_63, %c0_64] : memref<4x8x128xbf16, #tpu.memory_space<vmem>>, vector<1x8x128xbf16>
    %77 = vector.shape_cast %76 : vector<1x8x128xbf16> to vector<8x128xbf16>
    %cst_65 = arith.constant dense<0.000000e+00> : vector<8x256xf32>
    %78 = tpu.matmul %77, %75, %cst_65 {dimension_numbers = #tpu.dot_dimension_numbers<[1], [0], [0], [1], [0, 0, 1, 1], [], []>} : vector<8x128xbf16>, vector<128x256xbf16>, vector<8x256xf32> -> vector<8x256xf32>
    %79 = arith.addf %73, %78 : vector<8x256xf32>
    %c0_66 = arith.constant 0 : index
    %c0_67 = arith.constant 0 : index
    %80 = vector.load %arg6[%c0_66, %c0_67] : memref<8x1xf32, #tpu.memory_space<vmem>>, vector<8x1xf32>
    %81 = vector.broadcast %80 : vector<8x1xf32> to vector<8x256xf32>
    %82 = arith.addf %79, %81 : vector<8x256xf32>
    %c2_68 = arith.constant 2 : index
    %83 = memref.load %arg11[%c2_68] : memref<4xf32, #tpu.memory_space<smem>>
    %cst_69 = arith.constant 0.000000e+00 : f32
    %84 = vector.broadcast %cst_69 : f32 to vector<8x256xf32>
    %85 = arith.cmpf ogt, %82, %84 : vector<8x256xf32>
    %86 = vector.broadcast %83 : f32 to vector<8x256xf32>
    %87 = arith.mulf %86, %82 : vector<8x256xf32>
    %88 = arith.select %85, %82, %87 : vector<8x256xi1>, vector<8x256xf32>
    %c0_70 = arith.constant 0 : index
    %c128_71 = arith.constant 128 : index
    %89 = vector.load %arg13[%c0_70, %c128_71] : memref<8x512xf32, #tpu.memory_space<vmem>>, vector<8x256xf32>
    %90 = arith.subf %88, %89 : vector<8x256xf32>
    %c0_72 = arith.constant 0 : index
    %c0_73 = arith.constant 0 : index
    %91 = vector.load %arg9[%c0_72, %c0_73] : memref<1x256xf32, #tpu.memory_space<vmem>>, vector<1x256xf32>
    %92 = vector.broadcast %91 : vector<1x256xf32> to vector<8x256xf32>
    %93 = arith.mulf %90, %92 : vector<8x256xf32>
    %c0_74 = arith.constant 0 : index
    %c128_75 = arith.constant 128 : index
    %94 = vector.load %arg15[%c0_74, %c128_75] : memref<8x512xf32, #tpu.memory_space<vmem>>, vector<8x256xf32>
    tpu.vector_store %arg15[%c0_74, %c128_75], %93 {strides = array<i32>} : memref<8x512xf32, #tpu.memory_space<vmem>>, vector<8x256xf32>,
    %c0_76 = arith.constant 0 : index
    %c128_77 = arith.constant 128 : index
    %95 = vector.load %arg15[%c0_76, %c128_77] : memref<8x512xf32, #tpu.memory_space<vmem>>, vector<8x256xf32>
    %96 = arith.truncf %95 : vector<8x256xf32> to vector<8x256xbf16>
    %c0_78 = arith.constant 0 : index
    %c0_79 = arith.constant 0 : index
    %c0_80 = arith.constant 0 : index
    %97 = vector.load %arg7[%c0_78, %c0_79, %c0_80] : memref<4x128x8xbf16, #tpu.memory_space<vmem>>, vector<1x128x8xbf16>
    %98 = vector.shape_cast %97 : vector<1x128x8xbf16> to vector<128x8xbf16>
    %cst_81 = arith.constant dense<0.000000e+00> : vector<128x256xf32>
    %99 = tpu.matmul %98, %96, %cst_81 {dimension_numbers = #tpu.dot_dimension_numbers<[1], [0], [0], [1], [0, 0, 1, 1], [], []>} : vector<128x8xbf16>, vector<8x256xbf16>, vector<128x256xf32> -> vector<128x256xf32>
    %c0_82 = arith.constant 0 : index
    %c127_83 = arith.constant 127 : index
    %100 = vector.load %arg15[%c0_82, %c127_83] : memref<8x512xf32, #tpu.memory_space<vmem>>, vector<8x256xf32>
    %101 = arith.truncf %100 : vector<8x256xf32> to vector<8x256xbf16>
    %c1_84 = arith.constant 1 : index
    %c0_85 = arith.constant 0 : index
    %c0_86 = arith.constant 0 : index
    %102 = vector.load %arg7[%c1_84, %c0_85, %c0_86] : memref<4x128x8xbf16, #tpu.memory_space<vmem>>, vector<1x128x8xbf16>
    %103 = vector.shape_cast %102 : vector<1x128x8xbf16> to vector<128x8xbf16>
    %cst_87 = arith.constant dense<0.000000e+00> : vector<128x256xf32>
    %104 = tpu.matmul %103, %101, %cst_87 {dimension_numbers = #tpu.dot_dimension_numbers<[1], [0], [0], [1], [0, 0, 1, 1], [], []>} : vector<128x8xbf16>, vector<8x256xbf16>, vector<128x256xf32> -> vector<128x256xf32>
    %105 = arith.addf %99, %104 : vector<128x256xf32>
    %c0_88 = arith.constant 0 : index
    %c118_89 = arith.constant 118 : index
    %106 = vector.load %arg15[%c0_88, %c118_89] : memref<8x512xf32, #tpu.memory_space<vmem>>, vector<8x256xf32>
    %107 = arith.truncf %106 : vector<8x256xf32> to vector<8x256xbf16>
    %c2_90 = arith.constant 2 : index
    %c0_91 = arith.constant 0 : index
    %c0_92 = arith.constant 0 : index
    %108 = vector.load %arg7[%c2_90, %c0_91, %c0_92] : memref<4x128x8xbf16, #tpu.memory_space<vmem>>, vector<1x128x8xbf16>
    %109 = vector.shape_cast %108 : vector<1x128x8xbf16> to vector<128x8xbf16>
    %cst_93 = arith.constant dense<0.000000e+00> : vector<128x256xf32>
    %110 = tpu.matmul %109, %107, %cst_93 {dimension_numbers = #tpu.dot_dimension_numbers<[1], [0], [0], [1], [0, 0, 1, 1], [], []>} : vector<128x8xbf16>, vector<8x256xbf16>, vector<128x256xf32> -> vector<128x256xf32>
    %111 = arith.addf %105, %110 : vector<128x256xf32>
    %c0_94 = arith.constant 0 : index
    %c117_95 = arith.constant 117 : index
    %112 = vector.load %arg15[%c0_94, %c117_95] : memref<8x512xf32, #tpu.memory_space<vmem>>, vector<8x256xf32>
    %113 = arith.truncf %112 : vector<8x256xf32> to vector<8x256xbf16>
    %c3_96 = arith.constant 3 : index
    %c0_97 = arith.constant 0 : index
    %c0_98 = arith.constant 0 : index
    %114 = vector.load %arg7[%c3_96, %c0_97, %c0_98] : memref<4x128x8xbf16, #tpu.memory_space<vmem>>, vector<1x128x8xbf16>
    %115 = vector.shape_cast %114 : vector<1x128x8xbf16> to vector<128x8xbf16>
    %cst_99 = arith.constant dense<0.000000e+00> : vector<128x256xf32>
    %116 = tpu.matmul %115, %113, %cst_99 {dimension_numbers = #tpu.dot_dimension_numbers<[1], [0], [0], [1], [0, 0, 1, 1], [], []>} : vector<128x8xbf16>, vector<8x256xbf16>, vector<128x256xf32> -> vector<128x256xf32>
    %117 = arith.addf %111, %116 : vector<128x256xf32>
    %c0_100 = arith.constant 0 : index
    %c0_101 = arith.constant 0 : index
    %118 = vector.load %arg8[%c0_100, %c0_101] : memref<128x1xf32, #tpu.memory_space<vmem>>, vector<128x1xf32>
    %119 = vector.broadcast %118 : vector<128x1xf32> to vector<128x256xf32>
    %120 = arith.addf %117, %119 : vector<128x256xf32>
    %c3_102 = arith.constant 3 : index
    %121 = memref.load %arg11[%c3_102] : memref<4xf32, #tpu.memory_space<smem>>
    %cst_103 = arith.constant 0.000000e+00 : f32
    %122 = vector.broadcast %cst_103 : f32 to vector<128x256xf32>
    %123 = arith.cmpf ogt, %120, %122 : vector<128x256xf32>
    %124 = vector.broadcast %121 : f32 to vector<128x256xf32>
    %125 = arith.mulf %124, %120 : vector<128x256xf32>
    %126 = arith.select %123, %120, %125 : vector<128x256xi1>, vector<128x256xf32>
    %c0_104 = arith.constant 0 : index
    %c128_105 = arith.constant 128 : index
    %127 = vector.load %arg14[%c0_104, %c128_105] : memref<128x512xf32, #tpu.memory_space<vmem>>, vector<128x256xf32>
    %128 = arith.addf %126, %127 : vector<128x256xf32>
    %c0_106 = arith.constant 0 : index
    %c0_107 = arith.constant 0 : index
    %129 = vector.load %arg12[%c0_106, %c0_107] : memref<128x256xf32, #tpu.memory_space<vmem>>, vector<128x256xf32>
    tpu.vector_store %arg12[%c0_106, %c0_107], %128 {strides = array<i32>} : memref<128x256xf32, #tpu.memory_space<vmem>>, vector<128x256xf32>,
    return
  }
}

</mosaic_0001>

<bundles_post_ra>
// kernel: tile.13
= control target key start
LH: loop header
LB: loop body
LE: loop exit
PB: predicated region body
PF: predicated region fallthrough
CT: control target
= control target key end

     0   :  { %2 = vsyncpa [#allocation1], 0  ;;  %s45_s6 = smov [#allocation0]   ;;  %s65_s0 = inlined_call_operand.hbm [shape: f32[8], index: 0, kind: input, shape index: {}]   ;;  %s66_s1 = inlined_call_operand.vmem [shape: f32[16,8], index: 1, kind: output, shape index: {}]  }
   0x1   :  { %s9_s7 = sshll.u32 %s45_s6, 4  ;;  %s10_s7 = int_to_ptr.vmem [resolvable:$true] %s9_s7 }
   0x2   :  { %s31_s8 = scalar_lea.vmem %s10_s7, 16  ;;  %s35_s9 = scalar_lea.vmem %s10_s7, 32 }
   0x3   :  { %p32_p0 = scmp.ne.s32.totalorder %s10_s7, %s31_s8  ;;  %p36_p1 = scmp.lt.s32.totalorder %s10_s7, %s10_s7 }
   0x4   :  { %p37_p2 = scmp.lt.s32.totalorder %s35_s9, %s31_s8 }
   0x6   :  { %p38_p3 = por %p37_p2, %p36_p1 }
   0x8   :  { %p39_p4 = pnand %p38_p3, %p32_p0 }
   0xa   :  { %42 = shalt.err (!%p39_p4)
}
   0xb   :  { %12 = dma.hbm_to_vmem [thread:$0]  %s65_s0, 16, %s10_s7, [#allocation1]  }
   0xc   :  { %43 = dma.done.wait [#allocation1], 16  }
   0xd   :  { %44 = vsyncadd [#allocation1], 4294967280  ;;  %v16_v0 = vld [vmem:[#allocation0] ss:$0 sm:$0xff] }
   0xe   :  { %17 = vst [vmem:[%s66_s1] sm:$0xff] %v16_v0  ;;  %21 = vst [vmem:[%s66_s1 + $0x8] sm:$0xff] %v16_v0 }
   0xf   :  { %20 = vsyncpa [#allocation1], 1 }

// kernel: tile.1
= control target key start
LH: loop header
LB: loop body
LE: loop exit
PB: predicated region body
PF: predicated region fallthrough
CT: control target
= control target key end

     0   :  { %vm3_vm0 = vcmask 7168   ;;  %s178_s10 = smov 127   ;;  %s179_s19 = smov 125   ;;  %s328_s0 = inlined_call_operand.vmem [shape: f32[16,8], index: 0, kind: input, shape index: {}]   ;;  %s329_s1 = inlined_call_operand.vmem [shape: f32[128,1], index: 1, kind: output, shape index: {}]  }
   0x1   :  { %v30_v0 = vld [vmem:[%s328_s0] sm:$0xff]   ;;  %v142_v1 = vld [vmem:[%s328_s0 + $0x8] sm:$0xff]   ;;  %s177_s0 = smov 126   ;;  %s180_s20 = smov 124  }
   0x2   :  { %31 = vrot.lane.b32.xlu1 %v30_v0, %s177_s0  ;;  %14 = vrot.lane.b32.xlu0 %v30_v0, %s178_s10  ;;  %4 = vst.msk [vmem:[%s329_s1] ss:$8 sm:$0xf] %vm3_vm0, %v30_v0   ;;  %5 = vst.msk [vmem:[%s329_s1] ss:$8 sm:$0xf0] %vm3_vm0, %v30_v0  }
   0x3   :  { %133 = vst.msk [vmem:[%s329_s1 + $0x40] ss:$8 sm:$0xf] %vm3_vm0, %v142_v1   ;;  %134 = vst.msk [vmem:[%s329_s1 + $0x40] ss:$8 sm:$0xf0] %vm3_vm0, %v142_v1  }
   0x4   :  { %s181_s21 = smov 123   ;;  %s182_s22 = smov 122  }
   0x5   :  { %s183_s23 = smov 121  }
   0x6   :  { %40 = vrot.lane.b32.xlu1 %v142_v1, %s177_s0  ;;  %23 = vrot.lane.b32.xlu0 %v142_v1, %s178_s10 }
   0xa   :  { %57 = vrot.lane.b32.xlu1 %v142_v1, %s179_s19  ;;  %48 = vrot.lane.b32.xlu0 %v30_v0, %s179_s19 }
   0xe   :  { %74 = vrot.lane.b32.xlu1 %v142_v1, %s180_s20  ;;  %65 = vrot.lane.b32.xlu0 %v30_v0, %s180_s20 }
  0x12   :  { %91 = vrot.lane.b32.xlu1 %v142_v1, %s181_s21  ;;  %82 = vrot.lane.b32.xlu0 %v30_v0, %s181_s21 }
  0x16   :  { %108 = vrot.lane.b32.xlu1 %v142_v1, %s182_s22  ;;  %99 = vrot.lane.b32.xlu0 %v30_v0, %s182_s22 }
  0x1a   :  { %125 = vrot.lane.b32.xlu1 %v142_v1, %s183_s23  ;;  %116 = vrot.lane.b32.xlu0 %v30_v0, %s183_s23 }
  0x74   :  { %v32_v2 = vpop.permute.xlu1 %31   ;;  %v15_v3 = vpop.permute.xlu0 %14  }
  0x75   :  { %140 = vst.msk [vmem:[%s329_s1 + $0x2] ss:$8 sm:$0xf] %vm3_vm0, %v32_v2   ;;  %141 = vst.msk [vmem:[%s329_s1 + $0x2] ss:$8 sm:$0xf0] %vm3_vm0, %v32_v2  }
  0x76   :  { %135 = vst.msk [vmem:[%s329_s1 + $0x1] ss:$8 sm:$0xf] %vm3_vm0, %v15_v3   ;;  %136 = vst.msk [vmem:[%s329_s1 + $0x1] ss:$8 sm:$0xf0] %vm3_vm0, %v15_v3  }
  0x78   :  { %v41_v4 = vpop.permute.xlu1 %40   ;;  %v24_v5 = vpop.permute.xlu0 %23  }
  0x79   :  { %143 = vst.msk [vmem:[%s329_s1 + $0x42] ss:$8 sm:$0xf] %vm3_vm0, %v41_v4   ;;  %144 = vst.msk [vmem:[%s329_s1 + $0x42] ss:$8 sm:$0xf0] %vm3_vm0, %v41_v4  }
  0x7a   :  { %138 = vst.msk [vmem:[%s329_s1 + $0x41] ss:$8 sm:$0xf] %vm3_vm0, %v24_v5   ;;  %139 = vst.msk [vmem:[%s329_s1 + $0x41] ss:$8 sm:$0xf0] %vm3_vm0, %v24_v5  }
  0x7c   :  { %v58_v6 = vpop.permute.xlu1 %57   ;;  %v49_v7 = vpop.permute.xlu0 %48  }
  0x7d   :  { %148 = vst.msk [vmem:[%s329_s1 + $0x43] ss:$8 sm:$0xf] %vm3_vm0, %v58_v6   ;;  %149 = vst.msk [vmem:[%s329_s1 + $0x43] ss:$8 sm:$0xf0] %vm3_vm0, %v58_v6  }
  0x7e   :  { %145 = vst.msk [vmem:[%s329_s1 + $0x3] ss:$8 sm:$0xf] %vm3_vm0, %v49_v7   ;;  %146 = vst.msk [vmem:[%s329_s1 + $0x3] ss:$8 sm:$0xf0] %vm3_vm0, %v49_v7  }
  0x80   :  { %v75_v8 = vpop.permute.xlu1 %74   ;;  %v66_v9 = vpop.permute.xlu0 %65  }
  0x81   :  { %153 = vst.msk [vmem:[%s329_s1 + $0x44] ss:$8 sm:$0xf] %vm3_vm0, %v75_v8   ;;  %154 = vst.msk [vmem:[%s329_s1 + $0x44] ss:$8 sm:$0xf0] %vm3_vm0, %v75_v8  }
  0x82   :  { %150 = vst.msk [vmem:[%s329_s1 + $0x4] ss:$8 sm:$0xf] %vm3_vm0, %v66_v9   ;;  %151 = vst.msk [vmem:[%s329_s1 + $0x4] ss:$8 sm:$0xf0] %vm3_vm0, %v66_v9  }
  0x84   :  { %v92_v10 = vpop.permute.xlu1 %91   ;;  %v83_v11 = vpop.permute.xlu0 %82  }
  0x85   :  { %158 = vst.msk [vmem:[%s329_s1 + $0x45] ss:$8 sm:$0xf] %vm3_vm0, %v92_v10   ;;  %159 = vst.msk [vmem:[%s329_s1 + $0x45] ss:$8 sm:$0xf0] %vm3_vm0, %v92_v10  }
  0x86   :  { %155 = vst.msk [vmem:[%s329_s1 + $0x5] ss:$8 sm:$0xf] %vm3_vm0, %v83_v11   ;;  %156 = vst.msk [vmem:[%s329_s1 + $0x5] ss:$8 sm:$0xf0] %vm3_vm0, %v83_v11  }
  0x88   :  { %v109_v12 = vpop.permute.xlu1 %108   ;;  %v100_v13 = vpop.permute.xlu0 %99  }
  0x89   :  { %163 = vst.msk [vmem:[%s329_s1 + $0x46] ss:$8 sm:$0xf] %vm3_vm0, %v109_v12   ;;  %164 = vst.msk [vmem:[%s329_s1 + $0x46] ss:$8 sm:$0xf0] %vm3_vm0, %v109_v12  }
  0x8a   :  { %160 = vst.msk [vmem:[%s329_s1 + $0x6] ss:$8 sm:$0xf] %vm3_vm0, %v100_v13   ;;  %161 = vst.msk [vmem:[%s329_s1 + $0x6] ss:$8 sm:$0xf0] %vm3_vm0, %v100_v13  }
  0x8c   :  { %v126_v14 = vpop.permute.xlu1 %125   ;;  %v117_v15 = vpop.permute.xlu0 %116  }
  0x8d   :  { %168 = vst.msk [vmem:[%s329_s1 + $0x47] ss:$8 sm:$0xf] %vm3_vm0, %v126_v14   ;;  %169 = vst.msk [vmem:[%s329_s1 + $0x47] ss:$8 sm:$0xf0] %vm3_vm0, %v126_v14  }
  0x8e   :  { %165 = vst.msk [vmem:[%s329_s1 + $0x7] ss:$8 sm:$0xf] %vm3_vm0, %v117_v15   ;;  %166 = vst.msk [vmem:[%s329_s1 + $0x7] ss:$8 sm:$0xf0] %vm3_vm0, %v117_v15  }

// kernel: d_up_block_dbpn.1
= control target key start
LH: loop header
LB: loop body
LE: loop exit
PB: predicated region body
PF: predicated region fallthrough
CT: control target
= control target key end

     0   :  { %17 = vsyncpa [#allocation6], 0  ;;  %s5513_s0 = inlined_call_operand.vmem [shape: bf16[8,256], index: 0, kind: input, shape index: {}]   ;;  %s5514_s1 = inlined_call_operand.vmem [shape: bf16[8,8], index: 1, kind: input, shape index: {}]   ;;  %s5515_s2 = inlined_call_operand.vmem [shape: f32[8,1], index: 2, kind: input, shape index: {}]   ;;  %s5516_s3 = inlined_call_operand.vmem [shape: bf16[4,128,8], index: 3, kind: input, shape index: {}]   ;;  %s5517_s4 = inlined_call_operand.vmem [shape: f32[128,1], index: 4, kind: input, shape index: {}]   ;;  %s5518_s5 = inlined_call_operand.vmem [shape: bf16[4,8,128], index: 5, kind: input, shape index: {}]   ;;  %s5519_s6 = inlined_call_operand.vmem [shape: f32[8,1], index: 6, kind: input, shape index: {}]   ;;  %s5520_s7 = inlined_call_operand.vmem [shape: bf16[4,128,8], index: 7, kind: input, shape index: {}]   ;;  %s5521_s8 = inlined_call_operand.vmem [shape: f32[128,1], index: 8, kind: input, shape index: {}]   ;;  %s5522_s9 = inlined_call_operand.vmem [shape: f32[1,256], index: 9, kind: input, shape index: {}]   ;;  %s5523_s10 = inlined_call_operand.vmem [shape: f32[128,256], index: 10, kind: input, shape index: {}]   ;;  %s5524_s11 = inlined_call_operand.vmem [shape: f32[4], index: 11, kind: input, shape index: {}]   ;;  %s5525_s12 = inlined_call_operand.vmem [shape: f32[128,256], index: 12, kind: output, shape index: {}]  }
   0x1   :  { %s46_s23 = sshll.u32 %s5524_s11, 4  ;;  %s47_s23 = int_to_ptr.vmem [resolvable:$true] %s46_s23 }
   0x2   :  { %s3577_s24 = scalar_lea.vmem %s47_s23, 16  ;;  %p3582_p1 = scmp.lt.s32.totalorder %s47_s23, %s47_s23 }
   0x3   :  { %p3578_p0 = scmp.ne.s32.totalorder %s47_s23, %s3577_s24  ;;  %p3583_p2 = scmp.lt.s32.totalorder %s3577_s24, %s3577_s24 }
   0x5   :  { %p3584_p3 = por %p3583_p2, %p3582_p1 }
   0x7   :  { %p3585_p4 = pnand %p3584_p3, %p3578_p0 }
   0x9   :  { %3588 = shalt.err (!%p3585_p4)
}
   0xa   :  { %s3591_s25 = smov [#allocation5]  }
   0xb   :  { %49 = dma.vmem_to_smem %s47_s23, 16, %s3591_s25, [#allocation6]  }
   0xc   :  { %3589 = dma.done.wait [#allocation6], 16  }
   0xd   :  { %3590 = vsyncadd [#allocation6], 4294967280 }
   0xe   :  { %53 = sfence }
   0xf   :  { %v128_v0 = vld [vmem:[%s5513_s0] sm:$0xff]  ;;  %vm144_vm0 = vcmask 1043456   ;;  %v5528_v3 = vmov 0   ;;  %vm140_vm1 = vcmask 64512   ;;  %v5530_v7 = vmov 0.0|0.0   ;;  %s3594_s0 = smov 1  }
  0x10   :  { %v3259_v1 = vcombine.high %v128_v0, %v128_v0  ;;  %v3258_v2 = vcombine.low %v128_v0, %v128_v0  ;;  %183 = vmatprep.mubr.bf16.mxu0 %v5528_v3  ;;  %3509 = vset.pattern.permute.xlu0 %v5528_v3  ;;  %v129_v4 = vld [vmem:[%s5515_s2] sm:$0xff]  ;;  %v202_v8 = vlaneseq  ;;  %s192_s2 = sld [smem:[#allocation5]]  ;;  %s3596_s17 = smov 11   ;;  %v1129_v33 = vld [vmem:[%s5517_s4 + $0x70] sm:$0xff]  ;;  %v3515_v34 = vld [vmem:[%s5516_s3 + $0x8] sm:$0xff]   ;;  %vm304_vm4 = vcmask 7168  }
  0x11   :  { %v127_v5 = vld [vmem:[%s5514_s1] sm:$0xf]  ;;  %132 = vperm.xlu0 %3509, %v129_v4   ;;  %369 = vmatprep.mubr.bf16.mxu1 %v5528_v3  ;;  %s3595_s1 = smov 10   ;;  %v1125_v36 = vld [vmem:[%s5517_s4 + $0x50] sm:$0xff]  ;;  %v3519_v40 = vld [vmem:[%s5516_s3 + $0x18] sm:$0xff]   ;;  %vm696_vm5 = vcmask 80896  }
  0x12   :  { %3260 = vmatprep.subr.msk.bf16.mxu0 %vm144_vm0, %v3259_v1  ;;  %v146_v6 = vsel %vm144_vm0, %v3258_v2, 0  ;;  %3510 = vset.pattern.permute.xlu1 %v5528_v3  ;;  %v3689_v9 = vshrl.u32 %v202_v8, 7  ;;  %v200_v12 = vld [vmem:[%s5522_s9] sm:$0x3]  ;;  %v3517_v37 = vld [vmem:[%s5516_s3 + $0x10] sm:$0xff]   ;;  %v3523_v45 = vld [vmem:[%s5516_s3 + $0x28] sm:$0xff]  }
  0x13   :  { %166 = vmatpush1.bf16.msra.mxu0 %v146_v6  ;;  %v3513_v32 = vld [vmem:[%s5516_s3] sm:$0xff]   ;;  %v1121_v39 = vld [vmem:[%s5517_s4 + $0x30] sm:$0xff]  ;;  %v3527_v47 = vld [vmem:[%s5516_s3 + $0x38] sm:$0xff]   ;;  %vm937_vm6 = vcmask 89088   ;;  %s3599_s14 = smov 117   ;;  %s3378_s15 = sld [smem:[#allocation5 + $0x1]] }
  0x14   :  { %5570 = vst [vmem:[#allocation8_spill] sm:$0xff] %v3689_v9  ;;  %v5527_v11 = vsub.s32 0, %v3689_v9  ;;  %v5526_v15 = vsub.s32 1, %v3689_v9  ;;  %v1127_v35 = vld [vmem:[%s5517_s4 + $0x60] sm:$0xff]  ;;  %v1117_v42 = vld [vmem:[%s5517_s4 + $0x10] sm:$0xff]  ;;  %v1130_v48 = vld [vmem:[%s5517_s4 + $0x78] sm:$0xff] }
  0x15   :  { %298 = vrot.lane.b32.xlu0 %v5530_v7, %s3594_s0  ;;  %v1123_v38 = vld [vmem:[%s5517_s4 + $0x40] sm:$0xff]  ;;  %v3525_v46 = vld [vmem:[%s5516_s3 + $0x30] sm:$0xff]   ;;  %v1128_v49 = vld [vmem:[%s5517_s4 + $0x68] sm:$0xff] }
  0x16   :  { %3261 = vmatmul.mubr.msk.bf16.vlgmr.msra.gmra.mxu0 %vm140_vm1, %v127_v5  ;;  %v195_v14 = vstv %s192_s2  ;;  %v205_v17 = vrot.slane %v200_v12, %v5527_v11  ;;  %v209_v21 = vrot.slane %v200_v12, %v5526_v15  ;;  %v1119_v41 = vld [vmem:[%s5517_s4 + $0x20] sm:$0xff]  ;;  %v1126_v51 = vld [vmem:[%s5517_s4 + $0x58] sm:$0xff]  ;;  %v1124_v54 = vld [vmem:[%s5517_s4 + $0x48] sm:$0xff]  ;;  %s3382_s2 = sld [smem:[#allocation5 + $0x2]] }
  0x17   :  { %552 = vmatprep.mubr.bf16.mxu0 %v5528_v3  ;;  %v3521_v43 = vld [vmem:[%s5516_s3 + $0x20] sm:$0xff]   ;;  %v1122_v58 = vld [vmem:[%s5517_s4 + $0x38] sm:$0xff]  ;;  %v1120_v1 = vld [vmem:[%s5517_s4 + $0x28] sm:$0xff] }
  0x18   :  { %v1115_v44 = vld [vmem:[%s5517_s4] sm:$0xff]  ;;  %v1118_v5 = vld [vmem:[%s5517_s4 + $0x18] sm:$0xff]  ;;  %v3516_v8 = vld [vmem:[%s5516_s3 + $0x48] sm:$0xff]  }
  0x19   :  { %690 = vrot.lane.b32.xlu0 %v5530_v7, %s3595_s1  ;;  %v3514_v60 = vld [vmem:[%s5516_s3 + $0x40] sm:$0xff]  }
  0x8c   :  { %v133_v10 = vpop.permute.xlu0 %132 }
  0x90   :  { %v299_v50 = vpop.permute.xlu0 %298 }
  0x94   :  { %v691_v53 = vpop.permute.xlu0 %690 }
  0xd6   :  { %v185_v13 = vpop.f32.mrf.mxu0 }
  0xd7   :  { %v186_v16 = vadd.f32 %v185_v13, %v133_v10 }
  0xd8   :  { %v187_v18 = vpop.f32.mrf.mxu0 }
  0xd9   :  { %vm193_vm2 = vcmp.gt.f32.partialorder %v186_v16, 0.0  ;;  %v196_v19 = vmul.f32 %v195_v14, %v186_v16  ;;  %v188_v20 = vadd.f32 %v187_v18, %v133_v10  ;;  %v3518_v18 = vld [vmem:[%s5516_s3 + $0x50] sm:$0xff]  }
  0xda   :  { %v189_v22 = vpop.f32.mrf.mxu0 }
  0xdb   :  { %v198_v23 = vsel %vm193_vm2, %v186_v16, %v196_v19  ;;  %vm194_vm3 = vcmp.gt.f32.partialorder %v188_v20, 0.0  ;;  %v197_v24 = vmul.f32 %v195_v14, %v188_v20  ;;  %v1116_v14 = vld [vmem:[%s5517_s4 + $0x8] sm:$0xff]  ;;  %v3522_v22 = vld [vmem:[%s5516_s3 + $0x60] sm:$0xff]   ;;  %s3597_s4 = smov 127  }
  0xdc   :  { %v3700_v25 = vmul.f32 %v205_v17, %v198_v23  ;;  %v190_v26 = vpop.f32.mrf.mxu0  ;;  %v3529_v17 = vld [vmem:[%s5516_s3 + $0xc0] sm:$0xff]   ;;  %v3531_v19 = vld [vmem:[%s5516_s3 + $0xc8] sm:$0xff]   ;;  %v3535_v23 = vld [vmem:[%s5516_s3 + $0xd8] sm:$0xff]  }
  0xdd   :  { %v199_v27 = vsel %vm194_vm3, %v188_v20, %v197_v24  ;;  %v3520_v20 = vld [vmem:[%s5516_s3 + $0x58] sm:$0xff]   ;;  %v3524_v24 = vld [vmem:[%s5516_s3 + $0x68] sm:$0xff]   ;;  %v3537_v26 = vld [vmem:[%s5516_s3 + $0xe0] sm:$0xff]  }
  0xde   :  { %5571 = vst [vmem:[#allocation9_spill] sm:$0xff] %v3700_v25  ;;  %v3702_v28 = vmul.f32 %v209_v21, %v199_v27  ;;  %v218_v29 = vpack.c.bf16 %v3700_v25, %v3700_v25  ;;  %v3533_v21 = vld [vmem:[%s5516_s3 + $0xd0] sm:$0xff]  }
  0xdf   :  { %v3526_v27 = vld [vmem:[%s5516_s3 + $0x70] sm:$0xff]  }
  0xe0   :  { %5572 = vst [vmem:[#allocation10_spill] sm:$0xff] %v3702_v28  ;;  %300 = vrot.lane.b32.xlu1 %v218_v29, %s3594_s0  ;;  %v219_v30 = vpack.c.bf16 %v3702_v28, %v3702_v28  ;;  %v515_v31 = vsel %vm144_vm0, %v218_v29, 0 }
  0xe2   :  { %694 = vrot.lane.b32.xlu0 %v219_v30, %s3595_s1  ;;  %3303 = vmatprep.subr.msk.bf16.mxu0 %vm144_vm0, %v219_v30 }
  0xe3   :  { %535 = vmatpush1.bf16.msra.mxu0 %v515_v31  ;;  %v3542_v31 = vld [vmem:[%s5516_s3 + $0xf0] sm:$0xff]  }
  0xe4   :  { %302 = vrot.lane.b32.xlu1 %v219_v30, %s3594_s0 }
  0xe6   :  { %933 = vrot.lane.b32.xlu0 %v218_v29, %s3596_s17  ;;  %3304 = vmatmul.mubr.msk.bf16.vlgmr.msra.gmra.mxu0 %vm140_vm1, %v3513_v32  ;;  %v3530_v32 = vld [vmem:[%s5516_s3 + $0x80] sm:$0xff]  }
  0xe7   :  { %562 = vmatprep.mubr.bf16.mxu0 %v5528_v3 }
  0xe8   :  { %692 = vrot.lane.b32.xlu1 %v218_v29, %s3595_s1  ;;  %v3539_v29 = vld [vmem:[%s5516_s3 + $0xe8] sm:$0xff]  }
  0xea   :  { %1203 = vperm.xlu0 %3509, %v1129_v33   ;;  %v3544_v33 = vld [vmem:[%s5516_s3 + $0xf8] sm:$0xff]  }
  0xec   :  { %931 = vrot.lane.b32.xlu1 %v5530_v7, %s3596_s17 }
  0xee   :  { %1193 = vperm.xlu0 %3509, %v1127_v35   ;;  %3305 = vmatmul.mubr.msk.bf16.gmra.mxu0 %vm140_vm1, %v3515_v34  ;;  %v3532_v34 = vld [vmem:[%s5516_s3 + $0x88] sm:$0xff]   ;;  %v3534_v35 = vld [vmem:[%s5516_s3 + $0x90] sm:$0xff]  }
  0xef   :  { %572 = vmatprep.mubr.bf16.mxu0 %v5528_v3 }
  0xf0   :  { %935 = vrot.lane.b32.xlu1 %v219_v30, %s3596_s17  ;;  %v3528_v30 = vld [vmem:[%s5516_s3 + $0x78] sm:$0xff]  }
  0xf2   :  { %1183 = vperm.xlu0 %3509, %v1125_v36  }
  0xf4   :  { %1208 = vperm.xlu1 %3510, %v1130_v48  }
  0xf6   :  { %1173 = vperm.xlu0 %3509, %v1123_v38   ;;  %3306 = vmatmul.mubr.msk.bf16.gmra.mxu0 %vm140_vm1, %v3517_v37  ;;  %v3536_v38 = vld [vmem:[%s5516_s3 + $0x98] sm:$0xff]  }
  0xf7   :  { %582 = vmatprep.mubr.bf16.mxu0 %v5528_v3 }
  0xf8   :  { %1198 = vperm.xlu1 %3510, %v1128_v49  }
  0xfa   :  { %1163 = vperm.xlu0 %3509, %v1121_v39  }
  0xfc   :  { %1188 = vperm.xlu1 %3510, %v1126_v51  }
  0xfe   :  { %1153 = vperm.xlu0 %3509, %v1119_v41   ;;  %3307 = vmatmul.mubr.msk.bf16.gmra.mxu0 %vm140_vm1, %v3519_v40  ;;  %v3538_v41 = vld [vmem:[%s5516_s3 + $0xa0] sm:$0xff]  }
  0xff   :  { %592 = vmatprep.mubr.bf16.mxu0 %v5528_v3 }
 0x100   :  { %1178 = vperm.xlu1 %3510, %v1124_v54  }
 0x102   :  { %1143 = vperm.xlu0 %3509, %v1117_v42  }
 0x104   :  { %1168 = vperm.xlu1 %3510, %v1122_v58  }
 0x106   :  { %1133 = vperm.xlu0 %3509, %v1115_v44   ;;  %3308 = vmatmul.mubr.msk.bf16.gmra.mxu0 %vm140_vm1, %v3521_v43  ;;  %v3540_v44 = vld [vmem:[%s5516_s3 + $0xa8] sm:$0xff]  }
 0x107   :  { %602 = vmatprep.mubr.bf16.mxu0 %v5528_v3 }
 0x108   :  { %1158 = vperm.xlu1 %3510, %v1120_v1  }
 0x10a   :  { %1624 = vrot.lane.b32.xlu0 %v5530_v7, %s3597_s4 }
 0x10c   :  { %1148 = vperm.xlu1 %3510, %v1118_v5  }
 0x10e   :  { %3309 = vmatmul.mubr.msk.bf16.gmra.mxu0 %vm140_vm1, %v3523_v45  ;;  %1612 = vrot.lane.b32.xlu0 %v5530_v7, %s3597_s4 }
 0x10f   :  { %612 = vmatprep.mubr.bf16.mxu0 %v5528_v3 }
 0x110   :  { %1138 = vperm.xlu1 %3510, %v1116_v14  }
 0x112   :  { %1600 = vrot.lane.b32.xlu0 %v5530_v7, %s3597_s4 }
 0x114   :  { %1630 = vrot.lane.b32.xlu1 %v5530_v7, %s3597_s4 }
 0x116   :  { %3310 = vmatmul.mubr.msk.bf16.gmra.mxu0 %vm140_vm1, %v3525_v46  ;;  %1588 = vrot.lane.b32.xlu0 %v5530_v7, %s3597_s4 }
 0x117   :  { %622 = vmatprep.mubr.bf16.mxu0 %v5528_v3 }
 0x118   :  { %1618 = vrot.lane.b32.xlu1 %v5530_v7, %s3597_s4 }
 0x11a   :  { %1921 = vrot.lane.b32.xlu0 %v5530_v7, %s3599_s14 }
 0x11c   :  { %1606 = vrot.lane.b32.xlu1 %v5530_v7, %s3597_s4 }
 0x11e   :  { %3311 = vmatmul.mubr.msk.bf16.gmra.mxu0 %vm140_vm1, %v3527_v47  ;;  %v3541_v47 = vld [vmem:[%s5516_s3 + $0xb0] sm:$0xff]   ;;  %1915 = vrot.lane.b32.xlu0 %v5530_v7, %s3599_s14 }
 0x11f   :  { %1002 = vmatprep.mubr.bf16.mxu0 %v5528_v3 }
 0x120   :  { %1594 = vrot.lane.b32.xlu1 %v5530_v7, %s3597_s4 }
 0x122   :  { %1909 = vrot.lane.b32.xlu0 %v5530_v7, %s3599_s14 }
 0x152   :  { %v301_v52 = vpop.permute.xlu1 %300 }
 0x153   :  { %v305_v55 = vsel %vm304_vm4, %v299_v50, %v301_v52  ;;  %v3543_v50 = vld [vmem:[%s5516_s3 + $0xb8] sm:$0xff]   ;;  %s3598_s3 = smov 118  }
 0x154   :  { %v332_v59 = vsel %vm144_vm0, %v305_v55, 0  ;;  %v695_v61 = vpop.permute.xlu0 %694  ;;  %1795 = vrot.lane.b32.xlu1 %v5530_v7, %s3598_s3 }
 0x156   :  { %v303_v56 = vpop.permute.xlu1 %302 }
 0x157   :  { %v306_v57 = vsel %vm304_vm4, %v301_v52, %v303_v56 }
 0x158   :  { %3286 = vmatprep.subr.msk.bf16.mxu1 %vm144_vm0, %v306_v57  ;;  %v934_v6 = vpop.permute.xlu0 %933  ;;  %1789 = vrot.lane.b32.xlu1 %v5530_v7, %s3598_s3 }
 0x159   :  { %352 = vmatpush1.bf16.msra.mxu1 %v332_v59 }
 0x15a   :  { %v693_v62 = vpop.permute.xlu1 %692 }
 0x15b   :  { %v697_v63 = vsel %vm696_vm5, %v691_v53, %v693_v62  ;;  %v698_v0 = vsel %vm696_vm5, %v693_v62, %v695_v61 }
 0x15c   :  { %3287 = vmatmul.mubr.msk.bf16.vlgmr.msra.gmra.mxu1 %vm140_vm1, %v3514_v60  ;;  %3336 = vmatprep.subr.msk.bf16.mxu1 %vm144_vm0, %v698_v0  ;;  %v724_v2 = vsel %vm144_vm0, %v697_v63, 0 }
 0x15d   :  { %744 = vmatpush1.bf16.msra.mxu1 %v724_v2  ;;  %379 = vmatprep.mubr.bf16.mxu1 %v5528_v3 }
 0x15e   :  { %v932_v4 = vpop.permute.xlu1 %931  ;;  %1783 = vrot.lane.b32.xlu1 %v5530_v7, %s3598_s3 }
 0x15f   :  { %v938_v10 = vsel %vm937_vm6, %v932_v4, %v934_v6 }
 0x160   :  { %v965_v16 = vsel %vm144_vm0, %v938_v10, 0 }
 0x162   :  { %v936_v12 = vpop.permute.xlu1 %935 }
 0x163   :  { %v939_v13 = vsel %vm937_vm6, %v934_v6, %v936_v12 }
 0x164   :  { %3288 = vmatmul.mubr.msk.bf16.gmra.mxu1 %vm140_vm1, %v3516_v8  ;;  %3369 = vmatprep.subr.msk.bf16.mxu0 %vm144_vm0, %v939_v13 }
 0x165   :  { %985 = vmatpush1.bf16.msra.mxu0 %v965_v16  ;;  %389 = vmatprep.mubr.bf16.mxu1 %v5528_v3 }
 0x168   :  { %3370 = vmatmul.mubr.msk.bf16.vlgmr.msra.gmra.mxu0 %vm140_vm1, %v3529_v17 }
 0x169   :  { %1012 = vmatprep.mubr.bf16.mxu0 %v5528_v3 }
 0x16c   :  { %3289 = vmatmul.mubr.msk.bf16.gmra.mxu1 %vm140_vm1, %v3518_v18 }
 0x16d   :  { %399 = vmatprep.mubr.bf16.mxu1 %v5528_v3 }
 0x170   :  { %3371 = vmatmul.mubr.msk.bf16.gmra.mxu0 %vm140_vm1, %v3531_v19 }
 0x171   :  { %1022 = vmatprep.mubr.bf16.mxu0 %v5528_v3 }
 0x174   :  { %3290 = vmatmul.mubr.msk.bf16.gmra.mxu1 %vm140_vm1, %v3520_v20 }
 0x175   :  { %409 = vmatprep.mubr.bf16.mxu1 %v5528_v3 }
 0x178   :  { %3372 = vmatmul.mubr.msk.bf16.gmra.mxu0 %vm140_vm1, %v3533_v21 }
 0x179   :  { %1032 = vmatprep.mubr.bf16.mxu0 %v5528_v3 }
 0x17c   :  { %3291 = vmatmul.mubr.msk.bf16.gmra.mxu1 %vm140_vm1, %v3522_v22 }
 0x17d   :  { %419 = vmatprep.mubr.bf16.mxu1 %v5528_v3 }
 0x180   :  { %3373 = vmatmul.mubr.msk.bf16.gmra.mxu0 %vm140_vm1, %v3535_v23 }
 0x181   :  { %1042 = vmatprep.mubr.bf16.mxu0 %v5528_v3 }
 0x184   :  { %3292 = vmatmul.mubr.msk.bf16.gmra.mxu1 %vm140_vm1, %v3524_v24 }
 0x185   :  { %429 = vmatprep.mubr.bf16.mxu1 %v5528_v3 }
 0x188   :  { %3374 = vmatmul.mubr.msk.bf16.gmra.mxu0 %vm140_vm1, %v3537_v26 }
 0x189   :  { %1052 = vmatprep.mubr.bf16.mxu0 %v5528_v3 }
 0x18c   :  { %3293 = vmatmul.mubr.msk.bf16.gmra.mxu1 %vm140_vm1, %v3526_v27 }
 0x18d   :  { %439 = vmatprep.mubr.bf16.mxu1 %v5528_v3 }
 0x190   :  { %3375 = vmatmul.mubr.msk.bf16.gmra.mxu0 %vm140_vm1, %v3539_v29 }
 0x191   :  { %1062 = vmatprep.mubr.bf16.mxu0 %v5528_v3 }
 0x194   :  { %3294 = vmatmul.mubr.msk.bf16.gmra.mxu1 %vm140_vm1, %v3528_v30 }
 0x195   :  { %761 = vmatprep.mubr.bf16.mxu1 %v5528_v3 }
 0x198   :  { %3376 = vmatmul.mubr.msk.bf16.gmra.mxu0 %vm140_vm1, %v3542_v31 }
 0x199   :  { %1072 = vmatprep.mubr.bf16.mxu0 %v5528_v3 }
 0x19c   :  { %3337 = vmatmul.mubr.msk.bf16.vlgmr.msra.gmra.mxu1 %vm140_vm1, %v3530_v32 }
 0x19d   :  { %771 = vmatprep.mubr.bf16.mxu1 %v5528_v3 }
 0x1a0   :  { %3377 = vmatmul.mubr.msk.bf16.gmra.mxu0 %vm140_vm1, %v3544_v33 }
 0x1a1   :  { %1738 = vmatprep.mubr.bf16.mxu0 %v5528_v3 }
 0x1a4   :  { %3338 = vmatmul.mubr.msk.bf16.gmra.mxu1 %vm140_vm1, %v3532_v34 }
 0x1a5   :  { %781 = vmatprep.mubr.bf16.mxu1 %v5528_v3 }
 0x1a6   :  { %v3911_v36 = vpop.f32.mrf.mxu0 }
 0x1a8   :  { %v3914_v37 = vpop.f32.mrf.mxu0 }
 0x1aa   :  { %v3920_v39 = vpop.f32.mrf.mxu0 }
 0x1ac   :  { %3339 = vmatmul.mubr.msk.bf16.gmra.mxu1 %vm140_vm1, %v3534_v35  ;;  %v3923_v40 = vpop.f32.mrf.mxu0 }
 0x1ad   :  { %791 = vmatprep.mubr.bf16.mxu1 %v5528_v3 }
 0x1ae   :  { %v3929_v42 = vpop.f32.mrf.mxu0 }
 0x1b0   :  { %v3932_v43 = vpop.f32.mrf.mxu0 }
 0x1b2   :  { %v3938_v45 = vpop.f32.mrf.mxu0 }
 0x1b4   :  { %3340 = vmatmul.mubr.msk.bf16.gmra.mxu1 %vm140_vm1, %v3536_v38  ;;  %v3941_v46 = vpop.f32.mrf.mxu0 }
 0x1b5   :  { %801 = vmatprep.mubr.bf16.mxu1 %v5528_v3 }
 0x1b6   :  { %v574_v48 = vpop.f32.mrf.mxu0 }
 0x1b8   :  { %v3948_v49 = vpop.f32.mrf.mxu0 }
 0x1ba   :  { %v3954_v51 = vpop.f32.mrf.mxu0 }
 0x1bc   :  { %3341 = vmatmul.mubr.msk.bf16.gmra.mxu1 %vm140_vm1, %v3538_v41  ;;  %v3961_v52 = vpop.f32.mrf.mxu0  ;;  %v4060_v41 = vpop.permute.xlu0 %1203 }
 0x1bd   :  { %811 = vmatprep.mubr.bf16.mxu1 %v5528_v3  ;;  %5584 = vst [vmem:[#allocation22_spill] sm:$0xff] %v4060_v41 }
 0x1be   :  { %v584_v53 = vpop.f32.mrf.mxu0 }
 0x1c0   :  { %v3972_v54 = vpop.f32.mrf.mxu0  ;;  %v4072_v15 = vpop.permute.xlu0 %1193 }
 0x1c1   :  { %5586 = vst [vmem:[#allocation24_spill] sm:$0xff] %v4072_v15 }
 0x1c2   :  { %v3978_v55 = vpop.f32.mrf.mxu0 }
 0x1c4   :  { %3342 = vmatmul.mubr.msk.bf16.gmra.mxu1 %vm140_vm1, %v3540_v44  ;;  %v3982_v56 = vpop.f32.mrf.mxu0  ;;  %v4086_v25 = vpop.permute.xlu0 %1183 }
 0x1c5   :  { %821 = vmatprep.mubr.bf16.mxu1 %v5528_v3  ;;  %5588 = vst [vmem:[#allocation26_spill] sm:$0xff] %v4086_v25 }
 0x1c6   :  { %v3986_v57 = vpop.f32.mrf.mxu0 }
 0x1c8   :  { %v3992_v58 = vpop.f32.mrf.mxu0  ;;  %v4098_v15 = vpop.permute.xlu0 %1173 }
 0x1c9   :  { %5592 = vst [vmem:[#allocation30_spill] sm:$0xff] %v4098_v15 }
 0x1ca   :  { %v3996_v59 = vpop.f32.mrf.mxu0 }
 0x1cc   :  { %3343 = vmatmul.mubr.msk.bf16.gmra.mxu1 %vm140_vm1, %v3541_v47  ;;  %v4000_v60 = vpop.f32.mrf.mxu0 }
 0x1cd   :  { %831 = vmatprep.mubr.bf16.mxu1 %v5528_v3 }
 0x1ce   :  { %v4002_v61 = vpop.f32.mrf.mxu0 }
 0x1cf   :  { %5573 = vst [vmem:[#allocation11_spill] sm:$0xff] %v4002_v61 }
 0x1d0   :  { %v4004_v62 = vpop.f32.mrf.mxu0 }
 0x1d1   :  { %5574 = vst [vmem:[#allocation12_spill] sm:$0xff] %v4004_v62 }
 0x1d2   :  { %v4006_v63 = vpop.f32.mrf.mxu0 }
 0x1d3   :  { %5575 = vst [vmem:[#allocation13_spill] sm:$0xff] %v4006_v63 }
 0x1d4   :  { %3344 = vmatmul.mubr.msk.bf16.gmra.mxu1 %vm140_vm1, %v3543_v50  ;;  %v4008_v0 = vpop.f32.mrf.mxu0 }
 0x1d5   :  { %1697 = vmatprep.mubr.bf16.mxu1 %v5528_v3  ;;  %5576 = vst [vmem:[#allocation14_spill] sm:$0xff] %v4008_v0  ;;  %v4112_v0 = vpop.permute.xlu0 %1163 }
 0x1d6   :  { %v4010_v1 = vpop.f32.mrf.mxu0  ;;  %5598 = vst [vmem:[#allocation36_spill] sm:$0xff] %v4112_v0 }
 0x1d7   :  { %5577 = vst [vmem:[#allocation15_spill] sm:$0xff] %v4010_v1 }
 0x1d8   :  { %v4012_v2 = vpop.f32.mrf.mxu0 }
 0x1d9   :  { %5578 = vst [vmem:[#allocation16_spill] sm:$0xff] %v4012_v2  ;;  %v4124_v15 = vpop.permute.xlu0 %1153 }
 0x1da   :  { %v4014_v4 = vpop.f32.mrf.mxu0 }
 0x1db   :  { %5579 = vst [vmem:[#allocation17_spill] sm:$0xff] %v4014_v4 }
 0x1dc   :  { %v4016_v5 = vpop.f32.mrf.mxu0 }
 0x1dd   :  { %5580 = vst [vmem:[#allocation18_spill] sm:$0xff] %v4016_v5 }
 0x1de   :  { %v4018_v6 = vpop.f32.mrf.mxu0 }
 0x1df   :  { %5581 = vst [vmem:[#allocation19_spill] sm:$0xff] %v4018_v6 }
 0x1e0   :  { %v626_v10 = vpop.f32.mrf.mxu0 }
 0x1e2   :  { %v628_v14 = vpop.f32.mrf.mxu0 }
 0x1e4   :  { %v4030_v18 = vpop.f32.mrf.mxu0 }
 0x1e5   :  { %5582 = vst [vmem:[#allocation20_spill] sm:$0xff] %v4030_v18 }
 0x21c   :  { %v4020_v8 = vpop.f32.mrf.mxu1 }
 0x21e   :  { %v4022_v12 = vpop.f32.mrf.mxu1 }
 0x220   :  { %v4024_v13 = vpop.f32.mrf.mxu1 }
 0x222   :  { %v4026_v16 = vpop.f32.mrf.mxu1 }
 0x224   :  { %v4028_v17 = vpop.f32.mrf.mxu1 }
 0x226   :  { %v4032_v19 = vpop.f32.mrf.mxu1 }
 0x228   :  { %v4034_v20 = vpop.f32.mrf.mxu1  ;;  %v4036_v21 = vpop.f32.mrf.mxu0 }
 0x22a   :  { %v4038_v22 = vpop.f32.mrf.mxu1  ;;  %v4040_v23 = vpop.f32.mrf.mxu0 }
 0x22c   :  { %v391_v24 = vpop.f32.mrf.mxu1  ;;  %v4042_v26 = vpop.f32.mrf.mxu0 }
 0x22d   :  { %v4044_v27 = vadd.f32 %v574_v48, %v391_v24  ;;  %v4070_v24 = vpop.permute.xlu1 %1208 }
 0x22e   :  { %v4046_v29 = vpop.f32.mrf.mxu1  ;;  %v4048_v30 = vpop.f32.mrf.mxu0  ;;  %5585 = vst [vmem:[#allocation23_spill] sm:$0xff] %v4070_v24 }
 0x230   :  { %v4050_v31 = vpop.f32.mrf.mxu1  ;;  %v4052_v32 = vpop.f32.mrf.mxu0 }
 0x231   :  { %v4082_v7 = vpop.permute.xlu1 %1198 }
 0x232   :  { %v4054_v33 = vpop.f32.mrf.mxu1  ;;  %v4058_v38 = vpop.f32.mrf.mxu0  ;;  %5587 = vst [vmem:[#allocation25_spill] sm:$0xff] %v4082_v7 }
 0x234   :  { %v401_v34 = vpop.f32.mrf.mxu1  ;;  %v4066_v48 = vpop.f32.mrf.mxu0 }
 0x235   :  { %v4056_v35 = vadd.f32 %v584_v53, %v401_v34  ;;  %v4096_v6 = vpop.permute.xlu1 %1188 }
 0x236   :  { %v4062_v44 = vpop.f32.mrf.mxu1  ;;  %v4076_v53 = vpop.f32.mrf.mxu0  ;;  %5591 = vst [vmem:[#allocation29_spill] sm:$0xff] %v4096_v6 }
 0x237   :  { %5583 = vst [vmem:[#allocation21_spill] sm:$0xff] %v4056_v35  ;;  %v4153_v35 = vstv %s3378_s15 }
 0x238   :  { %v4064_v47 = vpop.f32.mrf.mxu1  ;;  %v4084_v28 = vpop.f32.mrf.mxu0 }
 0x239   :  { %v4108_v1 = vpop.permute.xlu1 %1178 }
 0x23a   :  { %v4068_v50 = vpop.f32.mrf.mxu1  ;;  %v4092_v24 = vpop.f32.mrf.mxu0  ;;  %5596 = vst [vmem:[#allocation34_spill] sm:$0xff] %v4108_v1 }
 0x23c   :  { %v4074_v11 = vpop.f32.mrf.mxu1  ;;  %v4102_v4 = vpop.f32.mrf.mxu0 }
 0x23e   :  { %v4078_v34 = vpop.f32.mrf.mxu1  ;;  %v4110_v25 = vpop.f32.mrf.mxu0 }
 0x23f   :  { %5597 = vst [vmem:[#allocation35_spill] sm:$0xff] %v4110_v25 }
 0x240   :  { %v4080_v3 = vpop.f32.mrf.mxu1  ;;  %v4118_v6 = vpop.f32.mrf.mxu0 }
 0x241   :  { %5601 = vst [vmem:[#allocation39_spill] sm:$0xff] %v4118_v6 }
 0x242   :  { %v4088_v9 = vpop.f32.mrf.mxu1 }
 0x244   :  { %v4090_v41 = vpop.f32.mrf.mxu1 }
 0x245   :  { %5589 = vst [vmem:[#allocation27_spill] sm:$0xff] %v4090_v41 }
 0x246   :  { %v4094_v18 = vpop.f32.mrf.mxu1 }
 0x247   :  { %5590 = vst [vmem:[#allocation28_spill] sm:$0xff] %v4094_v18 }
 0x248   :  { %v4100_v5 = vpop.f32.mrf.mxu1 }
 0x249   :  { %5593 = vst [vmem:[#allocation31_spill] sm:$0xff] %v4100_v5  ;;  %v4122_v5 = vpop.permute.xlu1 %1168 }
 0x24a   :  { %v4104_v7 = vpop.f32.mrf.mxu1  ;;  %5603 = vst [vmem:[#allocation41_spill] sm:$0xff] %v4122_v5 }
 0x24b   :  { %5594 = vst [vmem:[#allocation32_spill] sm:$0xff] %v4104_v7 }
 0x24c   :  { %v4106_v2 = vpop.f32.mrf.mxu1 }
 0x24d   :  { %5595 = vst [vmem:[#allocation33_spill] sm:$0xff] %v4106_v2  ;;  %v4128_v2 = vpop.f32.mrf.mxu0 }
 0x24e   :  { %v4114_v63 = vpop.f32.mrf.mxu1  ;;  %5605 = vst [vmem:[#allocation43_spill] sm:$0xff] %v4128_v2 }
 0x24f   :  { %5599 = vst [vmem:[#allocation37_spill] sm:$0xff] %v4114_v63  ;;  %v4136_v0 = vpop.f32.mrf.mxu0 }
 0x250   :  { %v4116_v62 = vpop.f32.mrf.mxu1  ;;  %5608 = vst [vmem:[#allocation46_spill] sm:$0xff] %v4136_v0 }
 0x251   :  { %5600 = vst [vmem:[#allocation38_spill] sm:$0xff] %v4116_v62  ;;  %v4134_v62 = vpop.permute.xlu1 %1158 }
 0x252   :  { %v4120_v18 = vpop.f32.mrf.mxu1 }
 0x253   :  { %5602 = vst [vmem:[#allocation40_spill] sm:$0xff] %v4120_v18  ;;  %v4138_v18 = vpop.permute.xlu0 %1143 }
 0x254   :  { %v4126_v7 = vpop.f32.mrf.mxu1 }
 0x255   :  { %5604 = vst [vmem:[#allocation42_spill] sm:$0xff] %v4126_v7  ;;  %v555_v7 = vadd.f32 %v3911_v36, %v4020_v8  ;;  %v4151_v2 = vpop.permute.xlu1 %1148 }
 0x256   :  { %v443_v1 = vpop.f32.mrf.mxu1 }
 0x257   :  { %v4130_v61 = vadd.f32 %v626_v10, %v443_v1  ;;  %v557_v1 = vadd.f32 %v3914_v37, %v4022_v12  ;;  %v567_v12 = vadd.f32 %v3932_v43, %v4032_v19  ;;  %v4174_v43 = vadd.f32 %v3954_v51, %v4050_v31  ;;  %v1341_v31 = vld [vmem:[%s5523_s10] sm:$0xff] }
 0x258   :  { %v445_v41 = vpop.f32.mrf.mxu1  ;;  %v4192_v51 = vadd.f32 %v3982_v56, %v4068_v50 }
 0x259   :  { %5606 = vst [vmem:[#allocation44_spill] sm:$0xff] %v4130_v61  ;;  %v4132_v63 = vadd.f32 %v628_v14, %v445_v41  ;;  %v4146_v61 = vpop.f32.mrf.mxu0  ;;  %v559_v41 = vadd.f32 %v3920_v39, %v4024_v13  ;;  %v565_v39 = vadd.f32 %v3929_v42, %v4028_v17 }
 0x25a   :  { %v4140_v5 = vpop.f32.mrf.mxu1 }
 0x25b   :  { %5607 = vst [vmem:[#allocation45_spill] sm:$0xff] %v4132_v63  ;;  %5609 = vst [vmem:[#allocation47_spill] sm:$0xff] %v4140_v5  ;;  %v1134_v5 = vpop.permute.xlu0 %1133 }
 0x25c   :  { %v763_v6 = vpop.f32.mrf.mxu1 }
 0x25d   :  { %v842_v10 = vadd.f32 %v763_v6, %v555_v7  ;;  %v4156_v7 = vpop.f32.mrf.mxu0  ;;  %v561_v6 = vadd.f32 %v3923_v40, %v4026_v16  ;;  %v577_v40 = vadd.f32 %v3948_v49, %v4046_v29  ;;  %v4188_v49 = vadd.f32 %v3978_v55, %v4064_v47  ;;  %v1343_v55 = vld [vmem:[%s5523_s10 + $0x10] sm:$0xff] }
 0x25e   :  { %v765_v14 = vpop.f32.mrf.mxu1 }
 0x25f   :  { %v1083_v63 = vadd.f32 %v4036_v21, %v842_v10  ;;  %v843_v0 = vadd.f32 %v765_v14, %v557_v1  ;;  %v569_v21 = vadd.f32 %v3938_v45, %v4034_v20  ;;  %v4178_v45 = vadd.f32 %v3961_v52, %v4054_v33  ;;  %v4184_v17 = vpop.f32.mrf.mxu0  ;;  %v1344_v14 = vld [vmem:[%s5523_s10 + $0x18] sm:$0xff] }
 0x260   :  { %v767_v36 = vpop.f32.mrf.mxu1 }
 0x261   :  { %v1211_v8 = vadd.f32 %v1134_v5, %v1083_v63  ;;  %v1084_v25 = vadd.f32 %v4040_v23, %v843_v0  ;;  %v844_v37 = vadd.f32 %v767_v36, %v559_v41  ;;  %v571_v23 = vadd.f32 %v3941_v46, %v4038_v22  ;;  %v1139_v46 = vpop.permute.xlu1 %1138  ;;  %v4210_v10 = vpop.f32.mrf.mxu0 }
 0x262   :  { %v769_v13 = vpop.f32.mrf.mxu1 }
 0x263   :  { %v1277_v63 = vmul.f32 %v4153_v35, %v1211_v8  ;;  %v1212_v1 = vadd.f32 %v1134_v5, %v1084_v25  ;;  %v1085_v0 = vadd.f32 %v4042_v26, %v844_v37  ;;  %vm1244_vm7 = vcmp.gt.f32.partialorder %v1211_v8, 0.0 }
 0x264   :  { %v845_v42 = vadd.f32 %v769_v13, %v561_v6  ;;  %v773_v16 = vpop.f32.mrf.mxu1  ;;  %v4182_v25 = vadd.f32 %v3972_v54, %v4062_v44  ;;  %v4206_v44 = vadd.f32 %v3986_v57, %v4074_v11 }
 0x265   :  { %v846_v5 = vadd.f32 %v773_v16, %v565_v39  ;;  %v1213_v52 = vadd.f32 %v1139_v46, %v1085_v0  ;;  %v1309_v22 = vsel %vm1244_vm7, %v1211_v8, %v1277_v63  ;;  %v1278_v54 = vmul.f32 %v4153_v35, %v1212_v1  ;;  %v1342_v63 = vld [vmem:[%s5523_s10 + $0x8] sm:$0xff] }
 0x266   :  { %v1086_v19 = vadd.f32 %v4048_v30, %v845_v42  ;;  %v775_v20 = vpop.f32.mrf.mxu1  ;;  %vm1245_vm8 = vcmp.gt.f32.partialorder %v1212_v1, 0.0  ;;  %v4216_v37 = vmul.f32 %v1341_v31, %v1309_v22  ;;  %v4229_v0 = vadd.f32 %v3992_v58, %v4078_v34 }
 0x267   :  { %v1087_v26 = vadd.f32 %v4052_v32, %v846_v5  ;;  %v847_v29 = vadd.f32 %v775_v20, %v567_v12  ;;  %vm1246_vm9 = vcmp.gt.f32.partialorder %v1213_v52, 0.0  ;;  %v1279_v30 = vmul.f32 %v4153_v35, %v1213_v52 }
 0x268   :  { %v1214_v56 = vadd.f32 %v1139_v46, %v1086_v19  ;;  %v777_v33 = vpop.f32.mrf.mxu1  ;;  %v1310_v11 = vsel %vm1245_vm8, %v1212_v1, %v1278_v54  ;;  %v4245_v58 = vadd.f32 %v3996_v59, %v4080_v3  ;;  %v1347_v3 = vld [vmem:[%s5523_s10 + $0x30] sm:$0xff] }
 0x269   :  { %v1215_v32 = vadd.f32 %v4138_v18, %v1087_v26  ;;  %v1088_v47 = vadd.f32 %v4058_v38, %v847_v29  ;;  %v848_v50 = vadd.f32 %v777_v33, %v569_v21  ;;  %v1311_v36 = vsel %vm1246_vm9, %v1213_v52, %v1279_v30 }
 0x26a   :  { %vm1247_vm10 = vcmp.gt.f32.partialorder %v1214_v56, 0.0  ;;  %v1280_v41 = vmul.f32 %v4153_v35, %v1214_v56  ;;  %v779_v8 = vpop.f32.mrf.mxu1  ;;  %v4220_v6 = vmul.f32 %v1343_v55, %v1311_v36  ;;  %v4248_v52 = vmul.f32 %v1342_v63, %v1310_v11 }
 0x26b   :  { %v1281_v57 = vmul.f32 %v4153_v35, %v1215_v32  ;;  %v1216_v38 = vadd.f32 %v4138_v18, %v1088_v47  ;;  %vm1248_vm11 = vcmp.gt.f32.partialorder %v1215_v32, 0.0  ;;  %v1089_v12 = vadd.f32 %v4066_v48, %v848_v50  ;;  %v4234_v18 = vpop.f32.mrf.mxu0  ;;  %v1348_v47 = vld [vmem:[%s5523_s10 + $0x38] sm:$0xff] }
 0x26c   :  { %v1312_v39 = vsel %vm1247_vm10, %v1214_v56, %v1280_v41  ;;  %v849_v13 = vadd.f32 %v779_v8, %v571_v23  ;;  %v783_v21 = vpop.f32.mrf.mxu1  ;;  %v4241_v46 = vpack.c.bf16 %v4220_v6, %v4216_v37 }
 0x26d   :  { %v4231_v1 = vmul.f32 %v1344_v14, %v1312_v39  ;;  %vm1249_vm12 = vcmp.gt.f32.partialorder %v1216_v38, 0.0  ;;  %v1282_v42 = vmul.f32 %v4153_v35, %v1216_v38  ;;  %v1217_v16 = vadd.f32 %v4151_v2, %v1089_v12  ;;  %v5611_v39 = vld [vmem:[#allocation21_spill] sm:$0xff] }
 0x26e   :  { %v1090_v48 = vadd.f32 %v4076_v53, %v849_v13  ;;  %v850_v23 = vadd.f32 %v783_v21, %v4044_v27  ;;  %v785_v5 = vpop.f32.mrf.mxu1  ;;  %v1313_v34 = vsel %vm1248_vm11, %v1215_v32, %v1281_v57  ;;  %1584 = vrot.lane.b32.xlu1 %v4241_v46, %s3597_s4 }
 0x26f   :  { %v851_v19 = vadd.f32 %v785_v5, %v577_v40  ;;  %vm1250_vm13 = vcmp.gt.f32.partialorder %v1217_v16, 0.0  ;;  %v1283_v20 = vmul.f32 %v4153_v35, %v1217_v16  ;;  %v1314_v59 = vsel %vm1249_vm12, %v1216_v38, %v1282_v42 }
 0x270   :  { %v1218_v53 = vadd.f32 %v4151_v2, %v1090_v48  ;;  %v1091_v27 = vadd.f32 %v4084_v28, %v850_v23  ;;  %v787_v22 = vpop.f32.mrf.mxu1  ;;  %v4263_v26 = vpack.c.bf16 %v4231_v1, %v4248_v52  ;;  %v1345_v28 = vld [vmem:[%s5523_s10 + $0x20] sm:$0xff]  ;;  %v4268_v2 = vpop.f32.mrf.mxu0  ;;  %v1351_v48 = vld [vmem:[%s5523_s10 + $0x50] sm:$0xff]  ;;  %v5612_v23 = vld [vmem:[#allocation39_spill] sm:$0xff] }
 0x271   :  { %v1092_v40 = vadd.f32 %v4092_v24, %v851_v19  ;;  %v852_v54 = vadd.f32 %v787_v22, %v4174_v43  ;;  %v1315_v29 = vsel %vm1250_vm13, %v1217_v16, %v1283_v20  ;;  %v1346_v24 = vld [vmem:[%s5523_s10 + $0x28] sm:$0xff]  ;;  %v4286_v36 = vmul.f32 %v1345_v28, %v1313_v34  ;;  %v1349_v16 = vld [vmem:[%s5523_s10 + $0x40] sm:$0xff] }
 0x272   :  { %vm1251_vm14 = vcmp.gt.f32.partialorder %v1218_v53, 0.0  ;;  %v1284_v31 = vmul.f32 %v4153_v35, %v1218_v53  ;;  %v1219_v55 = vadd.f32 %v4124_v15, %v1091_v27  ;;  %v789_v56 = vpop.f32.mrf.mxu1  ;;  %v4278_v32 = vmul.f32 %v1347_v3, %v1315_v29  ;;  %1586 = vrot.lane.b32.xlu1 %v4263_v26, %s3597_s4  ;;  %v4296_v57 = vpop.f32.mrf.mxu0  ;;  %v5613_v3 = vld [vmem:[#allocation36_spill] sm:$0xff] }
 0x273   :  { %v1220_v43 = vadd.f32 %v4124_v15, %v1092_v40  ;;  %v1093_v30 = vadd.f32 %v4102_v4, %v852_v54  ;;  %v853_v33 = vadd.f32 %v789_v56, %v4178_v45  ;;  %v4290_v15 = vadd.f32 %v4000_v60, %v4088_v9  ;;  %v5610_v45 = vld [vmem:[#allocation35_spill] sm:$0xff] }
 0x274   :  { %v1316_v50 = vsel %vm1251_vm14, %v1218_v53, %v1284_v31  ;;  %vm1252_vm15 = vcmp.gt.f32.partialorder %v1219_v55, 0.0  ;;  %v1285_v14 = vmul.f32 %v4153_v35, %v1219_v55  ;;  %v793_v41 = vpop.f32.mrf.mxu1  ;;  %v4294_v11 = vmul.f32 %v1346_v24, %v1314_v59  ;;  %v4324_v22 = vpop.f32.mrf.mxu0  ;;  %v5614_v40 = vld [vmem:[#allocation43_spill] sm:$0xff]  ;;  %v5617_v24 = vld [vmem:[#allocation46_spill] sm:$0xff] }
 0x275   :  { %v1221_v4 = vadd.f32 %v4134_v62, %v1093_v30  ;;  %v1094_v8 = vadd.f32 %v5610_v45, %v853_v33  ;;  %v1286_v38 = vmul.f32 %v4153_v35, %v1220_v43  ;;  %v854_v12 = vadd.f32 %v793_v41, %v5611_v39  ;;  %v1352_v31 = vld [vmem:[%s5523_s10 + $0x58] sm:$0xff]  ;;  %v1350_v33 = vld [vmem:[%s5523_s10 + $0x48] sm:$0xff] }
 0x276   :  { %v795_v13 = vpop.f32.mrf.mxu1  ;;  %v4302_v21 = vpack.c.bf16 %v4278_v32, %v4286_v36  ;;  %v4304_v63 = vmul.f32 %v1348_v47, %v1316_v50  ;;  %v1317_v9 = vsel %vm1252_vm15, %v1219_v55, %v1285_v14  ;;  %vm1253_vm3 = vcmp.gt.f32.partialorder %v1220_v43, 0.0  ;;  %v5618_v41 = vld [vmem:[#allocation41_spill] sm:$0xff] }
 0x277   :  { %vm1254_vm2 = vcmp.gt.f32.partialorder %v1221_v4, 0.0  ;;  %v1287_v60 = vmul.f32 %v4153_v35, %v1221_v4  ;;  %v1222_v42 = vadd.f32 %v4134_v62, %v1094_v8  ;;  %v1095_v5 = vadd.f32 %v5612_v23, %v854_v12  ;;  %v5621_v23 = vld [vmem:[#allocation27_spill] sm:$0xff] }
 0x278   :  { %v855_v34 = vadd.f32 %v795_v13, %v4182_v25  ;;  %1590 = vrot.lane.b32.xlu0 %v4302_v21, %s3597_s4  ;;  %v797_v19 = vpop.f32.mrf.mxu1  ;;  %v4320_v62 = vpack.c.bf16 %v4304_v63, %v4294_v11  ;;  %v4328_v28 = vmul.f32 %v1349_v16, %v1317_v9  ;;  %v1318_v55 = vsel %vm1253_vm3, %v1220_v43, %v1286_v38  ;;  %v4354_v38 = vpop.f32.mrf.mxu0  ;;  %v1355_v16 = vld [vmem:[%s5523_s10 + $0x70] sm:$0xff] }
 0x279   :  { %v1319_v20 = vsel %vm1254_vm2, %v1221_v4, %v1287_v60  ;;  %vm1255_vm7 = vcmp.gt.f32.partialorder %v1222_v42, 0.0  ;;  %v1288_v53 = vmul.f32 %v4153_v35, %v1222_v42  ;;  %v856_v27 = vadd.f32 %v797_v19, %v4188_v49 }
 0x27a   :  { %v1223_v59 = vadd.f32 %v5613_v3, %v1095_v5  ;;  %v1096_v25 = vadd.f32 %v5614_v40, %v855_v34  ;;  %v799_v54 = vpop.f32.mrf.mxu1  ;;  %5615 = vst [vmem:[#allocation35_spill] sm:$0xff] %v4328_v28  ;;  %v4330_v29 = vmul.f32 %v1351_v48, %v1319_v20  ;;  %v4359_v9 = vmul.f32 %v1350_v33, %v1318_v55  ;;  %v4370_v48 = vpop.f32.mrf.mxu0  ;;  %v5622_v5 = vld [vmem:[#allocation11_spill] sm:$0xff] }
 0x27b   :  { %v1320_v56 = vsel %vm1255_vm7, %v1222_v42, %v1288_v53  ;;  %v1097_v49 = vadd.f32 %v5617_v24, %v856_v27  ;;  %v857_v30 = vadd.f32 %v799_v54, %v4192_v51  ;;  %v1353_v42 = vld [vmem:[%s5523_s10 + $0x60] sm:$0xff]  ;;  %v605_v34 = vadd.f32 %v5622_v5, %v5621_v23 }
 0x27c   :  { %5616 = vst [vmem:[#allocation21_spill] sm:$0xff] %v4330_v29  ;;  %vm1256_vm8 = vcmp.gt.f32.partialorder %v1223_v59, 0.0  ;;  %v1289_v47 = vmul.f32 %v4153_v35, %v1223_v59  ;;  %v1224_v50 = vadd.f32 %v5613_v3, %v1096_v25  ;;  %1592 = vrot.lane.b32.xlu0 %v4320_v62, %s3597_s4  ;;  %v803_v14 = vpop.f32.mrf.mxu1  ;;  %v4347_v43 = vpack.c.bf16 %v4330_v29, %v4328_v28  ;;  %v1356_v25 = vld [vmem:[%s5523_s10 + $0x78] sm:$0xff]  ;;  %v4397_v33 = vpop.f32.mrf.mxu0 }
 0x27d   :  { %v1225_v4 = vadd.f32 %v5618_v41, %v1097_v49  ;;  %v1098_v51 = vadd.f32 %v4146_v61, %v857_v30  ;;  %v858_v45 = vadd.f32 %v803_v14, %v4206_v44  ;;  %v4352_v8 = vmul.f32 %v1352_v31, %v1320_v56  ;;  %5620 = vst [vmem:[#allocation36_spill] sm:$0xff] %v4359_v9 }
 0x27e   :  { %v1321_v39 = vsel %vm1256_vm8, %v1223_v59, %v1289_v47  ;;  %vm1257_vm9 = vcmp.gt.f32.partialorder %v1224_v50, 0.0  ;;  %v1290_v12 = vmul.f32 %v4153_v35, %v1224_v50  ;;  %v805_v13 = vpop.f32.mrf.mxu1  ;;  %1596 = vrot.lane.b32.xlu1 %v4347_v43, %s3597_s4  ;;  %v5623_v59 = vld [vmem:[#allocation30_spill] sm:$0xff] }
 0x27f   :  { %5619 = vst [vmem:[#allocation39_spill] sm:$0xff] %v4352_v8  ;;  %vm1258_vm10 = vcmp.gt.f32.partialorder %v1225_v4, 0.0  ;;  %v1291_v60 = vmul.f32 %v4153_v35, %v1225_v4  ;;  %v1226_v61 = vadd.f32 %v5618_v41, %v1098_v51  ;;  %v1099_v44 = vadd.f32 %v4156_v7, %v858_v45  ;;  %v5628_v51 = vld [vmem:[#allocation12_spill] sm:$0xff]  ;;  %v5629_v45 = vld [vmem:[#allocation31_spill] sm:$0xff] }
 0x280   :  { %v1322_v19 = vsel %vm1257_vm9, %v1224_v50, %v1290_v12  ;;  %v859_v20 = vadd.f32 %v805_v13, %v4229_v0  ;;  %v807_v53 = vpop.f32.mrf.mxu1  ;;  %v4377_v7 = vpack.c.bf16 %v4352_v8, %v4359_v9  ;;  %v4388_v55 = vmul.f32 %v1353_v42, %v1321_v39  ;;  %v5630_v39 = vld [vmem:[#allocation13_spill] sm:$0xff] }
 0x281   :  { %v1323_v27 = vsel %vm1258_vm10, %v1225_v4, %v1291_v60  ;;  %vm1259_vm11 = vcmp.gt.f32.partialorder %v1226_v61, 0.0  ;;  %v1292_v3 = vmul.f32 %v4153_v35, %v1226_v61  ;;  %v1227_v40 = vadd.f32 %v5623_v59, %v1099_v44  ;;  %v5627_v4 = vld [vmem:[#allocation28_spill] sm:$0xff]  ;;  %v5632_v44 = vld [vmem:[#allocation14_spill] sm:$0xff] }
 0x282   :  { %v1100_v54 = vadd.f32 %v4184_v17, %v859_v20  ;;  %v860_v31 = vadd.f32 %v807_v53, %v4245_v58  ;;  %v809_v0 = vpop.f32.mrf.mxu1  ;;  %1598 = vrot.lane.b32.xlu1 %v4377_v7, %s3597_s4  ;;  %5624 = vst [vmem:[#allocation43_spill] sm:$0xff] %v4388_v55  ;;  %v4390_v56 = vmul.f32 %v1355_v16, %v1323_v27  ;;  %v1354_v17 = vld [vmem:[%s5523_s10 + $0x68] sm:$0xff]  ;;  %v5633_v16 = vld [vmem:[#allocation34_spill] sm:$0xff] }
 0x283   :  { %v1324_v24 = vsel %vm1259_vm11, %v1226_v61, %v1292_v3  ;;  %vm1260_vm12 = vcmp.gt.f32.partialorder %v1227_v40, 0.0  ;;  %v1293_v49 = vmul.f32 %v4153_v35, %v1227_v40  ;;  %v861_v30 = vadd.f32 %v809_v0, %v4290_v15  ;;  %v5631_v61 = vld [vmem:[#allocation32_spill] sm:$0xff] }
 0x284   :  { %5625 = vst [vmem:[#allocation46_spill] sm:$0xff] %v4390_v56  ;;  %v1228_v58 = vadd.f32 %v5623_v59, %v1100_v54  ;;  %v1101_v47 = vadd.f32 %v4210_v10, %v860_v31  ;;  %v813_v50 = vpop.f32.mrf.mxu1  ;;  %v4403_v14 = vpack.c.bf16 %v4390_v56, %v4388_v55  ;;  %v4405_v41 = vmul.f32 %v1356_v25, %v1324_v24  ;;  %v4425_v59 = vpop.f32.mrf.mxu0  ;;  %v1359_v24 = vld [vmem:[%s5523_s10 + $0x90] sm:$0xff] }
 0x285   :  { %v607_v15 = vadd.f32 %v5628_v51, %v5627_v4  ;;  %v609_v12 = vadd.f32 %v5630_v39, %v5629_v45  ;;  %v1102_v13 = vadd.f32 %v4234_v18, %v861_v30  ;;  %v862_v60 = vadd.f32 %v813_v50, %v605_v34  ;;  %v1357_v34 = vld [vmem:[%s5523_s10 + $0x80] sm:$0xff]  ;;  %v5637_v30 = vld [vmem:[#allocation15_spill] sm:$0xff] }
 0x286   :  { %5626 = vst [vmem:[#allocation41_spill] sm:$0xff] %v4405_v41  ;;  %v611_v42 = vadd.f32 %v5632_v44, %v5631_v61  ;;  %v1325_v10 = vsel %vm1260_vm12, %v1227_v40, %v1293_v49  ;;  %v1229_v23 = vadd.f32 %v5633_v16, %v1101_v47  ;;  %v815_v5 = vpop.f32.mrf.mxu1  ;;  %1602 = vrot.lane.b32.xlu0 %v4403_v14, %s3597_s4  ;;  %vm1261_vm13 = vcmp.gt.f32.partialorder %v1228_v58, 0.0  ;;  %v5636_v49 = vld [vmem:[#allocation33_spill] sm:$0xff]  ;;  %v1360_v39 = vld [vmem:[%s5523_s10 + $0x98] sm:$0xff] }
 0x287   :  { %v4417_v20 = vmul.f32 %v1354_v17, %v1322_v19  ;;  %v1294_v53 = vmul.f32 %v4153_v35, %v1228_v58  ;;  %v1230_v27 = vadd.f32 %v5633_v16, %v1102_v13  ;;  %v1103_v3 = vadd.f32 %v4268_v2, %v862_v60  ;;  %v5635_v2 = vld [vmem:[#allocation26_spill] sm:$0xff]  ;;  %v1070_v13 = vpop.f32.mrf.mxu0 }
 0x288   :  { %v863_v18 = vadd.f32 %v815_v5, %v607_v15  ;;  %vm1262_vm14 = vcmp.gt.f32.partialorder %v1229_v23, 0.0  ;;  %v1295_v40 = vmul.f32 %v4153_v35, %v1229_v23  ;;  %v817_v25 = vpop.f32.mrf.mxu1  ;;  %v615_v17 = vadd.f32 %v5637_v30, %v5636_v49 }
 0x289   :  { %5634 = vst [vmem:[#allocation27_spill] sm:$0xff] %v4417_v20  ;;  %v4430_v19 = vpack.c.bf16 %v4405_v41, %v4417_v20  ;;  %vm1263_vm15 = vcmp.gt.f32.partialorder %v1230_v27, 0.0  ;;  %v1296_v54 = vmul.f32 %v4153_v35, %v1230_v27  ;;  %v1231_v31 = vadd.f32 %v5635_v2, %v1103_v3 }
 0x28a   :  { %v1104_v0 = vadd.f32 %v4296_v57, %v863_v18  ;;  %v1327_v47 = vsel %vm1262_vm14, %v1229_v23, %v1295_v40  ;;  %v864_v50 = vadd.f32 %v817_v25, %v609_v12  ;;  %v819_v4 = vpop.f32.mrf.mxu1  ;;  %v4442_v51 = vmul.f32 %v1357_v34, %v1325_v10  ;;  %v5640_v10 = vld [vmem:[#allocation37_spill] sm:$0xff]  ;;  %v5641_v23 = vld [vmem:[#allocation16_spill] sm:$0xff] }
 0x28b   :  { %1604 = vrot.lane.b32.xlu0 %v4430_v19, %s3597_s4  ;;  %v1326_v15 = vsel %vm1261_vm13, %v1228_v58, %v1294_v53  ;;  %v1328_v45 = vsel %vm1263_vm15, %v1230_v27, %v1296_v54  ;;  %vm1264_vm2 = vcmp.gt.f32.partialorder %v1231_v31, 0.0  ;;  %v1297_v57 = vmul.f32 %v4153_v35, %v1231_v31  ;;  %v1358_v58 = vld [vmem:[%s5523_s10 + $0x88] sm:$0xff]  ;;  %v5642_v53 = vld [vmem:[#allocation38_spill] sm:$0xff] }
 0x28c   :  { %5638 = vst [vmem:[#allocation11_spill] sm:$0xff] %v4442_v51  ;;  %v1232_v60 = vadd.f32 %v5635_v2, %v1104_v0  ;;  %v1105_v12 = vadd.f32 %v4324_v22, %v864_v50  ;;  %v865_v61 = vadd.f32 %v819_v4, %v611_v42  ;;  %v823_v44 = vpop.f32.mrf.mxu1  ;;  %v4451_v16 = vmul.f32 %v1359_v24, %v1327_v47  ;;  %v5643_v27 = vld [vmem:[#allocation17_spill] sm:$0xff]  ;;  %v5646_v2 = vld [vmem:[#allocation40_spill] sm:$0xff]  ;;  %v5647_v0 = vld [vmem:[#allocation18_spill] sm:$0xff] }
 0x28d   :  { %v617_v5 = vadd.f32 %v5641_v23, %v5640_v10  ;;  %v619_v3 = vadd.f32 %v5643_v27, %v5642_v53  ;;  %v866_v18 = vadd.f32 %v823_v44, %v615_v17  ;;  %v5644_v34 = vld [vmem:[#allocation29_spill] sm:$0xff]  ;;  %v4466_v54 = vmul.f32 %v1360_v39, %v1328_v45  ;;  %v1074_v17 = vpop.f32.mrf.mxu0  ;;  %v5650_v23 = vld [vmem:[#allocation42_spill] sm:$0xff] }
 0x28e   :  { %5639 = vst [vmem:[#allocation30_spill] sm:$0xff] %v4451_v16  ;;  %v1233_v40 = vadd.f32 %v5644_v34, %v1105_v12  ;;  %v1106_v25 = vadd.f32 %v4354_v38, %v865_v61  ;;  %v825_v22 = vpop.f32.mrf.mxu1  ;;  %v4464_v42 = vpack.c.bf16 %v4451_v16, %v4442_v51  ;;  %v621_v24 = vadd.f32 %v5647_v0, %v5646_v2  ;;  %v5649_v12 = vld [vmem:[#allocation24_spill] sm:$0xff]  ;;  %v1364_v2 = vld [vmem:[%s5523_s10 + $0xb8] sm:$0xff] }
 0x28f   :  { %5645 = vst [vmem:[#allocation28_spill] sm:$0xff] %v4466_v54  ;;  %v1329_v49 = vsel %vm1264_vm2, %v1231_v31, %v1297_v57  ;;  %v1107_v30 = vadd.f32 %v4370_v48, %v866_v18  ;;  %v4472_v47 = vmul.f32 %v1358_v58, %v1326_v15  ;;  %vm1265_vm3 = vcmp.gt.f32.partialorder %v1232_v60, 0.0  ;;  %v1361_v48 = vld [vmem:[%s5523_s10 + $0xa0] sm:$0xff]  ;;  %v1363_v15 = vld [vmem:[%s5523_s10 + $0xb0] sm:$0xff] }
 0x290   :  { %vm1266_vm7 = vcmp.gt.f32.partialorder %v1233_v40, 0.0  ;;  %v1299_v38 = vmul.f32 %v4153_v35, %v1233_v40  ;;  %v1234_v50 = vadd.f32 %v5644_v34, %v1106_v25  ;;  %1608 = vrot.lane.b32.xlu1 %v4464_v42, %s3597_s4  ;;  %v827_v4 = vpop.f32.mrf.mxu1  ;;  %v1298_v45 = vmul.f32 %v4153_v35, %v1232_v60 }
 0x291   :  { %5648 = vst [vmem:[#allocation12_spill] sm:$0xff] %v4472_v47  ;;  %v867_v39 = vadd.f32 %v825_v22, %v617_v5  ;;  %v1235_v31 = vadd.f32 %v5649_v12, %v1107_v30  ;;  %v868_v57 = vadd.f32 %v827_v4, %v619_v3  ;;  %v4489_v10 = vpack.c.bf16 %v4466_v54, %v4472_v47  ;;  %v5651_v5 = vld [vmem:[#allocation19_spill] sm:$0xff]  ;;  %v1076_v3 = vpop.f32.mrf.mxu0 }
 0x292   :  { %v1331_v61 = vsel %vm1266_vm7, %v1233_v40, %v1299_v38  ;;  %vm1267_vm8 = vcmp.gt.f32.partialorder %v1234_v50, 0.0  ;;  %v1300_v44 = vmul.f32 %v4153_v35, %v1234_v50  ;;  %v829_v58 = vpop.f32.mrf.mxu1  ;;  %v625_v53 = vadd.f32 %v5651_v5, %v5650_v23 }
 0x293   :  { %v869_v27 = vadd.f32 %v829_v58, %v621_v24  ;;  %v1109_v34 = vadd.f32 %v4425_v59, %v868_v57  ;;  %v4496_v25 = vmul.f32 %v1361_v48, %v1329_v49  ;;  %v4498_v22 = vmul.f32 %v1363_v15, %v1331_v61  ;;  %v1362_v59 = vld [vmem:[%s5523_s10 + $0xa8] sm:$0xff]  ;;  %v5655_v15 = vld [vmem:[#allocation47_spill] sm:$0xff]  ;;  %v5657_v61 = vld [vmem:[#allocation44_spill] sm:$0xff] }
 0x294   :  { %v1332_v18 = vsel %vm1267_vm8, %v1234_v50, %v1300_v44  ;;  %1610 = vrot.lane.b32.xlu1 %v4489_v10, %s3597_s4  ;;  %v833_v40 = vpop.f32.mrf.mxu1  ;;  %v1330_v0 = vsel %vm1265_vm3, %v1232_v60, %v1298_v45  ;;  %v1301_v24 = vmul.f32 %v4153_v35, %v1235_v31  ;;  %v1108_v30 = vadd.f32 %v4397_v33, %v867_v39  ;;  %v5654_v49 = vld [vmem:[#allocation25_spill] sm:$0xff]  ;;  %v5656_v60 = vld [vmem:[#allocation20_spill] sm:$0xff]  ;;  %v1078_v39 = vpop.f32.mrf.mxu0 }
 0x295   :  { %5652 = vst [vmem:[#allocation31_spill] sm:$0xff] %v4496_v25  ;;  %5653 = vst [vmem:[#allocation13_spill] sm:$0xff] %v4498_v22  ;;  %v870_v38 = vadd.f32 %v833_v40, %v625_v53  ;;  %vm1268_vm9 = vcmp.gt.f32.partialorder %v1235_v31, 0.0  ;;  %v1237_v50 = vadd.f32 %v5654_v49, %v1109_v34  ;;  %v1110_v4 = vadd.f32 %v1070_v13, %v869_v27  ;;  %v1367_v13 = vld [vmem:[%s5523_s10 + $0xd0] sm:$0xff]  ;;  %v5660_v40 = vld [vmem:[#allocation45_spill] sm:$0xff] }
 0x296   :  { %v835_v57 = vpop.f32.mrf.mxu1  ;;  %v4512_v48 = vpack.c.bf16 %v4498_v22, %v4496_v25  ;;  %v631_v45 = vadd.f32 %v5656_v60, %v5655_v15  ;;  %v4517_v58 = vmul.f32 %v1364_v2, %v1332_v18  ;;  %v1333_v27 = vsel %vm1268_vm9, %v1235_v31, %v1301_v24  ;;  %v1365_v18 = vld [vmem:[%s5523_s10 + $0xc0] sm:$0xff]  ;;  %v5662_v31 = vld [vmem:[#allocation22_spill] sm:$0xff]  ;;  %v1080_v60 = vpop.f32.mrf.mxu0 }
 0x297   :  { %v871_v44 = vadd.f32 %v835_v57, %v5657_v61  ;;  %v1111_v33 = vadd.f32 %v1074_v17, %v870_v38  ;;  %vm1270_vm10 = vcmp.gt.f32.partialorder %v1237_v50, 0.0  ;;  %v1303_v23 = vmul.f32 %v4153_v35, %v1237_v50 }
 0x298   :  { %5658 = vst [vmem:[#allocation32_spill] sm:$0xff] %v4517_v58  ;;  %v1238_v5 = vadd.f32 %v5654_v49, %v1110_v4  ;;  %1614 = vrot.lane.b32.xlu0 %v4512_v48, %s3597_s4  ;;  %1905 = vrot.lane.b32.xlu1 %v4512_v48, %s3599_s14  ;;  %v837_v53 = vpop.f32.mrf.mxu1  ;;  %v4528_v17 = vmul.f32 %v1362_v59, %v1330_v0  ;;  %vm1632_vm3 = vcmask 1039360   ;;  %vm1923_vm7 = vcmask 957440  }
 0x299   :  { %v1236_v34 = vadd.f32 %v5649_v12, %v1108_v30  ;;  %v872_v2 = vadd.f32 %v837_v53, %v5660_v40  ;;  %v1112_v38 = vadd.f32 %v1076_v3, %v871_v44  ;;  %v1335_v49 = vsel %vm1270_vm10, %v1237_v50, %v1303_v23  ;;  %v1368_v44 = vld [vmem:[%s5523_s10 + $0xd8] sm:$0xff]  ;;  %v1366_v40 = vld [vmem:[%s5523_s10 + $0xc8] sm:$0xff] }
 0x29a   :  { %5659 = vst [vmem:[#allocation14_spill] sm:$0xff] %v4528_v17  ;;  %vm1271_vm11 = vcmp.gt.f32.partialorder %v1238_v5, 0.0  ;;  %v1304_v4 = vmul.f32 %v4153_v35, %v1238_v5  ;;  %v839_v57 = vpop.f32.mrf.mxu1  ;;  %v1480_v0 = vpack.c.bf16 %v4517_v58, %v4528_v17  ;;  %v4539_v59 = vmul.f32 %v1367_v13, %v1335_v49  ;;  %v5664_v23 = vld [vmem:[#allocation23_spill] sm:$0xff] }
 0x29b   :  { %v1239_v24 = vadd.f32 %v5662_v31, %v1111_v33  ;;  %v1240_v15 = vadd.f32 %v5662_v31, %v1112_v38  ;;  %v4543_v61 = vmul.f32 %v1365_v18, %v1333_v27  ;;  %v873_v12 = vadd.f32 %v839_v57, %v631_v45  ;;  %v1371_v38 = vld [vmem:[%s5523_s10 + $0xf0] sm:$0xff] }
 0x29c   :  { %5661 = vst [vmem:[#allocation34_spill] sm:$0xff] %v4539_v59  ;;  %v1113_v30 = vadd.f32 %v1078_v39, %v872_v2  ;;  %1779 = vrot.lane.b32.xlu0 %v4512_v48, %s3598_s3  ;;  %1907 = vrot.lane.b32.xlu1 %v1480_v0, %s3599_s14  ;;  %vm1269_vm12 = vcmp.gt.f32.partialorder %v1236_v34, 0.0  ;;  %v1302_v3 = vmul.f32 %v4153_v35, %v1236_v34  ;;  %vm1797_vm8 = vcmask 965632  }
 0x29d   :  { %5663 = vst [vmem:[#allocation26_spill] sm:$0xff] %v4543_v61  ;;  %v1336_v50 = vsel %vm1271_vm11, %v1238_v5, %v1304_v4  ;;  %v1306_v33 = vmul.f32 %v4153_v35, %v1240_v15  ;;  %v1114_v53 = vadd.f32 %v1080_v60, %v873_v12  ;;  %v1481_v45 = vpack.c.bf16 %v4539_v59, %v4543_v61  ;;  %v1370_v4 = vld [vmem:[%s5523_s10 + $0xe8] sm:$0xff]  ;;  %v1369_v12 = vld [vmem:[%s5523_s10 + $0xe0] sm:$0xff] }
 0x29e   :  { %v1241_v13 = vadd.f32 %v5664_v23, %v1113_v30  ;;  %v1305_v39 = vmul.f32 %v4153_v35, %v1239_v24  ;;  %vm1273_vm13 = vcmp.gt.f32.partialorder %v1240_v15, 0.0  ;;  %vm1272_vm14 = vcmp.gt.f32.partialorder %v1239_v24, 0.0 }
 0x29f   :  { %v1242_v5 = vadd.f32 %v5664_v23, %v1114_v53  ;;  %v1334_v18 = vsel %vm1269_vm12, %v1236_v34, %v1302_v3  ;;  %v4565_v2 = vmul.f32 %v1368_v44, %v1336_v50  ;;  %v1338_v49 = vsel %vm1273_vm13, %v1240_v15, %v1306_v33  ;;  %v1372_v34 = vld [vmem:[%s5523_s10 + $0xf8] sm:$0xff]  ;;  %v4631_v53 = vpop.permute.xlu0 %1624 }
 0x2a0   :  { %vm1274_vm15 = vcmp.gt.f32.partialorder %v1241_v13, 0.0  ;;  %v1307_v27 = vmul.f32 %v4153_v35, %v1241_v13  ;;  %1616 = vrot.lane.b32.xlu0 %v1480_v0, %s3597_s4  ;;  %1620 = vrot.lane.b32.xlu1 %v1481_v45, %s3597_s4  ;;  %v1337_v60 = vsel %vm1272_vm14, %v1239_v24, %v1305_v39  ;;  %v4581_v30 = vmul.f32 %v1366_v40, %v1334_v18 }
 0x2a1   :  { %5665 = vst [vmem:[#allocation33_spill] sm:$0xff] %v4565_v2  ;;  %vm1275_vm2 = vcmp.gt.f32.partialorder %v1242_v5, 0.0  ;;  %v1308_v31 = vmul.f32 %v4153_v35, %v1242_v5  ;;  %v4587_v35 = vmul.f32 %v1370_v4, %v1338_v49  ;;  %v4591_v44 = vmul.f32 %v1369_v12, %v1337_v60 }
 0x2a2   :  { %v1339_v57 = vsel %vm1274_vm15, %v1241_v13, %v1307_v27  ;;  %5666 = vst [vmem:[#allocation15_spill] sm:$0xff] %v4581_v30  ;;  %v1482_v24 = vpack.c.bf16 %v4565_v2, %v4581_v30  ;;  %v5671_v13 = vmov 0.0|0.0   ;;  %v5672_v27 = vmov 0  }
 0x2a3   :  { %v4583_v15 = vmul.f32 %v1371_v38, %v1339_v57  ;;  %v1340_v3 = vsel %vm1275_vm2, %v1242_v5, %v1308_v31  ;;  %5668 = vst [vmem:[#allocation16_spill] sm:$0xff] %v4587_v35  ;;  %5670 = vst [vmem:[#allocation17_spill] sm:$0xff] %v4591_v44 }
 0x2a4   :  { %1781 = vrot.lane.b32.xlu0 %v1480_v0, %s3598_s3  ;;  %1911 = vrot.lane.b32.xlu1 %v1481_v45, %s3599_s14  ;;  %v4589_v50 = vmul.f32 %v1372_v34, %v1340_v3 }
 0x2a5   :  { %5667 = vst [vmem:[#allocation37_spill] sm:$0xff] %v4583_v15  ;;  %v1483_v23 = vpack.c.bf16 %v4583_v15, %v4591_v44 }
 0x2a6   :  { %5669 = vst [vmem:[#allocation38_spill] sm:$0xff] %v4589_v50  ;;  %v1484_v33 = vpack.c.bf16 %v4589_v50, %v4587_v35 }
 0x2a8   :  { %1785 = vrot.lane.b32.xlu0 %v1481_v45, %s3598_s3  ;;  %1622 = vrot.lane.b32.xlu1 %v1482_v24, %s3597_s4 }
 0x2a9   :  { %1706 = vmatprep.subr.bf16.mxu0 %v1484_v33 }
 0x2aa   :  { %1707 = vmatpush1.bf16.msra.mxu0 %v1483_v23 }
 0x2ab   :  { %1708 = vmatprep.subr.bf16.mxu0 %v1482_v24 }
 0x2ac   :  { %1787 = vrot.lane.b32.xlu0 %v1482_v24, %s3598_s3  ;;  %1913 = vrot.lane.b32.xlu1 %v1482_v24, %s3599_s14 }
 0x2ae   :  { %1709 = vmatpush1.bf16.msra.mxu0 %v1481_v45  ;;  %v1485_v45 = vld [vmem:[%s5518_s5] sm:$0xf] }
 0x2af   :  { %1710 = vmatprep.subr.bf16.mxu0 %v1480_v0  ;;  %v4615_v0 = vpop.permute.xlu1 %1630 }
 0x2b0   :  { %1626 = vrot.lane.b32.xlu0 %v1483_v23, %s3597_s4  ;;  %1917 = vrot.lane.b32.xlu1 %v1483_v23, %s3599_s14 }
 0x2b2   :  { %1711 = vmatpush1.bf16.msra.mxu0 %v4512_v48 }
 0x2b3   :  { %1712 = vmatprep.subr.bf16.mxu0 %v4489_v10  ;;  %v4624_v48 = vpop.permute.xlu1 %1618 }
 0x2b4   :  { %1791 = vrot.lane.b32.xlu0 %v1483_v23, %s3598_s3  ;;  %1777 = vrot.lane.b32.xlu1 %v5671_v13, %s3598_s3 }
 0x2b6   :  { %1713 = vmatpush1.bf16.msra.mxu0 %v4464_v42 }
 0x2b7   :  { %1714 = vmatprep.subr.bf16.mxu0 %v4430_v19 }
 0x2b8   :  { %1628 = vrot.lane.b32.xlu0 %v1484_v33, %s3597_s4  ;;  %1901 = vrot.lane.b32.xlu1 %v4489_v10, %s3599_s14 }
 0x2ba   :  { %1715 = vmatpush1.bf16.msra.mxu0 %v4403_v14 }
 0x2bb   :  { %1716 = vmatprep.subr.bf16.mxu0 %v4377_v7 }
 0x2bc   :  { %1775 = vrot.lane.b32.xlu0 %v4489_v10, %s3598_s3  ;;  %1899 = vrot.lane.b32.xlu1 %v4464_v42, %s3599_s14  ;;  %v4639_v10 = vpop.permute.xlu1 %1606 }
 0x2be   :  { %1717 = vmatpush1.bf16.msra.mxu0 %v4347_v43 }
 0x2bf   :  { %1718 = vmatprep.subr.bf16.mxu0 %v4320_v62 }
 0x2c0   :  { %1773 = vrot.lane.b32.xlu0 %v4464_v42, %s3598_s3  ;;  %1771 = vrot.lane.b32.xlu1 %v5671_v13, %s3598_s3  ;;  %v4642_v42 = vpop.permute.xlu0 %1612  ;;  %v4651_v39 = vpop.permute.xlu1 %1594 }
 0x2c2   :  { %1719 = vmatpush1.bf16.msra.mxu0 %v4302_v21 }
 0x2c3   :  { %1720 = vmatprep.subr.bf16.mxu0 %v4263_v26 }
 0x2c4   :  { %1903 = vrot.lane.b32.xlu0 %v5671_v13, %s3599_s14  ;;  %1895 = vrot.lane.b32.xlu1 %v4430_v19, %s3599_s14  ;;  %v4658_v5 = vpop.permute.xlu0 %1600 }
 0x2c6   :  { %1721 = vmatpush1.bf16.msra.mxu0 %v4241_v46 }
 0x2c8   :  { %1769 = vrot.lane.b32.xlu0 %v4430_v19, %s3598_s3  ;;  %1893 = vrot.lane.b32.xlu1 %v4403_v14, %s3599_s14  ;;  %v4663_v19 = vpop.permute.xlu1 %1795  ;;  %v4665_v18 = vpop.permute.xlu0 %1588 }
 0x2c9   :  { %1739 = vmatmul.mubr.bf16.vlgmr.msra.gmra.mxu0 %v1485_v45 }
 0x2ca   :  { %1988 = vmatprep.mubr.bf16.mxu0 %v5672_v27 }
 0x2cc   :  { %1767 = vrot.lane.b32.xlu0 %v4403_v14, %s3598_s3  ;;  %1765 = vrot.lane.b32.xlu1 %v5671_v13, %s3598_s3  ;;  %v4671_v14 = vpop.permute.xlu1 %1789  ;;  %v4676_v40 = vpop.permute.xlu0 %1921 }
 0x2d0   :  { %1897 = vrot.lane.b32.xlu0 %v5671_v13, %s3599_s14  ;;  %1919 = vrot.lane.b32.xlu1 %v1484_v33, %s3599_s14  ;;  %v4682_v38 = vpop.permute.xlu1 %1783  ;;  %v4684_v49 = vpop.permute.xlu0 %1915 }
 0x2d4   :  { %1763 = vrot.lane.b32.xlu0 %v4377_v7, %s3598_s3  ;;  %1889 = vrot.lane.b32.xlu1 %v4377_v7, %s3599_s14 }
 0x2d8   :  { %1793 = vrot.lane.b32.xlu0 %v1484_v33, %s3598_s3  ;;  %1887 = vrot.lane.b32.xlu1 %v4347_v43, %s3599_s14 }
 0x2dc   :  { %1761 = vrot.lane.b32.xlu0 %v4347_v43, %s3598_s3  ;;  %1759 = vrot.lane.b32.xlu1 %v5671_v13, %s3598_s3  ;;  %v4694_v43 = vpop.permute.xlu0 %1909 }
 0x2e0   :  { %1891 = vrot.lane.b32.xlu0 %v5671_v13, %s3599_s14  ;;  %1883 = vrot.lane.b32.xlu1 %v4320_v62, %s3599_s14  ;;  %v1585_v7 = vpop.permute.xlu1 %1584 }
 0x2e4   :  { %1757 = vrot.lane.b32.xlu0 %v4320_v62, %s3598_s3  ;;  %1881 = vrot.lane.b32.xlu1 %v4302_v21, %s3599_s14  ;;  %v4696_v4 = vpop.permute.xlu1 %1586 }
 0x2e5   :  { %v4700_v57 = vsel %vm1632_vm3, %v1585_v7, %v4696_v4 }
 0x2e8   :  { %1755 = vrot.lane.b32.xlu0 %v4302_v21, %s3598_s3  ;;  %1753 = vrot.lane.b32.xlu1 %v5671_v13, %s3598_s3 }
 0x2ea   :  { %v1591_v31 = vpop.permute.xlu0 %1590 }
 0x2ec   :  { %1885 = vrot.lane.b32.xlu0 %v5671_v13, %s3599_s14  ;;  %1877 = vrot.lane.b32.xlu1 %v4263_v26, %s3599_s14 }
 0x2ee   :  { %v4710_v62 = vpop.permute.xlu0 %1592 }
 0x2ef   :  { %v4714_v34 = vsel %vm1632_vm3, %v1591_v31, %v4710_v62 }
 0x2f0   :  { %1751 = vrot.lane.b32.xlu0 %v4263_v26, %s3598_s3  ;;  %1875 = vrot.lane.b32.xlu1 %v4241_v46, %s3599_s14  ;;  %v1597_v21 = vpop.permute.xlu1 %1596  ;;  %v1999_v26 = vld [vmem:[%s5519_s6] sm:$0xff] }
 0x2f4   :  { %1749 = vrot.lane.b32.xlu0 %v4241_v46, %s3598_s3  ;;  %v1599_v60 = vpop.permute.xlu1 %1598  ;;  %2117 = vrot.lane.b32.xlu1 %v5671_v13, %s3594_s0 }
 0x2f5   :  { %v1637_v12 = vsel %vm1632_vm3, %v1597_v21, %v1599_v60 }
 0x2f8   :  { %1879 = vrot.lane.b32.xlu0 %v5671_v13, %s3599_s14  ;;  %v1603_v3 = vpop.permute.xlu0 %1602 }
 0x2fc   :  { %2002 = vperm.xlu0 %3509, %v1999_v26  }
 0x2fd   :  { %v1605_v33 = vpop.permute.xlu0 %1604 }
 0x302   :  { %v1609_v24 = vpop.permute.xlu1 %1608 }
 0x306   :  { %v1611_v23 = vpop.permute.xlu1 %1610 }
 0x30a   :  { %v1615_v45 = vpop.permute.xlu0 %1614  ;;  %v4730_v46 = vpop.permute.xlu1 %1905 }
 0x30e   :  { %v4732_v7 = vpop.permute.xlu0 %1779  ;;  %v4734_v31 = vpop.permute.xlu1 %1907 }
 0x312   :  { %v1617_v21 = vpop.permute.xlu0 %1616  ;;  %v1621_v50 = vpop.permute.xlu1 %1620 }
 0x313   :  { %v1644_v20 = vsel %vm1632_vm3, %v1617_v21, %v4624_v48  ;;  %v1639_v48 = vsel %vm1632_vm3, %v1603_v3, %v1605_v33 }
 0x316   :  { %v4736_v15 = vpop.permute.xlu0 %1781  ;;  %v1912_v35 = vpop.permute.xlu1 %1911 }
 0x31a   :  { %v4738_v44 = vpop.permute.xlu0 %1785  ;;  %v1623_v2 = vpop.permute.xlu1 %1622 }
 0x31b   :  { %v1646_v47 = vsel %vm1632_vm3, %v1623_v2, %v4631_v53  ;;  %v1645_v56 = vsel %vm1632_vm3, %v1621_v50, %v1623_v2  ;;  %v1640_v2 = vsel %vm1632_vm3, %v1605_v33, %v4639_v10  ;;  %v1638_v53 = vsel %vm1632_vm3, %v1599_v60, %v4658_v5 }
 0x31c   :  { %v1636_v10 = vsel %vm1632_vm3, %v4710_v62, %v4651_v39  ;;  %v1634_v5 = vsel %vm1632_vm3, %v4696_v4, %v4665_v18  ;;  %v3379_v18 = vld [vmem:[%s5518_s5 + $0x4] sm:$0xf] }
 0x31e   :  { %v4740_v26 = vpop.permute.xlu0 %1787  ;;  %v1914_v59 = vpop.permute.xlu1 %1913 }
 0x31f   :  { %v1937_v39 = vsel %vm1923_vm7, %v1914_v59, %v4684_v49 }
 0x322   :  { %v1627_v30 = vpop.permute.xlu0 %1626  ;;  %v1918_v61 = vpop.permute.xlu1 %1917 }
 0x326   :  { %v4742_v58 = vpop.permute.xlu0 %1791  ;;  %v4744_v22 = vpop.permute.xlu1 %1777 }
 0x32a   :  { %v1629_v17 = vpop.permute.xlu0 %1628  ;;  %v4746_v25 = vpop.permute.xlu1 %1901 }
 0x32b   :  { %v1647_v54 = vsel %vm1632_vm3, %v1627_v30, %v1629_v17  ;;  %v1648_v16 = vsel %vm1632_vm3, %v1629_v17, %v4615_v0 }
 0x32c   :  { %1665 = vmatprep.subr.bf16.mxu1 %v1648_v16  ;;  %v1643_v16 = vsel %vm1632_vm3, %v1615_v45, %v1617_v21 }
 0x32d   :  { %1666 = vmatpush1.bf16.msra.mxu1 %v1647_v54  ;;  %v1642_v54 = vsel %vm1632_vm3, %v1611_v23, %v4642_v42 }
 0x32e   :  { %v4753_v51 = vpop.permute.xlu0 %1775  ;;  %1667 = vmatprep.subr.bf16.mxu1 %v1646_v47  ;;  %v4755_v41 = vpop.permute.xlu1 %1899 }
 0x331   :  { %1668 = vmatpush1.bf16.msra.mxu1 %v1645_v56  ;;  %v1641_v56 = vsel %vm1632_vm3, %v1609_v24, %v1611_v23 }
 0x332   :  { %v4760_v30 = vpop.permute.xlu0 %1773  ;;  %1669 = vmatprep.subr.bf16.mxu1 %v1644_v20  ;;  %v4762_v17 = vpop.permute.xlu1 %1771 }
 0x335   :  { %1670 = vmatpush1.bf16.msra.mxu1 %v1643_v16 }
 0x336   :  { %v1904_v47 = vpop.permute.xlu0 %1903  ;;  %1671 = vmatprep.subr.bf16.mxu1 %v1642_v54  ;;  %v4767_v0 = vpop.permute.xlu1 %1895 }
 0x339   :  { %1672 = vmatpush1.bf16.msra.mxu1 %v1641_v56 }
 0x33a   :  { %v4772_v50 = vpop.permute.xlu0 %1769  ;;  %1673 = vmatprep.subr.bf16.mxu1 %v1640_v2  ;;  %v1894_v20 = vpop.permute.xlu1 %1893 }
 0x33d   :  { %1674 = vmatpush1.bf16.msra.mxu1 %v1639_v48 }
 0x33e   :  { %v4777_v42 = vpop.permute.xlu0 %1767  ;;  %1675 = vmatprep.subr.bf16.mxu1 %v1638_v53  ;;  %v4779_v45 = vpop.permute.xlu1 %1765 }
 0x341   :  { %1676 = vmatpush1.bf16.msra.mxu1 %v1637_v12 }
 0x342   :  { %v1898_v24 = vpop.permute.xlu0 %1897  ;;  %1677 = vmatprep.subr.bf16.mxu1 %v1636_v10  ;;  %v1920_v23 = vpop.permute.xlu1 %1919 }
 0x343   :  { %v1938_v3 = vsel %vm1923_vm7, %v1918_v61, %v1920_v23  ;;  %v1939_v33 = vsel %vm1923_vm7, %v1920_v23, %v4676_v40  ;;  %v1936_v61 = vsel %vm1923_vm7, %v1912_v35, %v1914_v59  ;;  %v1935_v40 = vsel %vm1923_vm7, %v4734_v31, %v4694_v43 }
 0x344   :  { %1956 = vmatprep.subr.bf16.mxu0 %v1939_v33  ;;  %v1934_v35 = vsel %vm1923_vm7, %v4730_v46, %v4734_v31  ;;  %v1811_v43 = vsel %vm1797_vm8, %v4740_v26, %v4671_v14  ;;  %v1932_v46 = vsel %vm1923_vm7, %v4755_v41, %v4746_v25  ;;  %v1809_v14 = vsel %vm1797_vm8, %v4736_v15, %v4682_v38 }
 0x345   :  { %1678 = vmatpush1.bf16.msra.mxu1 %v4714_v34  ;;  %1957 = vmatpush1.bf16.msra.mxu0 %v1938_v3  ;;  %v1931_v31 = vsel %vm1923_vm7, %v4767_v0, %v1898_v24  ;;  %v1930_v41 = vsel %vm1923_vm7, %v1894_v20, %v4767_v0  ;;  %v3380_v3 = vld [vmem:[%s5518_s5 + $0x8] sm:$0xf] }
 0x346   :  { %v1764_v62 = vpop.permute.xlu0 %1763  ;;  %1679 = vmatprep.subr.bf16.mxu1 %v1634_v5  ;;  %v1890_v60 = vpop.permute.xlu1 %1889  ;;  %1958 = vmatprep.subr.bf16.mxu0 %v1937_v39 }
 0x347   :  { %v1803_v2 = vsel %vm1797_vm8, %v1764_v62, %v4779_v45 }
 0x349   :  { %1680 = vmatpush1.bf16.msra.mxu1 %v4700_v57  ;;  %1959 = vmatpush1.bf16.msra.mxu0 %v1936_v61  ;;  %v1933_v57 = vsel %vm1923_vm7, %v4746_v25, %v1904_v47  ;;  %v1807_v25 = vsel %vm1797_vm8, %v4753_v51, %v4744_v22  ;;  %v1806_v47 = vsel %vm1797_vm8, %v4760_v30, %v4753_v51 }
 0x34a   :  { %v1794_v4 = vpop.permute.xlu0 %1793  ;;  %v1888_v49 = vpop.permute.xlu1 %1887  ;;  %1960 = vmatprep.subr.bf16.mxu0 %v1935_v40  ;;  %v1804_v22 = vsel %vm1797_vm8, %v4777_v42, %v4772_v50 }
 0x34b   :  { %v1812_v34 = vsel %vm1797_vm8, %v4742_v58, %v1794_v4  ;;  %v1813_v59 = vsel %vm1797_vm8, %v1794_v4, %v4663_v19  ;;  %v1810_v19 = vsel %vm1797_vm8, %v4738_v44, %v4740_v26  ;;  %v1808_v44 = vsel %vm1797_vm8, %v4732_v7, %v4736_v15 }
 0x34c   :  { %1830 = vmatprep.subr.bf16.mxu1 %v1813_v59  ;;  %1698 = vmatmul.mubr.bf16.vlgmr.msra.gmra.mxu1 %v3379_v18  ;;  %v1928_v15 = vsel %vm1923_vm7, %v1888_v49, %v1890_v60  ;;  %v1805_v7 = vsel %vm1797_vm8, %v4772_v50, %v4762_v17 }
 0x34d   :  { %1831 = vmatpush1.bf16.msra.mxu1 %v1812_v34  ;;  %1961 = vmatpush1.bf16.msra.mxu0 %v1934_v35 }
 0x34e   :  { %v1762_v12 = vpop.permute.xlu0 %1761  ;;  %1832 = vmatprep.subr.bf16.mxu1 %v1811_v43  ;;  %v1760_v58 = vpop.permute.xlu1 %1759  ;;  %1962 = vmatprep.subr.bf16.mxu0 %v1933_v57 }
 0x34f   :  { %1862 = vmatprep.mubr.bf16.mxu1 %v5672_v27  ;;  %v1802_v20 = vsel %vm1797_vm8, %v1762_v12, %v1764_v62  ;;  %v3381_v62 = vld [vmem:[%s5518_s5 + $0xc] sm:$0xf] }
 0x351   :  { %1833 = vmatpush1.bf16.msra.mxu1 %v1810_v19  ;;  %1963 = vmatpush1.bf16.msra.mxu0 %v1932_v46 }
 0x352   :  { %v1892_v21 = vpop.permute.xlu0 %1891  ;;  %1834 = vmatprep.subr.bf16.mxu1 %v1809_v14  ;;  %v1884_v16 = vpop.permute.xlu1 %1883  ;;  %1964 = vmatprep.subr.bf16.mxu0 %v1931_v31 }
 0x353   :  { %v1929_v38 = vsel %vm1923_vm7, %v1890_v60, %v1892_v21 }
 0x355   :  { %1835 = vmatpush1.bf16.msra.mxu1 %v1808_v44  ;;  %1965 = vmatpush1.bf16.msra.mxu0 %v1930_v41 }
 0x356   :  { %v1758_v26 = vpop.permute.xlu0 %1757  ;;  %1836 = vmatprep.subr.bf16.mxu1 %v1807_v25  ;;  %1966 = vmatprep.subr.bf16.mxu0 %v1929_v38  ;;  %v1882_v54 = vpop.permute.xlu1 %1881 }
 0x357   :  { %v1926_v48 = vsel %vm1923_vm7, %v1882_v54, %v1884_v16  ;;  %v1801_v17 = vsel %vm1797_vm8, %v1758_v26, %v1760_v58 }
 0x359   :  { %1837 = vmatpush1.bf16.msra.mxu1 %v1806_v47  ;;  %1967 = vmatpush1.bf16.msra.mxu0 %v1928_v15 }
 0x35a   :  { %v1756_v0 = vpop.permute.xlu0 %1755  ;;  %1838 = vmatprep.subr.bf16.mxu1 %v1805_v7  ;;  %v1754_v56 = vpop.permute.xlu1 %1753  ;;  %v5673_v7 = vld [vmem:[#allocation8_spill] sm:$0xff] }
 0x35b   :  { %v1800_v42 = vsel %vm1797_vm8, %v1756_v0, %v1758_v26  ;;  %v2019_v26 = vld [vmem:[%s5522_s9] sm:$0x3]  ;;  %v5674_v0 = vsub.s32 0, %v5673_v7 }
 0x35d   :  { %1839 = vmatpush1.bf16.msra.mxu1 %v1804_v22  ;;  %v2024_v22 = vrot.slane %v2019_v26, %v5674_v0 }
 0x35e   :  { %v1886_v51 = vpop.permute.xlu0 %1885  ;;  %1840 = vmatprep.subr.bf16.mxu1 %v1803_v2  ;;  %v1878_v50 = vpop.permute.xlu1 %1877 }
 0x35f   :  { %v1927_v30 = vsel %vm1923_vm7, %v1884_v16, %v1886_v51  ;;  %v2010_v16 = vstv %s3382_s2 }
 0x360   :  { %1968 = vmatprep.subr.bf16.mxu0 %v1927_v30  ;;  %v5675_v30 = vld [vmem:[#allocation9_spill] sm:$0xff] }
 0x361   :  { %1841 = vmatpush1.bf16.msra.mxu1 %v1802_v20  ;;  %1969 = vmatpush1.bf16.msra.mxu0 %v1926_v48  ;;  %v5676_v48 = vsub.s32 1, %v5673_v7 }
 0x362   :  { %v1752_v53 = vpop.permute.xlu0 %1751  ;;  %1842 = vmatprep.subr.bf16.mxu1 %v1801_v17  ;;  %v1876_v23 = vpop.permute.xlu1 %1875 }
 0x363   :  { %v1799_v45 = vsel %vm1797_vm8, %v1752_v53, %v1754_v56  ;;  %v1924_v39 = vsel %vm1923_vm7, %v1876_v23, %v1878_v50  ;;  %v2028_v17 = vrot.slane %v2019_v26, %v5676_v48 }
 0x365   :  { %1843 = vmatpush1.bf16.msra.mxu1 %v1800_v42 }
 0x366   :  { %v1750_v10 = vpop.permute.xlu0 %1749  ;;  %1844 = vmatprep.subr.bf16.mxu1 %v1799_v45 }
 0x367   :  { %v1798_v24 = vsel %vm1797_vm8, %v1750_v10, %v1752_v53 }
 0x369   :  { %1845 = vmatpush1.bf16.msra.mxu1 %v1798_v24 }
 0x36a   :  { %v1880_v33 = vpop.permute.xlu0 %1879 }
 0x36b   :  { %v1925_v5 = vsel %vm1923_vm7, %v1878_v50, %v1880_v33  ;;  %v5677_v50 = vld [vmem:[#allocation10_spill] sm:$0xff]  ;;  %v3546_v33 = vld [vmem:[%s5520_s7] sm:$0xff]  }
 0x36c   :  { %1863 = vmatmul.mubr.bf16.vlgmr.msra.gmra.mxu1 %v3380_v3  ;;  %1970 = vmatprep.subr.bf16.mxu0 %v1925_v5  ;;  %v3548_v5 = vld [vmem:[%s5520_s7 + $0x8] sm:$0xff]  }
 0x36d   :  { %1971 = vmatpush1.bf16.msra.mxu0 %v1924_v39  ;;  %2187 = vmatprep.mubr.bf16.mxu1 %v5672_v27  ;;  %v2931_v39 = vld [vmem:[%s5521_s8] sm:$0xff] }
 0x370   :  { %1989 = vmatmul.mubr.bf16.vlgmr.msra.gmra.mxu0 %v3381_v62  ;;  %v2932_v62 = vld [vmem:[%s5521_s8 + $0x8] sm:$0xff] }
 0x371   :  { %2370 = vmatprep.mubr.bf16.mxu0 %v5672_v27 }
 0x377   :  { %v2003_v14 = vpop.permute.xlu0 %2002 }
 0x389   :  { %v1740_v60 = vpop.f32.mrf.mxu0 }
 0x38b   :  { %v1742_v61 = vpop.f32.mrf.mxu0 }
 0x38d   :  { %v1744_v40 = vpop.f32.mrf.mxu0 }
 0x38e   :  { %v2935_v40 = vld [vmem:[%s5521_s8 + $0x20] sm:$0xff] }
 0x38f   :  { %v1745_v18 = vpop.f32.mrf.mxu0 }
 0x390   :  { %v2936_v18 = vld [vmem:[%s5521_s8 + $0x28] sm:$0xff] }
 0x40c   :  { %v1699_v4 = vpop.f32.mrf.mxu1 }
 0x40d   :  { %v1741_v43 = vadd.f32 %v1740_v60, %v1699_v4  ;;  %v3550_v60 = vld [vmem:[%s5520_s7 + $0x10] sm:$0xff]  }
 0x40e   :  { %v1701_v49 = vpop.f32.mrf.mxu1  ;;  %v2937_v4 = vld [vmem:[%s5521_s8 + $0x30] sm:$0xff] }
 0x40f   :  { %v1743_v12 = vadd.f32 %v1742_v61, %v1701_v49  ;;  %v2934_v61 = vld [vmem:[%s5521_s8 + $0x18] sm:$0xff] }
 0x410   :  { %v1703_v34 = vpop.f32.mrf.mxu1  ;;  %v3552_v49 = vld [vmem:[%s5520_s7 + $0x18] sm:$0xff]  }
 0x411   :  { %v2938_v34 = vld [vmem:[%s5521_s8 + $0x38] sm:$0xff] }
 0x412   :  { %v1704_v59 = vpop.f32.mrf.mxu1 }
 0x413   :  { %v2939_v59 = vld [vmem:[%s5521_s8 + $0x40] sm:$0xff] }
 0x42c   :  { %v1864_v35 = vpop.f32.mrf.mxu1 }
 0x42d   :  { %v1871_v58 = vadd.f32 %v1864_v35, %v1741_v43  ;;  %v2940_v35 = vld [vmem:[%s5521_s8 + $0x48] sm:$0xff]  ;;  %v2941_v43 = vld [vmem:[%s5521_s8 + $0x50] sm:$0xff] }
 0x42e   :  { %v1866_v57 = vpop.f32.mrf.mxu1 }
 0x42f   :  { %v1872_v31 = vadd.f32 %v1866_v57, %v1743_v12  ;;  %v3554_v57 = vld [vmem:[%s5520_s7 + $0x20] sm:$0xff]   ;;  %v2942_v12 = vld [vmem:[%s5521_s8 + $0x58] sm:$0xff] }
 0x430   :  { %v1990_v19 = vpop.f32.mrf.mxu0  ;;  %v1868_v46 = vpop.f32.mrf.mxu1 }
 0x431   :  { %v1997_v21 = vadd.f32 %v1990_v19, %v1871_v58  ;;  %v2943_v58 = vld [vmem:[%s5521_s8 + $0x60] sm:$0xff]  ;;  %v2944_v19 = vld [vmem:[%s5521_s8 + $0x68] sm:$0xff]  ;;  %v2945_v46 = vld [vmem:[%s5521_s8 + $0x70] sm:$0xff] }
 0x432   :  { %v1992_v44 = vpop.f32.mrf.mxu0  ;;  %v1869_v41 = vpop.f32.mrf.mxu1 }
 0x433   :  { %v2005_v25 = vadd.f32 %v2003_v14, %v1997_v21  ;;  %v1998_v38 = vadd.f32 %v1992_v44, %v1872_v31  ;;  %v2946_v31 = vld [vmem:[%s5521_s8 + $0x78] sm:$0xff]  ;;  %v3558_v21 = vld [vmem:[%s5520_s7 + $0x30] sm:$0xff]   ;;  %v2118_v44 = vpop.permute.xlu1 %2117 }
 0x434   :  { %v1994_v54 = vpop.f32.mrf.mxu0 }
 0x435   :  { %vm2008_vm9 = vcmp.gt.f32.partialorder %v2005_v25, 0.0  ;;  %v2011_v47 = vmul.f32 %v2010_v16, %v2005_v25  ;;  %v2006_v15 = vadd.f32 %v2003_v14, %v1998_v38  ;;  %v3556_v14 = vld [vmem:[%s5520_s7 + $0x28] sm:$0xff]  }
 0x436   :  { %v1995_v56 = vpop.f32.mrf.mxu0 }
 0x437   :  { %v2013_v2 = vsel %vm2008_vm9, %v2005_v25, %v2011_v47  ;;  %vm2009_vm10 = vcmp.gt.f32.partialorder %v2006_v15, 0.0  ;;  %v2012_v51 = vmul.f32 %v2010_v16, %v2006_v15  ;;  %v3560_v16 = vld [vmem:[%s5520_s7 + $0x38] sm:$0xff]  }
 0x438   :  { %v2017_v20 = vsub.f32 %v2013_v2, %v5675_v30 }
 0x439   :  { %v2014_v53 = vsel %vm2009_vm10, %v2006_v15, %v2012_v51  ;;  %v3545_v15 = vld [vmem:[%s5520_s7 + $0x40] sm:$0xff]  }
 0x43a   :  { %v2018_v42 = vsub.f32 %v2014_v53, %v5677_v50  ;;  %v2031_v45 = vmul.f32 %v2024_v22, %v2017_v20  ;;  %v3547_v20 = vld [vmem:[%s5520_s7 + $0x48] sm:$0xff]  }
 0x43c   :  { %v2037_v10 = vpack.c.bf16 %v2031_v45, %v2031_v45  ;;  %v2032_v24 = vmul.f32 %v2028_v17, %v2018_v42  ;;  %v3562_v42 = vld [vmem:[%s5520_s7 + $0xc0] sm:$0xff]   ;;  %v3549_v45 = vld [vmem:[%s5520_s7 + $0x50] sm:$0xff]  }
 0x43e   :  { %2119 = vrot.lane.b32.xlu0 %v2037_v10, %s3594_s0  ;;  %v2038_v23 = vpack.c.bf16 %v2032_v24, %v2032_v24  ;;  %v2333_v3 = vsel %vm144_vm0, %v2037_v10, 0  ;;  %v3551_v24 = vld [vmem:[%s5520_s7 + $0x58] sm:$0xff]  }
 0x440   :  { %2121 = vrot.lane.b32.xlu1 %v2038_v23, %s3594_s0  ;;  %3424 = vmatprep.subr.msk.bf16.mxu0 %vm144_vm0, %v2038_v23 }
 0x441   :  { %2353 = vmatpush1.bf16.msra.mxu0 %v2333_v3  ;;  %v3553_v3 = vld [vmem:[%s5520_s7 + $0x60] sm:$0xff]  }
 0x442   :  { %2508 = vrot.lane.b32.xlu0 %v5671_v13, %s3595_s1 }
 0x444   :  { %2510 = vrot.lane.b32.xlu1 %v2037_v10, %s3595_s1  ;;  %3425 = vmatmul.mubr.msk.bf16.vlgmr.msra.gmra.mxu0 %vm140_vm1, %v3546_v33  ;;  %v3568_v33 = vld [vmem:[%s5520_s7 + $0xd8] sm:$0xff]  }
 0x445   :  { %2380 = vmatprep.mubr.bf16.mxu0 %v5672_v27 }
 0x446   :  { %2512 = vrot.lane.b32.xlu0 %v2038_v23, %s3595_s1 }
 0x448   :  { %2748 = vrot.lane.b32.xlu1 %v5671_v13, %s3596_s17  ;;  %v2933_v13 = vld [vmem:[%s5521_s8 + $0x10] sm:$0xff] }
 0x44a   :  { %2750 = vrot.lane.b32.xlu0 %v2037_v10, %s3596_s17  ;;  %v3564_v10 = vld [vmem:[%s5520_s7 + $0xc8] sm:$0xff]  }
 0x44c   :  { %2752 = vrot.lane.b32.xlu1 %v2038_v23, %s3596_s17  ;;  %3426 = vmatmul.mubr.msk.bf16.gmra.mxu0 %vm140_vm1, %v3548_v5  ;;  %v3566_v23 = vld [vmem:[%s5520_s7 + $0xd0] sm:$0xff]   ;;  %v3555_v5 = vld [vmem:[%s5520_s7 + $0x68] sm:$0xff]  }
 0x44d   :  { %2390 = vmatprep.mubr.bf16.mxu0 %v5672_v27 }
 0x44e   :  { %2949 = vperm.xlu0 %3509, %v2931_v39   ;;  %v3570_v39 = vld [vmem:[%s5520_s7 + $0xe0] sm:$0xff]  }
 0x450   :  { %2954 = vperm.xlu1 %3510, %v2932_v62   ;;  %v3557_v62 = vld [vmem:[%s5520_s7 + $0x70] sm:$0xff]  }
 0x452   :  { %2959 = vperm.xlu0 %3509, %v2933_v13   ;;  %v3572_v13 = vld [vmem:[%s5520_s7 + $0xe8] sm:$0xff]  }
 0x454   :  { %2964 = vperm.xlu1 %3510, %v2934_v61   ;;  %3427 = vmatmul.mubr.msk.bf16.gmra.mxu0 %vm140_vm1, %v3550_v60  ;;  %v3559_v60 = vld [vmem:[%s5520_s7 + $0x78] sm:$0xff]   ;;  %v3574_v61 = vld [vmem:[%s5520_s7 + $0xf0] sm:$0xff]  }
 0x455   :  { %2400 = vmatprep.mubr.bf16.mxu0 %v5672_v27 }
 0x456   :  { %2969 = vperm.xlu0 %3509, %v2935_v40   ;;  %v3561_v40 = vld [vmem:[%s5520_s7 + $0x80] sm:$0xff]  }
 0x458   :  { %2974 = vperm.xlu1 %3510, %v2936_v18   ;;  %v3576_v18 = vld [vmem:[%s5520_s7 + $0xf8] sm:$0xff]  }
 0x45a   :  { %2979 = vperm.xlu0 %3509, %v2937_v4   ;;  %v3563_v4 = vld [vmem:[%s5520_s7 + $0x88] sm:$0xff]  }
 0x45c   :  { %2984 = vperm.xlu1 %3510, %v2938_v34   ;;  %3428 = vmatmul.mubr.msk.bf16.gmra.mxu0 %vm140_vm1, %v3552_v49  ;;  %v3565_v49 = vld [vmem:[%s5520_s7 + $0x90] sm:$0xff]  }
 0x45d   :  { %2410 = vmatprep.mubr.bf16.mxu0 %v5672_v27 }
 0x45e   :  { %2989 = vperm.xlu0 %3509, %v2939_v59  }
 0x460   :  { %2994 = vperm.xlu1 %3510, %v2940_v35   ;;  %v3567_v35 = vld [vmem:[%s5520_s7 + $0x98] sm:$0xff]  }
 0x462   :  { %2999 = vperm.xlu0 %3509, %v2941_v43  }
 0x464   :  { %3004 = vperm.xlu1 %3510, %v2942_v12   ;;  %3429 = vmatmul.mubr.msk.bf16.gmra.mxu0 %vm140_vm1, %v3554_v57  ;;  %v3569_v12 = vld [vmem:[%s5520_s7 + $0xa0] sm:$0xff]  }
 0x465   :  { %2420 = vmatprep.mubr.bf16.mxu0 %v5672_v27 }
 0x466   :  { %3009 = vperm.xlu0 %3509, %v2943_v58  }
 0x468   :  { %3014 = vperm.xlu1 %3510, %v2944_v19  }
 0x46a   :  { %3019 = vperm.xlu0 %3509, %v2945_v46   ;;  %v3571_v46 = vld [vmem:[%s5520_s7 + $0xa8] sm:$0xff]  }
 0x46c   :  { %3024 = vperm.xlu1 %3510, %v2946_v31   ;;  %3430 = vmatmul.mubr.msk.bf16.gmra.mxu0 %vm140_vm1, %v3556_v14 }
 0x46d   :  { %2430 = vmatprep.mubr.bf16.mxu0 %v5672_v27 }
 0x474   :  { %3431 = vmatmul.mubr.msk.bf16.gmra.mxu0 %vm140_vm1, %v3558_v21  ;;  %v3573_v21 = vld [vmem:[%s5520_s7 + $0xb0] sm:$0xff]  }
 0x475   :  { %2440 = vmatprep.mubr.bf16.mxu0 %v5672_v27 }
 0x47c   :  { %3432 = vmatmul.mubr.msk.bf16.gmra.mxu0 %vm140_vm1, %v3560_v16 }
 0x47d   :  { %2818 = vmatprep.mubr.bf16.mxu0 %v5672_v27 }
 0x4b0   :  { %v2120_v41 = vpop.permute.xlu0 %2119 }
 0x4b1   :  { %v2123_v25 = vsel %vm304_vm4, %v2118_v44, %v2120_v41 }
 0x4b2   :  { %v2122_v38 = vpop.permute.xlu1 %2121  ;;  %v2150_v54 = vsel %vm144_vm0, %v2123_v25, 0 }
 0x4b3   :  { %v2124_v26 = vsel %vm304_vm4, %v2120_v41, %v2122_v38  ;;  %v3575_v41 = vld [vmem:[%s5520_s7 + $0xb8] sm:$0xff]   ;;  %s3499_s7 = sld [smem:[#allocation5 + $0x3]] }
 0x4b4   :  { %3407 = vmatprep.subr.msk.bf16.mxu1 %vm144_vm0, %v2124_v26  ;;  %v2509_v47 = vpop.permute.xlu0 %2508 }
 0x4b5   :  { %2170 = vmatpush1.bf16.msra.mxu1 %v2150_v54 }
 0x4b6   :  { %v2511_v7 = vpop.permute.xlu1 %2510 }
 0x4b7   :  { %v2514_v0 = vsel %vm696_vm5, %v2509_v47, %v2511_v7 }
 0x4b8   :  { %3408 = vmatmul.mubr.msk.bf16.vlgmr.msra.gmra.mxu1 %vm140_vm1, %v3545_v15  ;;  %v2513_v22 = vpop.permute.xlu0 %2512  ;;  %v2541_v2 = vsel %vm144_vm0, %v2514_v0, 0 }
 0x4b9   :  { %v2515_v56 = vsel %vm696_vm5, %v2511_v7, %v2513_v22  ;;  %2197 = vmatprep.mubr.bf16.mxu1 %v5672_v27 }
 0x4ba   :  { %v2749_v51 = vpop.permute.xlu1 %2748  ;;  %3457 = vmatprep.subr.msk.bf16.mxu1 %vm144_vm0, %v2515_v56 }
 0x4bb   :  { %2561 = vmatpush1.bf16.msra.mxu1 %v2541_v2 }
 0x4bc   :  { %v2751_v30 = vpop.permute.xlu0 %2750 }
 0x4bd   :  { %v2754_v48 = vsel %vm937_vm6, %v2749_v51, %v2751_v30 }
 0x4be   :  { %v2753_v17 = vpop.permute.xlu1 %2752  ;;  %v2781_v50 = vsel %vm144_vm0, %v2754_v48, 0 }
 0x4bf   :  { %v2755_v53 = vsel %vm937_vm6, %v2751_v30, %v2753_v17 }
 0x4c0   :  { %3409 = vmatmul.mubr.msk.bf16.gmra.mxu1 %vm140_vm1, %v3547_v20  ;;  %3490 = vmatprep.subr.msk.bf16.mxu0 %vm144_vm0, %v2755_v53 }
 0x4c1   :  { %2801 = vmatpush1.bf16.msra.mxu0 %v2781_v50  ;;  %2207 = vmatprep.mubr.bf16.mxu1 %v5672_v27 }
 0x4c4   :  { %3491 = vmatmul.mubr.msk.bf16.vlgmr.msra.gmra.mxu0 %vm140_vm1, %v3562_v42 }
 0x4c5   :  { %2828 = vmatprep.mubr.bf16.mxu0 %v5672_v27 }
 0x4c8   :  { %3410 = vmatmul.mubr.msk.bf16.gmra.mxu1 %vm140_vm1, %v3549_v45 }
 0x4c9   :  { %2217 = vmatprep.mubr.bf16.mxu1 %v5672_v27  ;;  %v2950_v28 = vpop.permute.xlu0 %2949 }
 0x4cc   :  { %3492 = vmatmul.mubr.msk.bf16.gmra.mxu0 %vm140_vm1, %v3564_v10 }
 0x4cd   :  { %2838 = vmatprep.mubr.bf16.mxu0 %v5672_v27 }
 0x4d0   :  { %3411 = vmatmul.mubr.msk.bf16.gmra.mxu1 %vm140_vm1, %v3551_v24 }
 0x4d1   :  { %2227 = vmatprep.mubr.bf16.mxu1 %v5672_v27 }
 0x4d4   :  { %3493 = vmatmul.mubr.msk.bf16.gmra.mxu0 %vm140_vm1, %v3566_v23 }
 0x4d5   :  { %2848 = vmatprep.mubr.bf16.mxu0 %v5672_v27 }
 0x4d8   :  { %3412 = vmatmul.mubr.msk.bf16.gmra.mxu1 %vm140_vm1, %v3553_v3 }
 0x4d9   :  { %2237 = vmatprep.mubr.bf16.mxu1 %v5672_v27 }
 0x4dc   :  { %3494 = vmatmul.mubr.msk.bf16.gmra.mxu0 %vm140_vm1, %v3568_v33 }
 0x4dd   :  { %2858 = vmatprep.mubr.bf16.mxu0 %v5672_v27 }
 0x4e0   :  { %3413 = vmatmul.mubr.msk.bf16.gmra.mxu1 %vm140_vm1, %v3555_v5 }
 0x4e1   :  { %2247 = vmatprep.mubr.bf16.mxu1 %v5672_v27 }
 0x4e4   :  { %3495 = vmatmul.mubr.msk.bf16.gmra.mxu0 %vm140_vm1, %v3570_v39 }
 0x4e5   :  { %2868 = vmatprep.mubr.bf16.mxu0 %v5672_v27 }
 0x4e8   :  { %3414 = vmatmul.mubr.msk.bf16.gmra.mxu1 %vm140_vm1, %v3557_v62 }
 0x4e9   :  { %2257 = vmatprep.mubr.bf16.mxu1 %v5672_v27 }
 0x4ec   :  { %3496 = vmatmul.mubr.msk.bf16.gmra.mxu0 %vm140_vm1, %v3572_v13 }
 0x4ed   :  { %2878 = vmatprep.mubr.bf16.mxu0 %v5672_v27 }
 0x4f0   :  { %3415 = vmatmul.mubr.msk.bf16.gmra.mxu1 %vm140_vm1, %v3559_v60 }
 0x4f1   :  { %2578 = vmatprep.mubr.bf16.mxu1 %v5672_v27 }
 0x4f4   :  { %3497 = vmatmul.mubr.msk.bf16.gmra.mxu0 %vm140_vm1, %v3574_v61 }
 0x4f5   :  { %2888 = vmatprep.mubr.bf16.mxu0 %v5672_v27 }
 0x4f8   :  { %3458 = vmatmul.mubr.msk.bf16.vlgmr.msra.gmra.mxu1 %vm140_vm1, %v3561_v40 }
 0x4f9   :  { %2588 = vmatprep.mubr.bf16.mxu1 %v5672_v27 }
 0x4fc   :  { %3498 = vmatmul.mubr.msk.bf16.gmra.mxu0 %vm140_vm1, %v3576_v18 }
 0x500   :  { %3459 = vmatmul.mubr.msk.bf16.gmra.mxu1 %vm140_vm1, %v3563_v4 }
 0x501   :  { %2598 = vmatprep.mubr.bf16.mxu1 %v5672_v27 }
 0x504   :  { %v5076_v34 = vpop.f32.mrf.mxu0 }
 0x506   :  { %v5079_v59 = vpop.f32.mrf.mxu0 }
 0x508   :  { %3460 = vmatmul.mubr.msk.bf16.gmra.mxu1 %vm140_vm1, %v3565_v49  ;;  %v5085_v43 = vpop.f32.mrf.mxu0 }
 0x509   :  { %2608 = vmatprep.mubr.bf16.mxu1 %v5672_v27 }
 0x50a   :  { %v5088_v57 = vpop.f32.mrf.mxu0 }
 0x50c   :  { %v5094_v58 = vpop.f32.mrf.mxu0 }
 0x50e   :  { %v5097_v19 = vpop.f32.mrf.mxu0 }
 0x510   :  { %3461 = vmatmul.mubr.msk.bf16.gmra.mxu1 %vm140_vm1, %v3567_v35  ;;  %v5103_v14 = vpop.f32.mrf.mxu0 }
 0x511   :  { %2618 = vmatprep.mubr.bf16.mxu1 %v5672_v27 }
 0x512   :  { %v5106_v31 = vpop.f32.mrf.mxu0 }
 0x514   :  { %v5112_v16 = vpop.f32.mrf.mxu0 }
 0x516   :  { %v5115_v44 = vpop.f32.mrf.mxu0 }
 0x518   :  { %3462 = vmatmul.mubr.msk.bf16.gmra.mxu1 %vm140_vm1, %v3569_v12  ;;  %v5121_v25 = vpop.f32.mrf.mxu0 }
 0x519   :  { %2628 = vmatprep.mubr.bf16.mxu1 %v5672_v27 }
 0x51a   :  { %v5124_v38 = vpop.f32.mrf.mxu0 }
 0x51c   :  { %v5126_v26 = vpop.f32.mrf.mxu0 }
 0x51e   :  { %v5128_v54 = vpop.f32.mrf.mxu0 }
 0x520   :  { %3463 = vmatmul.mubr.msk.bf16.gmra.mxu1 %vm140_vm1, %v3571_v46  ;;  %v5130_v47 = vpop.f32.mrf.mxu0 }
 0x521   :  { %2638 = vmatprep.mubr.bf16.mxu1 %v5672_v27  ;;  %5678 = vst [vmem:[#allocation29_spill] sm:$0xff] %v5130_v47 }
 0x522   :  { %v5132_v15 = vpop.f32.mrf.mxu0 }
 0x523   :  { %5679 = vst [vmem:[#allocation40_spill] sm:$0xff] %v5132_v15 }
 0x524   :  { %v5134_v7 = vpop.f32.mrf.mxu0 }
 0x525   :  { %5680 = vst [vmem:[#allocation18_spill] sm:$0xff] %v5134_v7 }
 0x528   :  { %3464 = vmatmul.mubr.msk.bf16.gmra.mxu1 %vm140_vm1, %v3573_v21 }
 0x529   :  { %2648 = vmatprep.mubr.bf16.mxu1 %v5672_v27  ;;  %v5136_v27 = vpop.f32.mrf.mxu0 }
 0x52a   :  { %5681 = vst [vmem:[#allocation24_spill] sm:$0xff] %v5136_v27 }
 0x52b   :  { %v5138_v0 = vpop.f32.mrf.mxu0 }
 0x52c   :  { %5682 = vst [vmem:[#allocation42_spill] sm:$0xff] %v5138_v0 }
 0x52d   :  { %v5140_v22 = vpop.f32.mrf.mxu0 }
 0x52e   :  { %5683 = vst [vmem:[#allocation19_spill] sm:$0xff] %v5140_v22 }
 0x52f   :  { %v5142_v56 = vpop.f32.mrf.mxu0 }
 0x530   :  { %3465 = vmatmul.mubr.msk.bf16.gmra.mxu1 %vm140_vm1, %v3575_v41  ;;  %5684 = vst [vmem:[#allocation25_spill] sm:$0xff] %v5142_v56 }
 0x531   :  { %v5144_v2 = vpop.f32.mrf.mxu0 }
 0x532   :  { %5685 = vst [vmem:[#allocation47_spill] sm:$0xff] %v5144_v2 }
 0x533   :  { %v5146_v51 = vpop.f32.mrf.mxu0 }
 0x534   :  { %5686 = vst [vmem:[#allocation20_spill] sm:$0xff] %v5146_v51 }
 0x535   :  { %v5148_v30 = vpop.f32.mrf.mxu0 }
 0x536   :  { %5687 = vst [vmem:[#allocation44_spill] sm:$0xff] %v5148_v30 }
 0x537   :  { %v5150_v20 = vpop.f32.mrf.mxu0 }
 0x538   :  { %5688 = vst [vmem:[#allocation45_spill] sm:$0xff] %v5150_v20 }
 0x539   :  { %v5152_v48 = vpop.f32.mrf.mxu0 }
 0x53a   :  { %5689 = vst [vmem:[#allocation22_spill] sm:$0xff] %v5152_v48 }
 0x53b   :  { %v5154_v17 = vpop.f32.mrf.mxu0 }
 0x53c   :  { %5690 = vst [vmem:[#allocation23_spill] sm:$0xff] %v5154_v17 }
 0x53d   :  { %v5156_v53 = vpop.f32.mrf.mxu0 }
 0x53e   :  { %5691 = vst [vmem:[#allocation8_spill] sm:$0xff] %v5156_v53 }
 0x53f   :  { %v5158_v50 = vpop.f32.mrf.mxu0 }
 0x540   :  { %5692 = vst [vmem:[#allocation9_spill] sm:$0xff] %v5158_v50 }
 0x541   :  { %v5160_v45 = vpop.f32.mrf.mxu0 }
 0x542   :  { %5693 = vst [vmem:[#allocation10_spill] sm:$0xff] %v5160_v45 }
 0x543   :  { %v5162_v23 = vpop.f32.mrf.mxu0 }
 0x544   :  { %5694 = vst [vmem:[#allocation48_spill] sm:$0xff] %v5162_v23 }
 0x545   :  { %v5164_v5 = vpop.f32.mrf.mxu0 }
 0x546   :  { %5695 = vst [vmem:[#allocation49_spill] sm:$0xff] %v5164_v5 }
 0x578   :  { %v2189_v42 = vpop.f32.mrf.mxu1 }
 0x57a   :  { %v2191_v10 = vpop.f32.mrf.mxu1 }
 0x57c   :  { %v2193_v24 = vpop.f32.mrf.mxu1 }
 0x57e   :  { %v2195_v3 = vpop.f32.mrf.mxu1 }
 0x580   :  { %v2199_v33 = vpop.f32.mrf.mxu1 }
 0x582   :  { %v5166_v39 = vpop.f32.mrf.mxu1 }
 0x584   :  { %v5168_v62 = vpop.f32.mrf.mxu1  ;;  %v2820_v13 = vpop.f32.mrf.mxu0 }
 0x586   :  { %v5170_v60 = vpop.f32.mrf.mxu1  ;;  %v2822_v61 = vpop.f32.mrf.mxu0 }
 0x588   :  { %v5172_v40 = vpop.f32.mrf.mxu1  ;;  %v2824_v18 = vpop.f32.mrf.mxu0 }
 0x58a   :  { %v5174_v4 = vpop.f32.mrf.mxu1  ;;  %v5176_v49 = vpop.f32.mrf.mxu0 }
 0x58c   :  { %v5178_v35 = vpop.f32.mrf.mxu1  ;;  %v5180_v12 = vpop.f32.mrf.mxu0 }
 0x58e   :  { %v5182_v46 = vpop.f32.mrf.mxu1  ;;  %v5186_v41 = vpop.f32.mrf.mxu0 }
 0x590   :  { %v5184_v21 = vpop.f32.mrf.mxu1  ;;  %v5192_v45 = vpop.f32.mrf.mxu0 }
 0x592   :  { %v5188_v5 = vpop.f32.mrf.mxu1  ;;  %v5198_v17 = vpop.f32.mrf.mxu0 }
 0x594   :  { %v5190_v23 = vpop.f32.mrf.mxu1  ;;  %v5204_v30 = vpop.f32.mrf.mxu0 }
 0x596   :  { %v5194_v50 = vpop.f32.mrf.mxu1  ;;  %v5210_v56 = vpop.f32.mrf.mxu0 }
 0x597   :  { %5696 = vst [vmem:[#allocation50_spill] sm:$0xff] %v5194_v50 }
 0x598   :  { %v5196_v53 = vpop.f32.mrf.mxu1  ;;  %v5216_v8 = vpop.f32.mrf.mxu0 }
 0x599   :  { %5697 = vst [vmem:[#allocation51_spill] sm:$0xff] %v5196_v53 }
 0x59a   :  { %v5200_v48 = vpop.f32.mrf.mxu1  ;;  %v5222_v27 = vpop.f32.mrf.mxu0 }
 0x59b   :  { %5698 = vst [vmem:[#allocation52_spill] sm:$0xff] %v5200_v48 }
 0x59c   :  { %v5202_v20 = vpop.f32.mrf.mxu1 }
 0x59d   :  { %5699 = vst [vmem:[#allocation53_spill] sm:$0xff] %v5202_v20 }
 0x59e   :  { %v5206_v51 = vpop.f32.mrf.mxu1 }
 0x59f   :  { %5700 = vst [vmem:[#allocation54_spill] sm:$0xff] %v5206_v51  ;;  %v5228_v51 = vpop.f32.mrf.mxu0 }
 0x5a0   :  { %v5208_v2 = vpop.f32.mrf.mxu1  ;;  %5708 = vst [vmem:[#allocation62_spill] sm:$0xff] %v5228_v51 }
 0x5a1   :  { %5701 = vst [vmem:[#allocation55_spill] sm:$0xff] %v5208_v2 }
 0x5a2   :  { %v5212_v22 = vpop.f32.mrf.mxu1 }
 0x5a3   :  { %5702 = vst [vmem:[#allocation56_spill] sm:$0xff] %v5212_v22  ;;  %v5234_v22 = vpop.f32.mrf.mxu0 }
 0x5a4   :  { %v5214_v55 = vpop.f32.mrf.mxu1  ;;  %5711 = vst [vmem:[#allocation65_spill] sm:$0xff] %v5234_v22  ;;  %v2377_v22 = vadd.f32 %v5085_v43, %v2193_v24  ;;  %v2955_v24 = vpop.permute.xlu1 %2954 }
 0x5a5   :  { %5703 = vst [vmem:[#allocation57_spill] sm:$0xff] %v5214_v55 }
 0x5a6   :  { %v5218_v0 = vpop.f32.mrf.mxu1 }
 0x5a7   :  { %5704 = vst [vmem:[#allocation58_spill] sm:$0xff] %v5218_v0 }
 0x5a8   :  { %v5220_v29 = vpop.f32.mrf.mxu1 }
 0x5a9   :  { %5705 = vst [vmem:[#allocation59_spill] sm:$0xff] %v5220_v29  ;;  %v5240_v29 = vpop.f32.mrf.mxu0 }
 0x5aa   :  { %v5224_v20 = vpop.f32.mrf.mxu1  ;;  %5714 = vst [vmem:[#allocation68_spill] sm:$0xff] %v5240_v29 }
 0x5ab   :  { %5706 = vst [vmem:[#allocation60_spill] sm:$0xff] %v5224_v20  ;;  %v2373_v20 = vadd.f32 %v5076_v34, %v2189_v42  ;;  %v5245_v9 = vpop.f32.mrf.mxu0 }
 0x5ac   :  { %v5226_v48 = vpop.f32.mrf.mxu1  ;;  %5716 = vst [vmem:[#allocation70_spill] sm:$0xff] %v5245_v9  ;;  %v2383_v9 = vadd.f32 %v5094_v58, %v2199_v33 }
 0x5ad   :  { %5707 = vst [vmem:[#allocation61_spill] sm:$0xff] %v5226_v48  ;;  %v5251_v29 = vpop.f32.mrf.mxu0 }
 0x5ae   :  { %v5230_v2 = vpop.f32.mrf.mxu1 }
 0x5af   :  { %5709 = vst [vmem:[#allocation63_spill] sm:$0xff] %v5230_v2  ;;  %v2375_v2 = vadd.f32 %v5079_v59, %v2191_v10  ;;  %v5258_v10 = vpop.f32.mrf.mxu0 }
 0x5b0   :  { %v5232_v7 = vpop.f32.mrf.mxu1 }
 0x5b1   :  { %5710 = vst [vmem:[#allocation64_spill] sm:$0xff] %v5232_v7 }
 0x5b2   :  { %v5236_v55 = vpop.f32.mrf.mxu1 }
 0x5b3   :  { %5712 = vst [vmem:[#allocation66_spill] sm:$0xff] %v5236_v55 }
 0x5b4   :  { %v5238_v53 = vpop.f32.mrf.mxu1 }
 0x5b5   :  { %5713 = vst [vmem:[#allocation67_spill] sm:$0xff] %v5238_v53  ;;  %v5249_v53 = vstv %s3499_s7 }
 0x5b6   :  { %v5242_v0 = vpop.f32.mrf.mxu1 }
 0x5b7   :  { %5715 = vst [vmem:[#allocation69_spill] sm:$0xff] %v5242_v0  ;;  %v2379_v0 = vadd.f32 %v5088_v57, %v2195_v3 }
 0x5b8   :  { %v2580_v48 = vpop.f32.mrf.mxu1 }
 0x5b9   :  { %v2659_v51 = vadd.f32 %v2580_v48, %v2373_v20 }
 0x5ba   :  { %v2582_v7 = vpop.f32.mrf.mxu1 }
 0x5bb   :  { %v2660_v55 = vadd.f32 %v2582_v7, %v2375_v2  ;;  %v2899_v15 = vadd.f32 %v2820_v13, %v2659_v51  ;;  %v2385_v7 = vadd.f32 %v5097_v19, %v5166_v39  ;;  %v2387_v19 = vadd.f32 %v5103_v14, %v5168_v62 }
 0x5bc   :  { %v2584_v50 = vpop.f32.mrf.mxu1  ;;  %v2389_v14 = vadd.f32 %v5106_v31, %v5170_v60 }
 0x5bd   :  { %v3027_v34 = vadd.f32 %v2950_v28, %v2899_v15  ;;  %v2661_v42 = vadd.f32 %v2584_v50, %v2377_v22  ;;  %v2900_v47 = vadd.f32 %v2822_v61, %v2660_v55  ;;  %v5271_v61 = vpop.f32.mrf.mxu0 }
 0x5be   :  { %v2586_v59 = vpop.f32.mrf.mxu1 }
 0x5bf   :  { %vm3060_vm0 = vcmp.gt.f32.partialorder %v3027_v34, 0.0  ;;  %v3093_v20 = vmul.f32 %v5249_v53, %v3027_v34  ;;  %v3028_v48 = vadd.f32 %v2950_v28, %v2900_v47  ;;  %v2662_v43 = vadd.f32 %v2586_v59, %v2379_v0  ;;  %v2960_v47 = vpop.permute.xlu0 %2959 }
 0x5c0   :  { %v2901_v2 = vadd.f32 %v2824_v18, %v2661_v42  ;;  %v2590_v51 = vpop.f32.mrf.mxu1 }
 0x5c1   :  { %v3125_v57 = vsel %vm3060_vm0, %v3027_v34, %v3093_v20  ;;  %vm3061_vm1 = vcmp.gt.f32.partialorder %v3028_v48, 0.0  ;;  %v3094_v55 = vmul.f32 %v5249_v53, %v3028_v48  ;;  %v2663_v15 = vadd.f32 %v2590_v51, %v2383_v9 }
 0x5c2   :  { %v3189_v58 = vadd.f32 %v3125_v57, %v4216_v37  ;;  %v3029_v22 = vadd.f32 %v2955_v24, %v2901_v2  ;;  %v2902_v50 = vadd.f32 %v5176_v49, %v2662_v43  ;;  %v2592_v28 = vpop.f32.mrf.mxu1  ;;  %v5287_v43 = vpop.f32.mrf.mxu0 }
 0x5c3   :  { %v3126_v0 = vsel %vm3061_vm1, %v3028_v48, %v3094_v55  ;;  %v2664_v3 = vadd.f32 %v2592_v28, %v2385_v7  ;;  %v2903_v33 = vadd.f32 %v5180_v12, %v2663_v15  ;;  %v2393_v12 = vadd.f32 %v5112_v16, %v5172_v40  ;;  %v2965_v7 = vpop.permute.xlu1 %2964 }
 0x5c4   :  { %3221 = vst [vmem:[%s5525_s12] sm:$0xff] %v3189_v58  ;;  %v3190_v9 = vadd.f32 %v3126_v0, %v4248_v52  ;;  %vm3062_vm4 = vcmp.gt.f32.partialorder %v3029_v22, 0.0  ;;  %v3095_v37 = vmul.f32 %v5249_v53, %v3029_v22  ;;  %v3030_v39 = vadd.f32 %v2955_v24, %v2902_v50  ;;  %v2594_v13 = vpop.f32.mrf.mxu1  ;;  %v5306_v50 = vpop.f32.mrf.mxu0 }
 0x5c5   :  { %v3031_v62 = vadd.f32 %v2960_v47, %v2903_v33  ;;  %v2665_v18 = vadd.f32 %v2594_v13, %v2387_v19  ;;  %v2904_v49 = vadd.f32 %v5186_v41, %v2664_v3  ;;  %v2395_v41 = vadd.f32 %v5115_v44, %v5174_v4  ;;  %v2970_v19 = vpop.permute.xlu0 %2969 }
 0x5c6   :  { %3222 = vst [vmem:[%s5525_s12 + $0x8] sm:$0xff] %v3190_v9  ;;  %v3127_v52 = vsel %vm3062_vm4, %v3029_v22, %v3095_v37  ;;  %vm3063_vm5 = vcmp.gt.f32.partialorder %v3030_v39, 0.0  ;;  %v3096_v34 = vmul.f32 %v5249_v53, %v3030_v39  ;;  %v2596_v42 = vpop.f32.mrf.mxu1  ;;  %v2397_v55 = vadd.f32 %v5121_v25, %v5178_v35 }
 0x5c7   :  { %v3191_v59 = vadd.f32 %v3127_v52, %v4220_v6  ;;  %vm3064_vm6 = vcmp.gt.f32.partialorder %v3031_v62, 0.0  ;;  %v3097_v31 = vmul.f32 %v5249_v53, %v3031_v62  ;;  %v3032_v60 = vadd.f32 %v2960_v47, %v2904_v49  ;;  %v5717_v49 = vld [vmem:[#allocation29_spill] sm:$0xff]  ;;  %v5718_v52 = vld [vmem:[#allocation50_spill] sm:$0xff] }
 0x5c8   :  { %v3128_v20 = vsel %vm3063_vm5, %v3030_v39, %v3096_v34  ;;  %v2666_v16 = vadd.f32 %v2596_v42, %v2389_v14  ;;  %v2905_v40 = vadd.f32 %v5192_v45, %v2665_v18  ;;  %v2600_v48 = vpop.f32.mrf.mxu1  ;;  %v2399_v25 = vadd.f32 %v5124_v38, %v5182_v46  ;;  %v5322_v14 = vpop.f32.mrf.mxu0  ;;  %v5719_v34 = vld [vmem:[#allocation40_spill] sm:$0xff] }
 0x5c9   :  { %3223 = vst [vmem:[%s5525_s12 + $0x10] sm:$0xff] %v3191_v59  ;;  %v3192_v6 = vadd.f32 %v3128_v20, %v4231_v1  ;;  %v3129_v2 = vsel %vm3064_vm6, %v3031_v62, %v3097_v31  ;;  %vm3065_vm11 = vcmp.gt.f32.partialorder %v3032_v60, 0.0  ;;  %v3098_v51 = vmul.f32 %v5249_v53, %v3032_v60  ;;  %v2975_v62 = vpop.permute.xlu1 %2974  ;;  %v5720_v31 = vld [vmem:[#allocation35_spill] sm:$0xff] }
 0x5ca   :  { %v3193_v44 = vadd.f32 %v3129_v2, %v4286_v36  ;;  %v3033_v4 = vadd.f32 %v2965_v7, %v2905_v40  ;;  %v2667_v24 = vadd.f32 %v2600_v48, %v2393_v12  ;;  %v2906_v45 = vadd.f32 %v5198_v17, %v2666_v16  ;;  %v2602_v57 = vpop.f32.mrf.mxu1  ;;  %v5340_v16 = vpop.f32.mrf.mxu0 }
 0x5cb   :  { %3224 = vst [vmem:[%s5525_s12 + $0x18] sm:$0xff] %v3192_v6  ;;  %v3130_v15 = vsel %vm3065_vm11, %v3032_v60, %v3098_v51  ;;  %v2668_v1 = vadd.f32 %v2602_v57, %v2395_v41  ;;  %v2407_v12 = vadd.f32 %v5717_v49, %v5190_v23  ;;  %v2409_v42 = vadd.f32 %v5719_v34, %v5718_v52  ;;  %v2980_v40 = vpop.permute.xlu0 %2979  ;;  %v5721_v23 = vld [vmem:[#allocation36_spill] sm:$0xff]  ;;  %v5722_v6 = vld [vmem:[#allocation62_spill] sm:$0xff] }
 0x5cc   :  { %3225 = vst [vmem:[%s5525_s12 + $0x20] sm:$0xff] %v3193_v44  ;;  %v3194_v36 = vadd.f32 %v3130_v15, %v4294_v11  ;;  %vm3066_vm12 = vcmp.gt.f32.partialorder %v3033_v4, 0.0  ;;  %v3099_v58 = vmul.f32 %v5249_v53, %v3033_v4  ;;  %v3034_v17 = vadd.f32 %v2965_v7, %v2906_v45  ;;  %v2604_v22 = vpop.f32.mrf.mxu1  ;;  %v5723_v44 = vld [vmem:[#allocation51_spill] sm:$0xff]  ;;  %v5725_v45 = vld [vmem:[#allocation52_spill] sm:$0xff] }
 0x5cd   :  { %v2907_v35 = vadd.f32 %v5204_v30, %v2667_v24  ;;  %v2669_v28 = vadd.f32 %v2604_v22, %v2397_v55  ;;  %v2908_v47 = vadd.f32 %v5210_v56, %v2668_v1  ;;  %v2403_v30 = vadd.f32 %v5126_v26, %v5184_v21  ;;  %v5726_v57 = vld [vmem:[#allocation24_spill] sm:$0xff]  ;;  %v5727_v1 = vld [vmem:[#allocation65_spill] sm:$0xff] }
 0x5ce   :  { %3226 = vst [vmem:[%s5525_s12 + $0x28] sm:$0xff] %v3194_v36  ;;  %v3131_v11 = vsel %vm3066_vm12, %v3033_v4, %v3099_v58  ;;  %vm3067_vm13 = vcmp.gt.f32.partialorder %v3034_v17, 0.0  ;;  %v3100_v0 = vmul.f32 %v5249_v53, %v3034_v17  ;;  %v2606_v3 = vpop.f32.mrf.mxu1  ;;  %v2405_v56 = vadd.f32 %v5128_v54, %v5188_v5  ;;  %v5724_v4 = vld [vmem:[#allocation18_spill] sm:$0xff] }
 0x5cf   :  { %v3195_v33 = vadd.f32 %v3131_v11, %v4278_v32  ;;  %v3035_v9 = vadd.f32 %v2970_v19, %v2907_v35  ;;  %v3036_v37 = vadd.f32 %v2970_v19, %v2908_v47  ;;  %v2670_v38 = vadd.f32 %v2606_v3, %v2399_v25  ;;  %v5730_v47 = vld [vmem:[#allocation42_spill] sm:$0xff]  ;;  %v5731_v3 = vld [vmem:[#allocation68_spill] sm:$0xff] }
 0x5d0   :  { %v3132_v46 = vsel %vm3067_vm13, %v3034_v17, %v3100_v0  ;;  %v2909_v39 = vadd.f32 %v5216_v8, %v2669_v28  ;;  %v2610_v13 = vpop.f32.mrf.mxu1  ;;  %v2413_v24 = vadd.f32 %v5724_v4, %v5723_v44  ;;  %v2415_v55 = vadd.f32 %v5726_v57, %v5725_v45  ;;  %v5728_v17 = vld [vmem:[#allocation21_spill] sm:$0xff]  ;;  %v5740_v4 = vld [vmem:[#allocation46_spill] sm:$0xff] }
 0x5d1   :  { %3227 = vst [vmem:[%s5525_s12 + $0x30] sm:$0xff] %v3195_v33  ;;  %v3196_v32 = vadd.f32 %v3132_v46, %v4304_v63  ;;  %vm3068_vm14 = vcmp.gt.f32.partialorder %v3035_v9, 0.0  ;;  %v3101_v18 = vmul.f32 %v5249_v53, %v3035_v9  ;;  %vm3069_vm15 = vcmp.gt.f32.partialorder %v3036_v37, 0.0  ;;  %v5729_v28 = vld [vmem:[#allocation53_spill] sm:$0xff] }
 0x5d2   :  { %v3102_v26 = vmul.f32 %v5249_v53, %v3036_v37  ;;  %v3037_v54 = vadd.f32 %v2975_v62, %v2909_v39  ;;  %v2671_v5 = vadd.f32 %v2610_v13, %v2403_v30  ;;  %v2910_v8 = vadd.f32 %v5222_v27, %v2670_v38  ;;  %v2612_v21 = vpop.f32.mrf.mxu1  ;;  %v2985_v38 = vpop.permute.xlu1 %2984  ;;  %v5732_v39 = vld [vmem:[#allocation39_spill] sm:$0xff] }
 0x5d3   :  { %3228 = vst [vmem:[%s5525_s12 + $0x38] sm:$0xff] %v3196_v32  ;;  %v3133_v63 = vsel %vm3068_vm14, %v3035_v9, %v3101_v18  ;;  %v2672_v59 = vadd.f32 %v2612_v21, %v2405_v56  ;;  %v2417_v19 = vadd.f32 %v5730_v47, %v5729_v28 }
 0x5d4   :  { %v3197_v60 = vadd.f32 %v3133_v63, %v5720_v31  ;;  %v3134_v41 = vsel %vm3069_vm15, %v3036_v37, %v3102_v26  ;;  %vm3070_vm2 = vcmp.gt.f32.partialorder %v3037_v54, 0.0  ;;  %v3103_v20 = vmul.f32 %v5249_v53, %v3037_v54  ;;  %v2614_v27 = vpop.f32.mrf.mxu1  ;;  %v5360_v37 = vpop.f32.mrf.mxu0  ;;  %v5735_v31 = vld [vmem:[#allocation27_spill] sm:$0xff] }
 0x5d5   :  { %v3198_v48 = vadd.f32 %v3134_v41, %v5721_v23  ;;  %v3038_v7 = vadd.f32 %v2975_v62, %v2910_v8  ;;  %v2911_v2 = vadd.f32 %v5722_v6, %v2671_v5  ;;  %v2673_v51 = vadd.f32 %v2614_v27, %v2407_v12  ;;  %v2990_v26 = vpop.permute.xlu0 %2989  ;;  %v5733_v5 = vld [vmem:[#allocation70_spill] sm:$0xff]  ;;  %v5734_v12 = vld [vmem:[#allocation43_spill] sm:$0xff] }
 0x5d6   :  { %3229 = vst [vmem:[%s5525_s12 + $0x40] sm:$0xff] %v3197_v60  ;;  %v3135_v15 = vsel %vm3070_vm2, %v3037_v54, %v3103_v20  ;;  %v2912_v36 = vadd.f32 %v5727_v1, %v2672_v59  ;;  %v2616_v58 = vpop.f32.mrf.mxu1  ;;  %v5375_v59 = vpop.f32.mrf.mxu0 }
 0x5d7   :  { %3230 = vst [vmem:[%s5525_s12 + $0x48] sm:$0xff] %v3198_v48  ;;  %v3199_v22 = vadd.f32 %v3135_v15, %v5728_v17  ;;  %vm3071_vm3 = vcmp.gt.f32.partialorder %v3038_v7, 0.0  ;;  %v3104_v25 = vmul.f32 %v5249_v53, %v3038_v7  ;;  %v3039_v35 = vadd.f32 %v2980_v40, %v2911_v2  ;;  %v5738_v48 = vld [vmem:[#allocation55_spill] sm:$0xff] }
 0x5d8   :  { %v3040_v11 = vadd.f32 %v2980_v40, %v2912_v36  ;;  %v2674_v0 = vadd.f32 %v2616_v58, %v2409_v42  ;;  %v2913_v33 = vadd.f32 %v5731_v3, %v2673_v51  ;;  %v2620_v9 = vpop.f32.mrf.mxu1  ;;  %v5736_v40 = vld [vmem:[#allocation54_spill] sm:$0xff]  ;;  %v5393_v58 = vpop.f32.mrf.mxu0  ;;  %v5742_v17 = vld [vmem:[#allocation47_spill] sm:$0xff] }
 0x5d9   :  { %3231 = vst [vmem:[%s5525_s12 + $0x50] sm:$0xff] %v3199_v22  ;;  %v3136_v30 = vsel %vm3071_vm3, %v3038_v7, %v3104_v25  ;;  %vm3072_vm7 = vcmp.gt.f32.partialorder %v3039_v35, 0.0  ;;  %v3105_v56 = vmul.f32 %v5249_v53, %v3039_v35  ;;  %v2675_v46 = vadd.f32 %v2620_v9, %v2413_v24  ;;  %v5739_v7 = vld [vmem:[#allocation25_spill] sm:$0xff] }
 0x5da   :  { %v3200_v13 = vadd.f32 %v3136_v30, %v5732_v39  ;;  %vm3073_vm8 = vcmp.gt.f32.partialorder %v3040_v11, 0.0  ;;  %v3106_v62 = vmul.f32 %v5249_v53, %v3040_v11  ;;  %v3041_v32 = vadd.f32 %v2985_v38, %v2913_v33  ;;  %v2622_v18 = vpop.f32.mrf.mxu1  ;;  %v5743_v25 = vld [vmem:[#allocation57_spill] sm:$0xff] }
 0x5db   :  { %v3137_v54 = vsel %vm3072_vm7, %v3039_v35, %v3105_v56  ;;  %v2914_v8 = vadd.f32 %v5733_v5, %v2674_v0  ;;  %v2676_v21 = vadd.f32 %v2622_v18, %v2415_v55  ;;  %v2915_v49 = vadd.f32 %v5251_v29, %v2675_v46  ;;  %v5737_v29 = vld [vmem:[#allocation19_spill] sm:$0xff]  ;;  %v5744_v35 = vld [vmem:[#allocation20_spill] sm:$0xff]  ;;  %v5745_v0 = vld [vmem:[#allocation41_spill] sm:$0xff] }
 0x5dc   :  { %3232 = vst [vmem:[%s5525_s12 + $0x58] sm:$0xff] %v3200_v13  ;;  %v3201_v52 = vadd.f32 %v3137_v54, %v5734_v12  ;;  %v3138_v34 = vsel %vm3073_vm8, %v3040_v11, %v3106_v62  ;;  %vm3074_vm9 = vcmp.gt.f32.partialorder %v3041_v32, 0.0  ;;  %v3107_v42 = vmul.f32 %v5249_v53, %v3041_v32  ;;  %v2624_v63 = vpop.f32.mrf.mxu1  ;;  %v2995_v11 = vpop.permute.xlu1 %2994  ;;  %v5747_v13 = vld [vmem:[#allocation58_spill] sm:$0xff]  ;;  %v5748_v62 = vld [vmem:[#allocation44_spill] sm:$0xff]  ;;  %v5749_v18 = vld [vmem:[#allocation59_spill] sm:$0xff] }
 0x5dd   :  { %v3202_v60 = vadd.f32 %v3138_v34, %v5735_v31  ;;  %v3042_v41 = vadd.f32 %v2985_v38, %v2914_v8  ;;  %v3043_v20 = vadd.f32 %v2990_v26, %v2915_v49  ;;  %v2677_v27 = vadd.f32 %v2624_v63, %v2417_v19  ;;  %v5746_v38 = vld [vmem:[#allocation11_spill] sm:$0xff]  ;;  %v5414_v49 = vpop.f32.mrf.mxu0  ;;  %v3000_v12 = vpop.permute.xlu0 %2999  ;;  %v5752_v63 = vld [vmem:[#allocation60_spill] sm:$0xff]  ;;  %v5753_v31 = vld [vmem:[#allocation22_spill] sm:$0xff] }
 0x5de   :  { %v2419_v23 = vadd.f32 %v5737_v29, %v5736_v40  ;;  %v2423_v6 = vadd.f32 %v5739_v7, %v5738_v48  ;;  %3233 = vst [vmem:[%s5525_s12 + $0x60] sm:$0xff] %v3201_v52  ;;  %v3139_v2 = vsel %vm3074_vm9, %v3041_v32, %v3107_v42  ;;  %v2916_v51 = vadd.f32 %v5258_v10, %v2676_v21  ;;  %v2626_v44 = vpop.f32.mrf.mxu1  ;;  %v5741_v10 = vld [vmem:[#allocation56_spill] sm:$0xff]  ;;  %v5754_v48 = vld [vmem:[#allocation30_spill] sm:$0xff] }
 0x5df   :  { %3234 = vst [vmem:[%s5525_s12 + $0x68] sm:$0xff] %v3202_v60  ;;  %v3203_v24 = vadd.f32 %v3139_v2, %v5740_v4  ;;  %vm3075_vm10 = vcmp.gt.f32.partialorder %v3042_v41, 0.0  ;;  %v3108_v45 = vmul.f32 %v5249_v53, %v3042_v41  ;;  %vm3076_vm0 = vcmp.gt.f32.partialorder %v3043_v20, 0.0 }
 0x5e0   :  { %v3109_v57 = vmul.f32 %v5249_v53, %v3043_v20  ;;  %v3044_v55 = vadd.f32 %v2990_v26, %v2916_v51  ;;  %v2678_v15 = vadd.f32 %v2626_v44, %v2419_v23  ;;  %v2917_v1 = vadd.f32 %v5271_v61, %v2677_v27  ;;  %v2630_v36 = vpop.f32.mrf.mxu1  ;;  %v5750_v26 = vld [vmem:[#allocation45_spill] sm:$0xff]  ;;  %v2886_v44 = vpop.f32.mrf.mxu0 }
 0x5e1   :  { %v2425_v22 = vadd.f32 %v5742_v17, %v5741_v10  ;;  %v2427_v28 = vadd.f32 %v5744_v35, %v5743_v25  ;;  %3235 = vst [vmem:[%s5525_s12 + $0x70] sm:$0xff] %v3203_v24  ;;  %v3140_v47 = vsel %vm3075_vm10, %v3042_v41, %v3108_v45  ;;  %v2679_v19 = vadd.f32 %v2630_v36, %v2423_v6  ;;  %v5756_v17 = vld [vmem:[#allocation31_spill] sm:$0xff] }
 0x5e2   :  { %v3204_v3 = vadd.f32 %v3140_v47, %v5745_v0  ;;  %v3141_v33 = vsel %vm3076_vm0, %v3043_v20, %v3109_v57  ;;  %vm3077_vm1 = vcmp.gt.f32.partialorder %v3044_v55, 0.0  ;;  %v3110_v61 = vmul.f32 %v5249_v53, %v3044_v55  ;;  %v2632_v9 = vpop.f32.mrf.mxu1  ;;  %v3005_v57 = vpop.permute.xlu1 %3004  ;;  %v5758_v47 = vld [vmem:[#allocation23_spill] sm:$0xff] }
 0x5e3   :  { %v3205_v30 = vadd.f32 %v3141_v33, %v5746_v38  ;;  %v3045_v56 = vadd.f32 %v2995_v11, %v2917_v1  ;;  %v2918_v46 = vadd.f32 %v5287_v43, %v2678_v15  ;;  %v2680_v39 = vadd.f32 %v2632_v9, %v2425_v22  ;;  %v5751_v43 = vld [vmem:[#allocation12_spill] sm:$0xff]  ;;  %v2890_v9 = vpop.f32.mrf.mxu0  ;;  %v3010_v38 = vpop.permute.xlu0 %3009 }
 0x5e4   :  { %v2429_v32 = vadd.f32 %v5748_v62, %v5747_v13  ;;  %v2433_v54 = vadd.f32 %v5750_v26, %v5749_v18  ;;  %3236 = vst [vmem:[%s5525_s12 + $0x78] sm:$0xff] %v3204_v3  ;;  %v3142_v5 = vsel %vm3077_vm1, %v3044_v55, %v3110_v61  ;;  %v2919_v8 = vadd.f32 %v5306_v50, %v2679_v19  ;;  %v2634_v21 = vpop.f32.mrf.mxu1  ;;  %v5755_v55 = vld [vmem:[#allocation28_spill] sm:$0xff]  ;;  %v5759_v19 = vld [vmem:[#allocation63_spill] sm:$0xff]  ;;  %v5763_v26 = vld [vmem:[#allocation9_spill] sm:$0xff] }
 0x5e5   :  { %3237 = vst [vmem:[%s5525_s12 + $0x80] sm:$0xff] %v3205_v30  ;;  %v3206_v52 = vadd.f32 %v3142_v5, %v5751_v43  ;;  %vm3078_vm4 = vcmp.gt.f32.partialorder %v3045_v56, 0.0  ;;  %v3111_v34 = vmul.f32 %v5249_v53, %v3045_v56  ;;  %v3046_v42 = vadd.f32 %v2995_v11, %v2918_v46  ;;  %v5760_v11 = vld [vmem:[#allocation8_spill] sm:$0xff]  ;;  %v5761_v30 = vld [vmem:[#allocation14_spill] sm:$0xff] }
 0x5e6   :  { %v2435_v60 = vadd.f32 %v5753_v31, %v5752_v63  ;;  %v3047_v41 = vadd.f32 %v3000_v12, %v2919_v8  ;;  %v2681_v20 = vadd.f32 %v2634_v21, %v2427_v28  ;;  %v2920_v50 = vadd.f32 %v5322_v14, %v2680_v39  ;;  %v2636_v27 = vpop.f32.mrf.mxu1  ;;  %v5757_v28 = vld [vmem:[#allocation61_spill] sm:$0xff]  ;;  %v5762_v18 = vld [vmem:[#allocation64_spill] sm:$0xff] }
 0x5e7   :  { %3238 = vst [vmem:[%s5525_s12 + $0x88] sm:$0xff] %v3206_v52  ;;  %v3143_v40 = vsel %vm3078_vm4, %v3045_v56, %v3111_v34  ;;  %vm3079_vm5 = vcmp.gt.f32.partialorder %v3046_v42, 0.0  ;;  %v3112_v29 = vmul.f32 %v5249_v53, %v3046_v42  ;;  %v2682_v23 = vadd.f32 %v2636_v27, %v2429_v32  ;;  %v5764_v21 = vld [vmem:[#allocation13_spill] sm:$0xff]  ;;  %v5765_v63 = vld [vmem:[#allocation32_spill] sm:$0xff]  ;;  %v5767_v27 = vld [vmem:[#allocation10_spill] sm:$0xff] }
 0x5e8   :  { %v3207_v7 = vadd.f32 %v3143_v40, %v5754_v48  ;;  %vm3080_vm6 = vcmp.gt.f32.partialorder %v3047_v41, 0.0  ;;  %v3113_v6 = vmul.f32 %v5249_v53, %v3047_v41  ;;  %v3048_v2 = vadd.f32 %v3000_v12, %v2920_v50  ;;  %v2640_v51 = vpop.f32.mrf.mxu1  ;;  %v5766_v50 = vld [vmem:[#allocation66_spill] sm:$0xff] }
 0x5e9   :  { %v3144_v4 = vsel %vm3079_vm5, %v3046_v42, %v3112_v29  ;;  %v2921_v14 = vadd.f32 %v5340_v16, %v2681_v20  ;;  %v2683_v24 = vadd.f32 %v2640_v51, %v2433_v54  ;;  %v2922_v45 = vadd.f32 %v5360_v37, %v2682_v23  ;;  %v2892_v42 = vpop.f32.mrf.mxu0  ;;  %v3015_v20 = vpop.permute.xlu1 %3014  ;;  %v5768_v29 = vld [vmem:[#allocation67_spill] sm:$0xff]  ;;  %v5769_v23 = vld [vmem:[#allocation48_spill] sm:$0xff] }
 0x5ea   :  { %3239 = vst [vmem:[%s5525_s12 + $0x90] sm:$0xff] %v3207_v7  ;;  %v3208_v15 = vadd.f32 %v3144_v4, %v5755_v55  ;;  %v3145_v1 = vsel %vm3080_vm6, %v3047_v41, %v3113_v6  ;;  %vm3081_vm11 = vcmp.gt.f32.partialorder %v3048_v2, 0.0  ;;  %v3114_v36 = vmul.f32 %v5249_v53, %v3048_v2  ;;  %v2642_v10 = vpop.f32.mrf.mxu1 }
 0x5eb   :  { %v3209_v22 = vadd.f32 %v3145_v1, %v5756_v17  ;;  %v3049_v25 = vadd.f32 %v3005_v57, %v2921_v14  ;;  %v3050_v35 = vadd.f32 %v3005_v57, %v2922_v45  ;;  %v2684_v16 = vadd.f32 %v2642_v10, %v2435_v60  ;;  %v5772_v45 = vld [vmem:[#allocation49_spill] sm:$0xff]  ;;  %v2894_v10 = vpop.f32.mrf.mxu0 }
 0x5ec   :  { %v2437_v37 = vadd.f32 %v5758_v47, %v5757_v28  ;;  %v2439_v0 = vadd.f32 %v5760_v11, %v5759_v19  ;;  %3240 = vst [vmem:[%s5525_s12 + $0x98] sm:$0xff] %v3208_v15  ;;  %v3146_v3 = vsel %vm3081_vm11, %v3048_v2, %v3114_v36  ;;  %v2923_v33 = vadd.f32 %v5375_v59, %v2683_v24  ;;  %v2644_v61 = vpop.f32.mrf.mxu1  ;;  %v5771_v24 = vld [vmem:[#allocation69_spill] sm:$0xff] }
 0x5ed   :  { %3241 = vst [vmem:[%s5525_s12 + $0xa0] sm:$0xff] %v3209_v22  ;;  %v3210_v56 = vadd.f32 %v3146_v3, %v5761_v30  ;;  %vm3082_vm12 = vcmp.gt.f32.partialorder %v3049_v25, 0.0  ;;  %v3115_v46 = vmul.f32 %v5249_v53, %v3049_v25  ;;  %vm3083_vm13 = vcmp.gt.f32.partialorder %v3050_v35, 0.0 }
 0x5ee   :  { %v3116_v39 = vmul.f32 %v5249_v53, %v3050_v35  ;;  %v3051_v13 = vadd.f32 %v3010_v38, %v2923_v33  ;;  %v2685_v62 = vadd.f32 %v2644_v61, %v2437_v37  ;;  %v2924_v32 = vadd.f32 %v5393_v58, %v2684_v16  ;;  %v2646_v59 = vpop.f32.mrf.mxu1  ;;  %v3025_v33 = vpop.permute.xlu1 %3024  ;;  %v5774_v61 = vld [vmem:[#allocation34_spill] sm:$0xff] }
 0x5ef   :  { %v2443_v54 = vadd.f32 %v5763_v26, %v5762_v18  ;;  %3242 = vst [vmem:[%s5525_s12 + $0xa8] sm:$0xff] %v3210_v56  ;;  %v3147_v5 = vsel %vm3082_vm12, %v3049_v25, %v3115_v46  ;;  %v2686_v8 = vadd.f32 %v2646_v59, %v2439_v0  ;;  %v2445_v40 = vadd.f32 %v5767_v27, %v5766_v50  ;;  %v2896_v56 = vpop.f32.mrf.mxu0  ;;  %v5775_v46 = vld [vmem:[#allocation33_spill] sm:$0xff] }
 0x5f0   :  { %v3211_v12 = vadd.f32 %v3147_v5, %v5764_v21  ;;  %v3148_v43 = vsel %vm3083_vm13, %v3050_v35, %v3116_v39  ;;  %vm3084_vm14 = vcmp.gt.f32.partialorder %v3051_v13, 0.0  ;;  %v3117_v52 = vmul.f32 %v5249_v53, %v3051_v13  ;;  %v2650_v34 = vpop.f32.mrf.mxu1  ;;  %v5773_v35 = vld [vmem:[#allocation15_spill] sm:$0xff]  ;;  %v5776_v18 = vld [vmem:[#allocation17_spill] sm:$0xff] }
 0x5f1   :  { %v3212_v58 = vadd.f32 %v3148_v43, %v5765_v63  ;;  %v3052_v31 = vadd.f32 %v3010_v38, %v2924_v32  ;;  %v2925_v60 = vadd.f32 %v5414_v49, %v2685_v62  ;;  %v2687_v41 = vadd.f32 %v2650_v34, %v2443_v54  ;;  %v5770_v49 = vld [vmem:[#allocation26_spill] sm:$0xff] }
 0x5f2   :  { %v2447_v48 = vadd.f32 %v5769_v23, %v5768_v29  ;;  %3243 = vst [vmem:[%s5525_s12 + $0xb0] sm:$0xff] %v3211_v12  ;;  %v3149_v7 = vsel %vm3084_vm14, %v3051_v13, %v3117_v52  ;;  %v2926_v6 = vadd.f32 %v2886_v44, %v2686_v8  ;;  %v2652_v2 = vpop.f32.mrf.mxu1  ;;  %v2449_v57 = vadd.f32 %v5772_v45, %v5771_v24  ;;  %v3020_v44 = vpop.permute.xlu0 %3019  ;;  %v5777_v12 = vld [vmem:[#allocation16_spill] sm:$0xff] }
 0x5f3   :  { %3244 = vst [vmem:[%s5525_s12 + $0xb8] sm:$0xff] %v3212_v58  ;;  %v3213_v51 = vadd.f32 %v3149_v7, %v5770_v49  ;;  %vm3085_vm15 = vcmp.gt.f32.partialorder %v3052_v31, 0.0  ;;  %v3118_v4 = vmul.f32 %v5249_v53, %v3052_v31  ;;  %v3053_v14 = vadd.f32 %v3015_v20, %v2925_v60 }
 0x5f4   :  { %v3054_v55 = vadd.f32 %v3015_v20, %v2926_v6  ;;  %v2688_v15 = vadd.f32 %v2652_v2, %v2445_v40  ;;  %v2927_v1 = vadd.f32 %v2890_v9, %v2687_v41  ;;  %v2654_v36 = vpop.f32.mrf.mxu1 }
 0x5f5   :  { %3245 = vst [vmem:[%s5525_s12 + $0xc0] sm:$0xff] %v3213_v51  ;;  %v3150_v17 = vsel %vm3085_vm15, %v3052_v31, %v3118_v4  ;;  %vm3086_vm2 = vcmp.gt.f32.partialorder %v3053_v14, 0.0  ;;  %v3119_v22 = vmul.f32 %v5249_v53, %v3053_v14  ;;  %v2689_v25 = vadd.f32 %v2654_v36, %v2447_v48  ;;  %v5779_v31 = vld [vmem:[#allocation38_spill] sm:$0xff] }
 0x5f6   :  { %v3214_v16 = vadd.f32 %v3150_v17, %v5773_v35  ;;  %vm3087_vm3 = vcmp.gt.f32.partialorder %v3054_v55, 0.0  ;;  %v3120_v28 = vmul.f32 %v5249_v53, %v3054_v55  ;;  %v3055_v47 = vadd.f32 %v3020_v44, %v2927_v1  ;;  %v2656_v37 = vpop.f32.mrf.mxu1 }
 0x5f7   :  { %v3151_v19 = vsel %vm3086_vm2, %v3053_v14, %v3119_v22  ;;  %v2928_v11 = vadd.f32 %v2892_v42, %v2688_v15  ;;  %v2690_v0 = vadd.f32 %v2656_v37, %v2449_v57  ;;  %v2929_v3 = vadd.f32 %v2894_v10, %v2689_v25  ;;  %v5778_v42 = vld [vmem:[#allocation37_spill] sm:$0xff] }
 0x5f8   :  { %3246 = vst [vmem:[%s5525_s12 + $0xc8] sm:$0xff] %v3214_v16  ;;  %v3215_v9 = vadd.f32 %v3151_v19, %v5774_v61  ;;  %v3152_v38 = vsel %vm3087_vm3, %v3054_v55, %v3120_v28  ;;  %vm3088_vm7 = vcmp.gt.f32.partialorder %v3055_v47, 0.0  ;;  %v3121_v30 = vmul.f32 %v5249_v53, %v3055_v47 }
 0x5f9   :  { %v3216_v39 = vadd.f32 %v3152_v38, %v5775_v46  ;;  %v3056_v13 = vadd.f32 %v3020_v44, %v2928_v11  ;;  %v3057_v62 = vadd.f32 %v3025_v33, %v2929_v3  ;;  %v2930_v32 = vadd.f32 %v2896_v56, %v2690_v0 }
 0x5fa   :  { %3247 = vst [vmem:[%s5525_s12 + $0xd0] sm:$0xff] %v3215_v9  ;;  %v3153_v59 = vsel %vm3088_vm7, %v3055_v47, %v3121_v30 }
 0x5fb   :  { %3248 = vst [vmem:[%s5525_s12 + $0xd8] sm:$0xff] %v3216_v39  ;;  %v3217_v26 = vadd.f32 %v3153_v59, %v5776_v18  ;;  %vm3089_vm8 = vcmp.gt.f32.partialorder %v3056_v13, 0.0  ;;  %v3122_v54 = vmul.f32 %v5249_v53, %v3056_v13  ;;  %vm3090_vm9 = vcmp.gt.f32.partialorder %v3057_v62, 0.0 }
 0x5fc   :  { %v3123_v5 = vmul.f32 %v5249_v53, %v3057_v62  ;;  %v3058_v8 = vadd.f32 %v3025_v33, %v2930_v32 }
 0x5fd   :  { %3249 = vst [vmem:[%s5525_s12 + $0xe0] sm:$0xff] %v3217_v26  ;;  %v3154_v21 = vsel %vm3089_vm8, %v3056_v13, %v3122_v54 }
 0x5fe   :  { %v3218_v43 = vadd.f32 %v3154_v21, %v5777_v12  ;;  %v3155_v52 = vsel %vm3090_vm9, %v3057_v62, %v3123_v5  ;;  %vm3091_vm10 = vcmp.gt.f32.partialorder %v3058_v8, 0.0  ;;  %v3124_v34 = vmul.f32 %v5249_v53, %v3058_v8 }
 0x5ff   :  { %v3219_v63 = vadd.f32 %v3155_v52, %v5778_v42 }
 0x600   :  { %3250 = vst [vmem:[%s5525_s12 + $0xe8] sm:$0xff] %v3218_v43  ;;  %v3156_v58 = vsel %vm3091_vm10, %v3058_v8, %v3124_v34 }
 0x601   :  { %3251 = vst [vmem:[%s5525_s12 + $0xf0] sm:$0xff] %v3219_v63  ;;  %v3220_v60 = vadd.f32 %v3156_v58, %v5779_v31 }
 0x603   :  { %3252 = vst [vmem:[%s5525_s12 + $0xf8] sm:$0xff] %v3220_v60 }
 0x604   :  { %3257 = vsyncpa [#allocation6], 1 }

</bundles_post_ra>
